<compile_context>
chip_gen: v7x
topology: tpu7x:2x2x1
jax: 0.10.0
libtpu: 0.0.40
codegen_flags: <defaults>
</compile_context>

<pallas_src>
import jax
import jax.numpy as jnp
from jax.experimental import pallas as pl
from jax.experimental.pallas import tpu as pltpu


# FC1 tile sizes (chosen to work on v5e / v6e / v7x; see header comment).
FC1_TM, FC1_TN, FC1_TK = 8, 512, 3840
FC2_TM = 8
BN_EPS = 1e-5


# ---------------------------------------------------------------------------
# Kernels
# ---------------------------------------------------------------------------

def _fc1_kernel(x_ref, w_ref, b_ref, o_ref):
    """relu(x @ w + b), K reduction on grid axis 2.

    The output BlockSpec's index_map ignores k, so o_ref stays VMEM-resident
    across the reduction and doubles as the f32 accumulator.
    """
    k = pl.program_id(2)

    @pl.when(k == 0)
    def _():
        o_ref[...] = jnp.zeros_like(o_ref)

    o_ref[...] += jnp.dot(
        x_ref[...], w_ref[...], preferred_element_type=jnp.float32
    )

    @pl.when(k == pl.num_programs(2) - 1)
    def _():
        o_ref[...] = jnp.maximum(o_ref[...] + b_ref[...], 0.0)


def _fc2_kernel(x_ref, w_ref, b_ref, o_ref):
    """relu(x @ w + b), full-K single shot (no reduction grid axis)."""
    acc = jnp.dot(
        x_ref[...].astype(jnp.bfloat16), w_ref[...],
        preferred_element_type=jnp.float32,
    )
    o_ref[...] = jnp.maximum(acc + b_ref[...], 0.0).astype(o_ref.dtype)


# ---------------------------------------------------------------------------
# pallas_call wrappers
# ---------------------------------------------------------------------------

def fused_linear_relu_reduce(x, w_t, bias, *, tm, tn, tk):
    """relu(x @ w_t + bias), tiled with a K-reduction grid axis.

    x    : (M, K)      bf16 activations
    w_t  : (K_pad, N)  bf16 weight (BN-folded, already padded to tk multiple)
    bias : (N,)        f32 fused bias
    """
    M, K = x.shape
    Kw, N = w_t.shape
    assert Kw % tk == 0, "weight must be pre-padded to a multiple of tk"
    assert Kw >= K and M % tm == 0 and N % tn == 0
    if Kw != K:
        # Only the small activation gets padded per call; the big weight was
        # padded once at param-prep time.
        x = jnp.pad(x, ((0, 0), (0, Kw - K)))
    bias_2d = bias.reshape(1, N).astype(jnp.float32)

    grid = (M // tm, N // tn, Kw // tk)
    return pl.pallas_call(
        _fc1_kernel,
        out_shape=jax.ShapeDtypeStruct((M, N), jnp.float32),
        grid_spec=pltpu.PrefetchScalarGridSpec(
            num_scalar_prefetch=0,
            grid=grid,
            in_specs=[
                pl.BlockSpec((tm, tk), lambda i, j, k: (i, k)),   # x tile
                pl.BlockSpec((tk, tn), lambda i, j, k: (k, j)),   # weight tile
                pl.BlockSpec((1, tn), lambda i, j, k: (0, j)),    # fused bias
            ],
            out_specs=pl.BlockSpec((tm, tn), lambda i, j, k: (i, j)),
        ),
        compiler_params=pltpu.CompilerParams(
            dimension_semantics=("parallel", "parallel", "arbitrary"),
        ),
    )(x, w_t, bias_2d)


def fused_linear_relu(x, w_t, bias, *, tm, tn):
    """relu(x @ w_t + bias) with the full contraction in one step."""
    M, K = x.shape
    Kw, N = w_t.shape
    assert Kw == K and M % tm == 0 and N % tn == 0
    bias_2d = bias.reshape(1, N).astype(jnp.float32)

    grid = (M // tm, N // tn)
    return pl.pallas_call(
        _fc2_kernel,
        out_shape=jax.ShapeDtypeStruct((M, N), jnp.float32),
        grid_spec=pltpu.PrefetchScalarGridSpec(
            num_scalar_prefetch=0,
            grid=grid,
            in_specs=[
                pl.BlockSpec((tm, K), lambda i, j: (i, 0)),
                pl.BlockSpec((K, tn), lambda i, j: (0, j)),
                pl.BlockSpec((1, tn), lambda i, j: (0, j)),
            ],
            out_specs=pl.BlockSpec((tm, tn), lambda i, j: (i, j)),
        ),
        compiler_params=pltpu.CompilerParams(
            dimension_semantics=("parallel", "parallel"),
        ),
    )(x, w_t, bias_2d)


# ---------------------------------------------------------------------------
# Parameters: raw (torch-equivalent) + inference packing (fold BN, bf16, pad)
# ---------------------------------------------------------------------------

def make_raw_params(key, in_dim=19179, hidden=1024, fea_out=512):
    """Synthetic params matching the module's shapes, with random BN stats."""
    ks = jax.random.split(key, 12)

    def bn(kg, kb, km, kv, dim):
        return dict(
            gamma=1.0 + 0.1 * jax.random.normal(kg, (dim,), jnp.float32),
            beta=0.1 * jax.random.normal(kb, (dim,), jnp.float32),
            mean=0.1 * jax.random.normal(km, (dim,), jnp.float32),
            var=jax.random.uniform(kv, (dim,), jnp.float32, 0.5, 1.5),
        )

    return {
        # Linear weights stored transposed: (in, out), so x @ w_t == x @ W.T
        "w1_t": 0.01 * jax.random.normal(ks[0], (in_dim, hidden), jnp.float32),
        "b1": 0.01 * jax.random.normal(ks[1], (hidden,), jnp.float32),
        "bn1": bn(ks[2], ks[3], ks[4], ks[5], hidden),
        "w2_t": 0.01 * jax.random.normal(ks[6], (hidden, fea_out), jnp.float32),
        "b2": 0.01 * jax.random.normal(ks[7], (fea_out,), jnp.float32),
        "bn2": bn(ks[8], ks[9], ks[10], ks[11], fea_out),
    }


def fold_and_pack(raw, *, k_pad_multiple=FC1_TK, eps=BN_EPS):
    """Fold BN into the Linear params, cast weights to bf16, pre-pad FC1 K."""

    def fold(w_t, b, bn):
        scale = bn["gamma"] * jax.lax.rsqrt(bn["var"] + eps)
        w_eff = (w_t * scale[None, :]).astype(jnp.bfloat16)
        b_eff = ((b - bn["mean"]) * scale + bn["beta"]).astype(jnp.float32)
        return w_eff, b_eff

    w1, b1 = fold(raw["w1_t"], raw["b1"], raw["bn1"])
    w2, b2 = fold(raw["w2_t"], raw["b2"], raw["bn2"])

    K = w1.shape[0]
    K_pad = pl.cdiv(K, k_pad_multiple) * k_pad_multiple
    if K_pad != K:
        w1 = jnp.pad(w1, ((0, K_pad - K), (0, 0)))   # zeros don't change the dot
    return {"w1_t": w1, "b1": b1, "w2_t": w2, "b2": b2}


# ---------------------------------------------------------------------------
# Forward
# ---------------------------------------------------------------------------

@jax.jit
def function_cnn_forward(x, params):
    xb = x.astype(jnp.bfloat16)
    h = fused_linear_relu_reduce(
        xb, params["w1_t"], params["b1"], tm=FC1_TM, tn=FC1_TN, tk=FC1_TK
    )
    fea_out = params["w2_t"].shape[1]
    tn2 = min(512, fea_out)
    out = fused_linear_relu(h, params["w2_t"], params["b2"], tm=FC2_TM, tn=tn2)
    return out


# ---------------------------------------------------------------------------
# References
# ---------------------------------------------------------------------------

def _reference_forward_f32(x, raw, eps=BN_EPS):
    """Full-f32, unfolded BatchNorm reference (eval-mode semantics)."""

    def block(a, w_t, b, bn):
        y = jnp.dot(a, w_t, precision=jax.lax.Precision.HIGHEST) + b
        y = (y - bn["mean"]) * (bn["gamma"] / jnp.sqrt(bn["var"] + eps)) + bn["beta"]
        return jnp.maximum(y, 0.0)

    h = block(x, raw["w1_t"], raw["b1"], raw["bn1"])
    return block(h, raw["w2_t"], raw["b2"], raw["bn2"])


def _reference_forward_folded(x, params):
    """Plain-JAX math on the exact folded/bf16 params the kernel consumes."""
    xb = x.astype(jnp.bfloat16).astype(jnp.float32)
    K_pad = params["w1_t"].shape[0]
    xb = jnp.pad(xb, ((0, 0), (0, K_pad - xb.shape[1])))
    h = jnp.maximum(
        xb @ params["w1_t"].astype(jnp.float32) + params["b1"], 0.0)
    hb = h.astype(jnp.bfloat16).astype(jnp.float32)
    return jnp.maximum(
        hb @ params["w2_t"].astype(jnp.float32) + params["b2"], 0.0)


# ---------------------------------------------------------------------------
# Self-test
# ---------------------------------------------------------------------------

if __name__ == "__main__":
    batch = 8
    in_dim = 19179       # fixed by the module's first Linear
    hidden = 1024
    fea_out = 128        # small fea_out for the example (module default is 512)

    key = jax.random.PRNGKey(0)
    kx, kp = jax.random.split(key)
    x = jax.random.normal(kx, (batch, in_dim), jnp.float32)
    raw = make_raw_params(kp, in_dim=in_dim, hidden=hidden, fea_out=fea_out)
    params = fold_and_pack(raw)

    out = function_cnn_forward(x, params)
    out = jax.block_until_ready(out)
    assert out.shape == (batch, fea_out), out.shape

    # (1) Exact-path check: same folded bf16 params, plain-JAX math.
    ref_folded = _reference_forward_folded(x, params)
    err1 = float(jnp.max(jnp.abs(out - ref_folded)))
    assert jnp.allclose(out, ref_folded, atol=2e-3, rtol=2e-3), err1

    # (2) Semantic check vs. full-f32 unfolded BatchNorm with random running
    #     stats / gamma / beta (validates the BN fold; tolerance covers bf16).
    ref_f32 = _reference_forward_f32(x, raw)
    err2 = float(jnp.max(jnp.abs(out - ref_f32)))
    assert jnp.allclose(out, ref_f32, atol=5e-2, rtol=5e-2), err2

    print("KERNEL_OK")
</pallas_src>

<mosaic_0001>
module attributes {stable_mosaic.version = 11 : i64} {
  func.func @_fc2_kernel(%arg0: i32, %arg1: i32, %arg2: memref<8x1024xf32, #tpu.memory_space<vmem>>, %arg3: memref<1024x128xbf16, #tpu.memory_space<vmem>>, %arg4: memref<1x128xf32, #tpu.memory_space<vmem>>, %arg5: memref<8x128xf32, #tpu.memory_space<vmem>>) attributes {dimension_semantics = [#tpu.dimension_semantics<parallel>, #tpu.dimension_semantics<parallel>], iteration_bounds = array<i64: 1, 1>, scalar_prefetch = 0 : i64, scratch_operands = 0 : i64, tpu.core_type = #tpu.core_type<tc>, window_params = [{transform_indices = @transform_0, window_bounds = array<i64: 8, 1024>}, {transform_indices = @transform_1, window_bounds = array<i64: 1024, 128>}, {transform_indices = @transform_2, window_bounds = array<i64: 1, 128>}, {transform_indices = @transform_3, window_bounds = array<i64: 8, 128>}]} {
    %c0 = arith.constant 0 : index
    %c0_0 = arith.constant 0 : index
    %0 = vector.load %arg2[%c0, %c0_0] : memref<8x1024xf32, #tpu.memory_space<vmem>>, vector<8x1024xf32>
    %1 = arith.truncf %0 : vector<8x1024xf32> to vector<8x1024xbf16>
    %c0_1 = arith.constant 0 : index
    %c0_2 = arith.constant 0 : index
    %2 = vector.load %arg3[%c0_1, %c0_2] : memref<1024x128xbf16, #tpu.memory_space<vmem>>, vector<1024x128xbf16>
    %cst = arith.constant dense<0.000000e+00> : vector<8x128xf32>
    %3 = tpu.matmul %1, %2, %cst {dimension_numbers = #tpu.dot_dimension_numbers<[1], [0], [0], [1], [0, 0, 1, 1], [], []>} : vector<8x1024xbf16>, vector<1024x128xbf16>, vector<8x128xf32> -> vector<8x128xf32>
    %c0_3 = arith.constant 0 : index
    %c0_4 = arith.constant 0 : index
    %4 = vector.load %arg4[%c0_3, %c0_4] : memref<1x128xf32, #tpu.memory_space<vmem>>, vector<1x128xf32>
    %5 = vector.broadcast %4 : vector<1x128xf32> to vector<8x128xf32>
    %6 = arith.addf %3, %5 : vector<8x128xf32>
    %cst_5 = arith.constant 0.000000e+00 : f32
    %7 = vector.broadcast %cst_5 : f32 to vector<8x128xf32>
    %8 = arith.maximumf %6, %7 : vector<8x128xf32>
    %c0_6 = arith.constant 0 : index
    %c0_7 = arith.constant 0 : index
    %9 = vector.load %arg5[%c0_6, %c0_7] : memref<8x128xf32, #tpu.memory_space<vmem>>, vector<8x128xf32>
    tpu.vector_store %arg5[%c0_6, %c0_7], %8 {strides = array<i32>} : memref<8x128xf32, #tpu.memory_space<vmem>>, vector<8x128xf32>,
    return
  }
  func.func @transform_0(%arg0: i32, %arg1: i32) -> (i32, i32) {
    %c0_i32 = arith.constant 0 : i32
    %c0_i32_0 = arith.constant 0 : i32
    return %arg0, %c0_i32 : i32, i32
  }
  func.func @transform_1(%arg0: i32, %arg1: i32) -> (i32, i32) {
    %c0_i32 = arith.constant 0 : i32
    %c0_i32_0 = arith.constant 0 : i32
    return %c0_i32, %arg1 : i32, i32
  }
  func.func @transform_2(%arg0: i32, %arg1: i32) -> (i32, i32) {
    %c0_i32 = arith.constant 0 : i32
    %c0_i32_0 = arith.constant 0 : i32
    return %c0_i32, %arg1 : i32, i32
  }
  func.func @transform_3(%arg0: i32, %arg1: i32) -> (i32, i32) {
    %c0_i32 = arith.constant 0 : i32
    return %arg0, %arg1 : i32, i32
  }
}

module attributes {stable_mosaic.version = 11 : i64} {
  func.func @_fc1_kernel(%arg0: i32, %arg1: i32, %arg2: i32, %arg3: memref<8x3840xbf16, #tpu.memory_space<vmem>>, %arg4: memref<3840x512xbf16, #tpu.memory_space<vmem>>, %arg5: memref<1x512xf32, #tpu.memory_space<vmem>>, %arg6: memref<8x512xf32, #tpu.memory_space<vmem>>) attributes {dimension_semantics = [#tpu.dimension_semantics<parallel>, #tpu.dimension_semantics<parallel>, #tpu.dimension_semantics<arbitrary>], iteration_bounds = array<i64: 1, 2, 5>, scalar_prefetch = 0 : i64, scratch_operands = 0 : i64, tpu.core_type = #tpu.core_type<tc>, window_params = [{transform_indices = @transform_0, window_bounds = array<i64: 8, 3840>}, {transform_indices = @transform_1, window_bounds = array<i64: 3840, 512>}, {transform_indices = @transform_2, window_bounds = array<i64: 1, 512>}, {transform_indices = @transform_3, window_bounds = array<i64: 8, 512>}]} {
    %c0_i32 = arith.constant 0 : i32
    %0 = arith.cmpi eq, %arg2, %c0_i32 : i32
    %1 = arith.extui %0 : i1 to i32
    %c0_i32_0 = arith.constant 0 : i32
    %2 = arith.cmpi ne, %1, %c0_i32_0 : i32
    scf.if %2 {
      %cst_9 = arith.constant 0.000000e+00 : f32
      %12 = vector.broadcast %cst_9 : f32 to vector<8x512xf32>
      %c0_10 = arith.constant 0 : index
      %c0_11 = arith.constant 0 : index
      %13 = vector.load %arg6[%c0_10, %c0_11] : memref<8x512xf32, #tpu.memory_space<vmem>>, vector<8x512xf32>
      tpu.vector_store %arg6[%c0_10, %c0_11], %12 {strides = array<i32>} : memref<8x512xf32, #tpu.memory_space<vmem>>, vector<8x512xf32>,
    } else {
    }
    %c0 = arith.constant 0 : index
    %c0_1 = arith.constant 0 : index
    %3 = vector.load %arg6[%c0, %c0_1] : memref<8x512xf32, #tpu.memory_space<vmem>>, vector<8x512xf32>
    %c0_2 = arith.constant 0 : index
    %c0_3 = arith.constant 0 : index
    %4 = vector.load %arg3[%c0_2, %c0_3] : memref<8x3840xbf16, #tpu.memory_space<vmem>>, vector<8x3840xbf16>
    %c0_4 = arith.constant 0 : index
    %c0_5 = arith.constant 0 : index
    %5 = vector.load %arg4[%c0_4, %c0_5] : memref<3840x512xbf16, #tpu.memory_space<vmem>>, vector<3840x512xbf16>
    %cst = arith.constant dense<0.000000e+00> : vector<8x512xf32>
    %6 = tpu.matmul %4, %5, %cst {dimension_numbers = #tpu.dot_dimension_numbers<[1], [0], [0], [1], [0, 0, 1, 1], [], []>} : vector<8x3840xbf16>, vector<3840x512xbf16>, vector<8x512xf32> -> vector<8x512xf32>
    %7 = arith.addf %3, %6 : vector<8x512xf32>
    %c0_6 = arith.constant 0 : index
    %c0_7 = arith.constant 0 : index
    %8 = vector.load %arg6[%c0_6, %c0_7] : memref<8x512xf32, #tpu.memory_space<vmem>>, vector<8x512xf32>
    tpu.vector_store %arg6[%c0_6, %c0_7], %7 {strides = array<i32>} : memref<8x512xf32, #tpu.memory_space<vmem>>, vector<8x512xf32>,
    %c4_i32 = arith.constant 4 : i32
    %9 = arith.cmpi eq, %arg2, %c4_i32 : i32
    %10 = arith.extui %9 : i1 to i32
    %c0_i32_8 = arith.constant 0 : i32
    %11 = arith.cmpi ne, %10, %c0_i32_8 : i32
    scf.if %11 {
      %c0_9 = arith.constant 0 : index
      %c0_10 = arith.constant 0 : index
      %12 = vector.load %arg6[%c0_9, %c0_10] : memref<8x512xf32, #tpu.memory_space<vmem>>, vector<8x512xf32>
      %c0_11 = arith.constant 0 : index
      %c0_12 = arith.constant 0 : index
      %13 = vector.load %arg5[%c0_11, %c0_12] : memref<1x512xf32, #tpu.memory_space<vmem>>, vector<1x512xf32>
      %14 = vector.broadcast %13 : vector<1x512xf32> to vector<8x512xf32>
      %15 = arith.addf %12, %14 : vector<8x512xf32>
      %cst_13 = arith.constant 0.000000e+00 : f32
      %16 = vector.broadcast %cst_13 : f32 to vector<8x512xf32>
      %17 = arith.maximumf %15, %16 : vector<8x512xf32>
      %c0_14 = arith.constant 0 : index
      %c0_15 = arith.constant 0 : index
      %18 = vector.load %arg6[%c0_14, %c0_15] : memref<8x512xf32, #tpu.memory_space<vmem>>, vector<8x512xf32>
      tpu.vector_store %arg6[%c0_14, %c0_15], %17 {strides = array<i32>} : memref<8x512xf32, #tpu.memory_space<vmem>>, vector<8x512xf32>,
    } else {
    }
    return
  }
  func.func @transform_0(%arg0: i32, %arg1: i32, %arg2: i32) -> (i32, i32) {
    %c0_i32 = arith.constant 0 : i32
    return %arg0, %arg2 : i32, i32
  }
  func.func @transform_1(%arg0: i32, %arg1: i32, %arg2: i32) -> (i32, i32) {
    %c0_i32 = arith.constant 0 : i32
    return %arg2, %arg1 : i32, i32
  }
  func.func @transform_2(%arg0: i32, %arg1: i32, %arg2: i32) -> (i32, i32) {
    %c0_i32 = arith.constant 0 : i32
    %c0_i32_0 = arith.constant 0 : i32
    return %c0_i32, %arg1 : i32, i32
  }
  func.func @transform_3(%arg0: i32, %arg1: i32, %arg2: i32) -> (i32, i32) {
    %c0_i32 = arith.constant 0 : i32
    return %arg0, %arg1 : i32, i32
  }
}

</mosaic_0001>

<bundles_post_ra>
// kernel: function_cnn_forward.3
= control target key start
LH: loop header
LB: loop body
LE: loop exit
PB: predicated region body
PF: predicated region fallthrough
CT: control target
= control target key end

     0   :  { %s1221_s0 = inlined_call_operand.vmem [shape: f32[8,1024], index: 0, kind: input, shape index: {}]   ;;  %s1222_s1 = inlined_call_operand.vmem [shape: bf16[1024,128], index: 1, kind: input, shape index: {}]   ;;  %s1223_s2 = inlined_call_operand.vmem [shape: f32[1,128], index: 2, kind: input, shape index: {}]   ;;  %s1224_s3 = inlined_call_operand.hbm [shape: f32[8,128], index: 3, kind: output, shape index: {}]  }
   0x1   :  { %v881_v0 = vld [vmem:[%s1222_s1 + $0x40] sm:$0xff]   ;;  %v885_v4 = vld [vmem:[%s1222_s1 + $0x48] sm:$0xff]   ;;  %v889_v8 = vld [vmem:[%s1222_s1 + $0x50] sm:$0xff]  }
   0x2   :  { %v882_v1 = vld [vmem:[%s1222_s1 + $0xc0] sm:$0xff]   ;;  %792 = vmatprep.subr.bf16.mxu0 %v881_v0  ;;  %v886_v5 = vld [vmem:[%s1222_s1 + $0xc8] sm:$0xff]   ;;  %v890_v9 = vld [vmem:[%s1222_s1 + $0xd0] sm:$0xff]  }
   0x3   :  { %v883_v2 = vld [vmem:[%s1222_s1] sm:$0xff]   ;;  %814 = vmatprep.subr.bf16.mxu1 %v882_v1  ;;  %v887_v6 = vld [vmem:[%s1222_s1 + $0x8] sm:$0xff]   ;;  %v891_v10 = vld [vmem:[%s1222_s1 + $0x10] sm:$0xff]  }
   0x4   :  { %v884_v3 = vld [vmem:[%s1222_s1 + $0x80] sm:$0xff]   ;;  %793 = vmatpush3.bf16.msra.mxu0 %v883_v2  ;;  %v888_v7 = vld [vmem:[%s1222_s1 + $0x88] sm:$0xff]   ;;  %v892_v11 = vld [vmem:[%s1222_s1 + $0x90] sm:$0xff]  }
   0x5   :  { %815 = vmatpush3.bf16.msra.mxu1 %v884_v3  ;;  %794 = vmatprep.subr.bf16.mxu0 %v885_v4  ;;  %v893_v12 = vld [vmem:[%s1222_s1 + $0x58] sm:$0xff]   ;;  %v897_v16 = vld [vmem:[%s1222_s1 + $0x60] sm:$0xff]   ;;  %v901_v20 = vld [vmem:[%s1222_s1 + $0x68] sm:$0xff]  }
   0x6   :  { %816 = vmatprep.subr.bf16.mxu1 %v886_v5  ;;  %v894_v13 = vld [vmem:[%s1222_s1 + $0xd8] sm:$0xff]   ;;  %v898_v17 = vld [vmem:[%s1222_s1 + $0xe0] sm:$0xff]   ;;  %v902_v21 = vld [vmem:[%s1222_s1 + $0xe8] sm:$0xff]  }
   0x7   :  { %v895_v14 = vld [vmem:[%s1222_s1 + $0x18] sm:$0xff]   ;;  %v899_v18 = vld [vmem:[%s1222_s1 + $0x20] sm:$0xff]   ;;  %v903_v22 = vld [vmem:[%s1222_s1 + $0x28] sm:$0xff]  }
   0x8   :  { %795 = vmatpush3.bf16.msra.mxu0 %v887_v6  ;;  %v896_v15 = vld [vmem:[%s1222_s1 + $0x98] sm:$0xff]   ;;  %v900_v19 = vld [vmem:[%s1222_s1 + $0xa0] sm:$0xff]   ;;  %v904_v23 = vld [vmem:[%s1222_s1 + $0xa8] sm:$0xff]  }
   0x9   :  { %817 = vmatpush3.bf16.msra.mxu1 %v888_v7  ;;  %796 = vmatprep.subr.bf16.mxu0 %v889_v8  ;;  %v905_v24 = vld [vmem:[%s1222_s1 + $0x70] sm:$0xff]   ;;  %v909_v28 = vld [vmem:[%s1222_s1 + $0x78] sm:$0xff]   ;;  %v17_v32 = vld [vmem:[%s1221_s0 + $0x8] sm:$0xff] }
   0xa   :  { %818 = vmatprep.subr.bf16.mxu1 %v890_v9  ;;  %v906_v25 = vld [vmem:[%s1222_s1 + $0xf0] sm:$0xff]   ;;  %v910_v29 = vld [vmem:[%s1222_s1 + $0xf8] sm:$0xff]   ;;  %v16_v34 = vld [vmem:[%s1221_s0] sm:$0xff]  ;;  %v25_v35 = vpack.c.bf16 %v17_v32, %v17_v32 }
   0xb   :  { %v907_v26 = vld [vmem:[%s1222_s1 + $0x30] sm:$0xff]   ;;  %v911_v30 = vld [vmem:[%s1222_s1 + $0x38] sm:$0xff]   ;;  %v24_v37 = vpack.c.bf16 %v16_v34, %v16_v34  ;;  %v913_v40 = vld [vmem:[%s1222_s1 + $0x140] sm:$0xff]  }
   0xc   :  { %797 = vmatpush3.bf16.msra.mxu0 %v891_v10  ;;  %v908_v27 = vld [vmem:[%s1222_s1 + $0xb0] sm:$0xff]   ;;  %v912_v31 = vld [vmem:[%s1222_s1 + $0xb8] sm:$0xff]   ;;  %583 = vmatprep.mubr.bf16.mxu0 %v25_v35  ;;  %v914_v41 = vld [vmem:[%s1222_s1 + $0x1c0] sm:$0xff]  }
   0xd   :  { %819 = vmatpush3.bf16.msra.mxu1 %v892_v11  ;;  %798 = vmatprep.subr.bf16.mxu0 %v893_v12  ;;  %v19_v33 = vld [vmem:[%s1221_s0 + $0x18] sm:$0xff]  ;;  %v18_v38 = vld [vmem:[%s1221_s0 + $0x10] sm:$0xff]  ;;  %v915_v42 = vld [vmem:[%s1222_s1 + $0x100] sm:$0xff]  }
   0xe   :  { %820 = vmatprep.subr.bf16.mxu1 %v894_v13  ;;  %v27_v36 = vpack.c.bf16 %v19_v33, %v19_v33  ;;  %v26_v39 = vpack.c.bf16 %v18_v38, %v18_v38  ;;  %v916_v43 = vld [vmem:[%s1222_s1 + $0x180] sm:$0xff]   ;;  %v917_v44 = vld [vmem:[%s1222_s1 + $0x148] sm:$0xff]   ;;  %v921_v48 = vld [vmem:[%s1222_s1 + $0x150] sm:$0xff]  }
   0xf   :  { %v918_v45 = vld [vmem:[%s1222_s1 + $0x1c8] sm:$0xff]   ;;  %v922_v49 = vld [vmem:[%s1222_s1 + $0x1d0] sm:$0xff]   ;;  %v925_v52 = vld [vmem:[%s1222_s1 + $0x158] sm:$0xff]  }
  0x10   :  { %799 = vmatpush3.bf16.msra.mxu0 %v895_v14  ;;  %623 = vmatprep.mubr.bf16.mxu1 %v27_v36  ;;  %v919_v46 = vld [vmem:[%s1222_s1 + $0x108] sm:$0xff]   ;;  %v923_v50 = vld [vmem:[%s1222_s1 + $0x110] sm:$0xff]   ;;  %v926_v53 = vld [vmem:[%s1222_s1 + $0x1d8] sm:$0xff]  }
  0x11   :  { %821 = vmatpush3.bf16.msra.mxu1 %v896_v15  ;;  %800 = vmatprep.subr.bf16.mxu0 %v897_v16  ;;  %v920_v47 = vld [vmem:[%s1222_s1 + $0x188] sm:$0xff]   ;;  %v924_v51 = vld [vmem:[%s1222_s1 + $0x190] sm:$0xff]   ;;  %v927_v54 = vld [vmem:[%s1222_s1 + $0x118] sm:$0xff]  }
  0x12   :  { %822 = vmatprep.subr.bf16.mxu1 %v898_v17  ;;  %v928_v55 = vld [vmem:[%s1222_s1 + $0x198] sm:$0xff]   ;;  %v929_v56 = vld [vmem:[%s1222_s1 + $0x160] sm:$0xff]   ;;  %v933_v60 = vld [vmem:[%s1222_s1 + $0x168] sm:$0xff]  }
  0x13   :  { %v930_v57 = vld [vmem:[%s1222_s1 + $0x1e0] sm:$0xff]   ;;  %v934_v61 = vld [vmem:[%s1222_s1 + $0x1e8] sm:$0xff]   ;;  %v937_v0 = vld [vmem:[%s1222_s1 + $0x170] sm:$0xff]  }
  0x14   :  { %801 = vmatpush3.bf16.msra.mxu0 %v899_v18  ;;  %v931_v58 = vld [vmem:[%s1222_s1 + $0x120] sm:$0xff]   ;;  %v935_v62 = vld [vmem:[%s1222_s1 + $0x128] sm:$0xff]   ;;  %v938_v1 = vld [vmem:[%s1222_s1 + $0x1f0] sm:$0xff]  }
  0x15   :  { %823 = vmatpush3.bf16.msra.mxu1 %v900_v19  ;;  %802 = vmatprep.subr.bf16.mxu0 %v901_v20  ;;  %v932_v59 = vld [vmem:[%s1222_s1 + $0x1a0] sm:$0xff]   ;;  %v936_v63 = vld [vmem:[%s1222_s1 + $0x1a8] sm:$0xff]   ;;  %v939_v2 = vld [vmem:[%s1222_s1 + $0x130] sm:$0xff]  }
  0x16   :  { %824 = vmatprep.subr.bf16.mxu1 %v902_v21  ;;  %v940_v3 = vld [vmem:[%s1222_s1 + $0x1b0] sm:$0xff]   ;;  %v941_v4 = vld [vmem:[%s1222_s1 + $0x178] sm:$0xff]   ;;  %v21_v8 = vld [vmem:[%s1221_s0 + $0x28] sm:$0xff] }
  0x17   :  { %v942_v5 = vld [vmem:[%s1222_s1 + $0x1f8] sm:$0xff]   ;;  %v29_v10 = vpack.c.bf16 %v21_v8, %v21_v8  ;;  %v20_v12 = vld [vmem:[%s1221_s0 + $0x20] sm:$0xff]  ;;  %v22_v13 = vld [vmem:[%s1221_s0 + $0x30] sm:$0xff] }
  0x18   :  { %803 = vmatpush3.bf16.msra.mxu0 %v903_v22  ;;  %v943_v6 = vld [vmem:[%s1222_s1 + $0x138] sm:$0xff]  }
  0x19   :  { %825 = vmatpush3.bf16.msra.mxu1 %v904_v23  ;;  %804 = vmatprep.subr.bf16.mxu0 %v905_v24  ;;  %v944_v7 = vld [vmem:[%s1222_s1 + $0x1b8] sm:$0xff]  }
  0x1a   :  { %826 = vmatprep.subr.bf16.mxu1 %v906_v25  ;;  %v23_v9 = vld [vmem:[%s1221_s0 + $0x38] sm:$0xff] }
  0x1b   :  { %v31_v11 = vpack.c.bf16 %v23_v9, %v23_v9 }
  0x1c   :  { %805 = vmatpush3.bf16.msra.mxu0 %v907_v26 }
  0x1d   :  { %827 = vmatpush3.bf16.msra.mxu1 %v908_v27  ;;  %806 = vmatprep.subr.bf16.mxu0 %v909_v28 }
  0x1e   :  { %828 = vmatprep.subr.bf16.mxu1 %v910_v29 }
  0x20   :  { %807 = vmatpush3.bf16.msra.mxu0 %v911_v30 }
  0x21   :  { %829 = vmatpush3.bf16.msra.mxu1 %v912_v31  ;;  %836 = vmatprep.subr.bf16.mxu0 %v913_v40 }
  0x22   :  { %858 = vmatprep.subr.bf16.mxu1 %v914_v41 }
  0x23   :  { %584 = vmatmul.mubr.bf16.vlgmr.msra.gmra.mrb[0].mxu0 %v24_v37 }
  0x24   :  { %624 = vmatmul.mubr.bf16.vlgmr.msra.gmra.mrb[0].mxu1 %v26_v39  ;;  %837 = vmatpush3.bf16.msra.mxu0 %v915_v42 }
  0x25   :  { %859 = vmatpush3.bf16.msra.mxu1 %v916_v43  ;;  %838 = vmatprep.subr.bf16.mxu0 %v917_v44 }
  0x26   :  { %860 = vmatprep.subr.bf16.mxu1 %v918_v45 }
  0x28   :  { %839 = vmatpush3.bf16.msra.mxu0 %v919_v46 }
  0x29   :  { %861 = vmatpush3.bf16.msra.mxu1 %v920_v47  ;;  %840 = vmatprep.subr.bf16.mxu0 %v921_v48 }
  0x2a   :  { %862 = vmatprep.subr.bf16.mxu1 %v922_v49 }
  0x2c   :  { %841 = vmatpush3.bf16.msra.mxu0 %v923_v50 }
  0x2d   :  { %863 = vmatpush3.bf16.msra.mxu1 %v924_v51  ;;  %842 = vmatprep.subr.bf16.mxu0 %v925_v52 }
  0x2e   :  { %864 = vmatprep.subr.bf16.mxu1 %v926_v53 }
  0x30   :  { %843 = vmatpush3.bf16.msra.mxu0 %v927_v54 }
  0x31   :  { %865 = vmatpush3.bf16.msra.mxu1 %v928_v55  ;;  %844 = vmatprep.subr.bf16.mxu0 %v929_v56 }
  0x32   :  { %866 = vmatprep.subr.bf16.mxu1 %v930_v57 }
  0x34   :  { %845 = vmatpush3.bf16.msra.mxu0 %v931_v58 }
  0x35   :  { %867 = vmatpush3.bf16.msra.mxu1 %v932_v59  ;;  %846 = vmatprep.subr.bf16.mxu0 %v933_v60 }
  0x36   :  { %868 = vmatprep.subr.bf16.mxu1 %v934_v61 }
  0x38   :  { %847 = vmatpush3.bf16.msra.mxu0 %v935_v62 }
  0x39   :  { %869 = vmatpush3.bf16.msra.mxu1 %v936_v63  ;;  %848 = vmatprep.subr.bf16.mxu0 %v937_v0 }
  0x3a   :  { %870 = vmatprep.subr.bf16.mxu1 %v938_v1 }
  0x3c   :  { %849 = vmatpush3.bf16.msra.mxu0 %v939_v2 }
  0x3d   :  { %871 = vmatpush3.bf16.msra.mxu1 %v940_v3  ;;  %850 = vmatprep.subr.bf16.mxu0 %v941_v4 }
  0x3e   :  { %872 = vmatprep.subr.bf16.mxu1 %v942_v5 }
  0x40   :  { %851 = vmatpush3.bf16.msra.mxu0 %v943_v6 }
  0x41   :  { %8 = vsyncpa [#allocation3], 0  ;;  %873 = vmatpush3.bf16.msra.mxu1 %v944_v7  ;;  %v28_v14 = vpack.c.bf16 %v20_v12, %v20_v12  ;;  %v30_v15 = vpack.c.bf16 %v22_v13, %v22_v13  ;;  %663 = vmatprep.mubr.bf16.mxu0 %v29_v10  ;;  %v727_v18 = vld [vmem:[%s1223_s2] ss:$0 sm:$0xff]  ;;  %s969_s0 = smov [#allocation2]  }
  0x42   :  { %703 = vmatprep.mubr.bf16.mxu1 %v31_v11  ;;  %s719_s2 = sshll.u32 %s969_s0, 4  ;;  %s720_s2 = int_to_ptr.vmem [resolvable:$true] %s719_s2 }
  0x43   :  { %664 = vmatmul.mubr.bf16.vlgmr.msra.gmra.mrb[4].mxu0 %v28_v14  ;;  %s945_s22 = scalar_lea.vmem %s720_s2, 128  ;;  %p950_p1 = scmp.lt.s32.totalorder %s720_s2, %s720_s2 }
  0x44   :  { %704 = vmatmul.mubr.bf16.vlgmr.msra.gmra.mrb[4].mxu1 %v30_v15  ;;  %p946_p0 = scmp.ne.s32.totalorder %s720_s2, %s945_s22  ;;  %p951_p2 = scmp.lt.s32.totalorder %s945_s22, %s945_s22 }
  0x46   :  { %p952_p3 = por %p951_p2, %p950_p1 }
  0x48   :  { %p953_p4 = pnand %p952_p3, %p946_p0 }
  0xf6   :  { %v808_v16 = vpop.f32.mrb[0].mxu0 }
  0xf7   :  { %v830_v17 = vpop.f32.mrb[0].mxu1  ;;  %v809_v19 = vpop.f32.mrb[1].mxu0 }
  0xf8   :  { %v831_v20 = vpop.f32.mrb[1].mxu1  ;;  %v810_v21 = vadd.f32 %v809_v19, %v808_v16  ;;  %v811_v23 = vpop.f32.mrb[2].mxu0 }
  0xf9   :  { %v832_v22 = vadd.f32 %v831_v20, %v830_v17  ;;  %v833_v24 = vpop.f32.mrb[2].mxu1  ;;  %v812_v25 = vpop.f32.mrb[3].mxu0 }
  0xfa   :  { %v834_v26 = vpop.f32.mrb[3].mxu1  ;;  %v586_v27 = vadd.f32 %v810_v21, %v727_v18 }
  0xfc   :  { %v626_v28 = vadd.f32 %v832_v22, %v586_v27 }
 0x116   :  { %v852_v29 = vpop.f32.mrb[4].mxu0 }
 0x117   :  { %v874_v30 = vpop.f32.mrb[4].mxu1  ;;  %v853_v31 = vpop.f32.mrb[5].mxu0 }
 0x118   :  { %v854_v32 = vadd.f32 %v853_v31, %v852_v29  ;;  %v875_v33 = vpop.f32.mrb[5].mxu1  ;;  %v855_v34 = vpop.f32.mrb[6].mxu0 }
 0x119   :  { %v876_v35 = vadd.f32 %v875_v33, %v874_v30  ;;  %v877_v36 = vpop.f32.mrb[6].mxu1  ;;  %v856_v37 = vpop.f32.mrb[7].mxu0 }
 0x11a   :  { %v666_v38 = vadd.f32 %v854_v32, %v626_v28  ;;  %v878_v39 = vpop.f32.mrb[7].mxu1 }
 0x11c   :  { %v706_v40 = vadd.f32 %v876_v35, %v666_v38 }
 0x11e   :  { %v711_v41 = vmax.f32 %v706_v40, 0.0 }
 0x120   :  { %712 = vst [vmem:[#allocation2] sm:$0xff] %v711_v41 }
 0x121   :  { %956 = shalt.err (!%p953_p4)
}
 0x122   :  { %s957_s25 = scalar_lea.hbm %s1224_s3, 128 }
 0x123   :  { %p958_p5 = scmp.ne.s32.totalorder %s1224_s3, %s957_s25  ;;  %p961_p6 = scmp.lt.u32.totalorder %s957_s25, %s1224_s3 }
 0x125   :  { %p963_p7 = pnand %p961_p6, %p958_p5 }
 0x127   :  { %966 = shalt.err (!%p963_p7)
}
 0x128   :  { %722 = dma.vmem_to_hbm [thread:$0]  %s720_s2, 128, %s1224_s3, [#allocation3]  }
 0x129   :  { %967 = dma.done.wait [#allocation3], 128  }
 0x12a   :  { %968 = vsyncadd [#allocation3], 4294967168 }
 0x12b   :  { %726 = vsyncpa [#allocation3], 1 }

// kernel: function_cnn_forward.2
= control target key start
LH: loop header
LB: loop body
LE: loop exit
PB: predicated region body
PF: predicated region fallthrough
CT: control target
= control target key end

     0   :  { %s11933_s0 = inlined_call_operand.vmem [shape: bf16[8,19200], index: 0, kind: input, shape index: {}]   ;;  %s11934_s1 = inlined_call_operand.hbm [shape: bf16[19200,1024], index: 1, kind: input, shape index: {}]   ;;  %s11935_s2 = inlined_call_operand.hbm [shape: f32[1,1024], index: 2, kind: input, shape index: {}]   ;;  %s11936_s3 = inlined_call_operand.vmem [shape: f32[8,1024], index: 3, kind: output, shape index: {}]  }
   0x1   :  { %11942 = sst [smem:[#allocation9_spill]] %s11934_s1 }
   0x2   :  { %8 = vsyncpa [#allocation3], 0 }
   0x3   :  { %10 = vsyncpa [#allocation3 + $0x1], 0 }
   0x4   :  { %11 = vsyncpa [#allocation5], 0 }
   0x5   :  { %13 = vsyncpa [#allocation5 + $0x1], 0  ;;  %s10386_s12 = smov 0   ;;  %s10388_s13 = smov 0  }
   0x6   :  { %s10390_s14 = smov 0   ;;  %s10392_s15 = smov 0  }
   0x7   :  { %s10394_s16 = smov 0   ;;  %s10396_s17 = smov 0  }
   0x8   :  { %s10398_s18 = smov 0   ;;  %s10400_s19 = smov 0  }
   0x9   :  { %s10402_s20 = smov 0   ;;  %s10404_s21 = smov 0  }
   0xa   :  { %s10406_s22 = smov 0  }
   0xb LB: > { %s31_s23 = sadd.s32 1, %s10350_s20  ;;  %p82_p1 = scmp.ne.s32.totalorder %s10338_s17, %s10334_s16  ;;  %s10358_s22 = sphi %s10406_s22, %s19_s22   ;;  %s10354_s21 = sphi %s10404_s21, %s11970_s21   ;;  %s10350_s20 = sphi %s10402_s20, %s11969_s20   ;;  %s10346_s19 = sphi %s10400_s19, %s11968_s19   ;;  %s10342_s18 = sphi %s10398_s18, %s11967_s18   ;;  %s10338_s17 = sphi %s10396_s17, %s11966_s17   ;;  %s10334_s16 = sphi %s10394_s16, %s11965_s16   ;;  %s10330_s15 = sphi %s10392_s15, %s11964_s15   ;;  %s10326_s14 = sphi %s10390_s14, %s11963_s14   ;;  %s10322_s13 = sphi %s10388_s13, %s11962_s13   ;;  %s10318_s12 = sphi %s10386_s12, %s11961_s12  }
   0xc   : > { %p10443_p0 = scmp.ge.s32.totalorder %s31_s23, 5  ;;  %p11938_p2 = scmp.eq.s32.totalorder %s10358_s22, 0 }
   0xd   : > { %p11937_p4 = scmp.lt.s32.totalorder %s10358_s22, 10  ;;  %s179_s27 = sand.u32 1, %s10338_s17  }
   0xe   : > { %s11972_s23 = smov (%p10443_p0, %s31_s23), 0  ;;  %p84_p3 = por %p11938_p2, %p82_p1 }
   0xf   : > { %s8628_s28 = smul.u32 7680, %s179_s27  ;;  %s7621_s29 = sshll.u32 %s10354_s21, 2 }
  0x10   : > { %s8626_s30 = smul.u32 3840, %s10350_s20  ;;  %p10464_p5 = pnand %p11937_p4, %p84_p3 }
  0x11   : > { %s183_s6 = scalar_lea.vmem [#allocation2], %s8628_s28  ;;  %s11945_s1 = sld [smem:[#allocation9_spill]] }
  0x12   : > { %s190_s5 = sadd.s32 %s8626_s30, %s7621_s29  ;;  %s193_s7 = sshll.u32 %s183_s6, 4  ;;  %s10468_s7 = int_to_ptr.vmem [resolvable:$true] %s193_s7 }
  0x13   : > { %s7623_s8 = sshll.u32 %s190_s5, 6  ;;  %s10476_s24 = scalar_lea.sflag [#allocation3], %s179_s27 }
  0x14   : > { %p10206_p8 = pneg %p10464_p5 }
  0x17   : > { %s10473_s11 = scalar_lea.hbm %s11945_s1, %s7623_s8  ;;  %s10209_s30 = scalar_lea.hbm %s11945_s1, 1228800 }
  0x18   : > { %s10204_s26 = scalar_lea.hbm %s10473_s11, 122880  ;;  %p10210_p11 = scmp.lt.u32.totalorder %s10473_s11, %s11945_s1 }
  0x19   : > { %p10205_p7 = scmp.ne.s32.totalorder %s10473_s11, %s10204_s26  ;;  %p10211_p12 = scmp.lt.u32.totalorder %s10209_s30, %s10204_s26 }
  0x1a   : > { %p10213_p1 = scmp.lt.u32.totalorder %s10204_s26, %s10473_s11 }
  0x1b   : > { %p10207_p9 = pnand %p10206_p8, %p10205_p7  ;;  %p10212_p13 = por %p10211_p12, %p10210_p11 }
  0x1d   : > { %p10208_p10 = pneg %p10207_p9  ;;  %p10214_p3 = por %p10213_p1, %p10212_p13 }
  0x1f   : > { %p10215_p4 = pnand %p10214_p3, %p10208_p10 }
  0x21   : > { %10218 = shalt.err (!%p10215_p4)
}
  0x22   : > { %s10219_s27 = scalar_lea.vmem %s10468_s7, 122880  ;;  %s10360_s8 = smov [#allocation2]  }
  0x23   : > { %p10220_p7 = scmp.ne.s32.totalorder %s10468_s7, %s10219_s27  ;;  %s10224_s9 = sshll.u32 %s10360_s8, 4  ;;  %s10225_s9 = int_to_ptr.vmem [resolvable:$false] %s10224_s9 }
  0x24   : > { %s10226_s10 = scalar_lea.vmem %s10225_s9, 245760  ;;  %p10227_p6 = scmp.lt.s32.totalorder %s10468_s7, %s10225_s9 }
  0x25   : > { %p10222_p9 = pnand %p10220_p7, %p10206_p8  ;;  %p10228_p11 = scmp.lt.s32.totalorder %s10226_s10, %s10219_s27 }
  0x27   : > { %p10223_p2 = pneg %p10222_p9  ;;  %p10229_p12 = por %p10228_p11, %p10227_p6 }
  0x29   : > { %p10230_p13 = pnand %p10229_p12, %p10223_p2 }
  0x2b   : > { %10233 = shalt.err (!%p10230_p13)
}
  0x2c   : > { %s10361_s26 = smov 512   ;;  %s10362_s28 = smov 256  }
  0x2d   : > { %s10363_s29 = smov 16   ;;  %p220_p2 = scmp.lt.s32.totalorder %s10358_s22, 11 }
  0x2e   : > { %8637 = dma.hbm_to_vmem [thread:$0]  (!%p10464_p5), %s10473_s11, 122880, %s10468_s7, %s10476_s24, %s10361_s26, %s10362_s28, %s10363_s29  }
  0x2f   : > { %p11946_p4 = scmp.ge.s32.totalorder %s10358_s22, 1  ;;  %s7617_s5 = sadd.s32 4294967295, %s10358_s22  }
  0x30   : > { %s34_s6 = sadd.s32 1, %s10354_s21  ;;  %p88_p8 = scmp.ne.s32.totalorder %s10334_s16, %s10330_s15 }
  0x31   : > { %p10507_p6 = pnand %p11946_p4, %p220_p2  ;;  %s11974_s6 = smov (!%p10443_p0, %s34_s6), %s10354_s21 }
  0x32   : > { %p10518_p10 = scmp.eq.s32.totalorder %s7617_s5, 0  ;;  %p36_p5 = scmp.ge.s32.totalorder %s11974_s6, 2 }
  0x33   : > { %s101_s24 = sadd.s32 1, %s10326_s14  ;;  %p108_p3 = scmp.ne.s32.totalorder %s10326_s14, %s10322_s13 }
  0x34   : > { %p10525_p1 = por %p10518_p10, %p88_p8  ;;  %s11976_s6 = smov (%p36_p5, %s11974_s6), 0 }
  0x35   : > { %11950 = sst [smem:[#allocation8_spill]] %s11976_s6  ;;  %p11951_p0 = scmp.eq.s32.totalorder %s10358_s22, 0 }
  0x36   : > { %s11949_s7 = scalar_select %p10525_p1, 1, 0 }
  0x37   : > { %p10535_p7 = por %p108_p3, %p11951_p0  ;;  %p114_p9 = scmp.ne.s32.totalorder %s10322_s13, %s10318_s12 }
  0x38   : > { %s71_s25 = ssub.s32 %s10354_s21, %s11976_s6  ;;  %s203_s11 = sand.u32 1, %s10326_s14  }
  0x39   : > { %s11953_s27 = ssub.s32 %s10350_s20, %s11972_s23  ;;  %p99_p11 = scmp.eq.s32.totalorder %s71_s25, 0 }
  0x3a   : > { %s72_s8 = sor.u32 %s71_s25, %s11953_s27  ;;  %p10549_p13 = por %p114_p9, %p10518_p10 }
  0x3b   : > { %p73_p12 = scmp.eq.s32.totalorder %s72_s8, 0  ;;  %s11955_s26 = sadd.s32 1, %s10338_s17 }
  0x3c   : > { %s11954_s9 = scalar_select %p10549_p13, 1, 0 }
  0x3d   : > { %s10554_s10 = scalar_select %p99_p11, %s10326_s14, %s101_s24  }
  0x3e   : > { %s10559_s28 = scalar_select %p73_p12, %s10338_s17, %s11955_s26  }
  0x3f   : > { %s7624_s29 = sshll.u32 %s203_s11, 2  ;;  %s8627_s5 = sshll.u32 %s10354_s21, 6 }
  0x40   : > { %s10565_s6 = scalar_lea.hbm %s11935_s2, %s8627_s5  ;;  %s207_s4 = scalar_lea.vmem [#allocation4], %s7624_s29 }
  0x41   : > { %s215_s25 = sshll.u32 %s207_s4, 4  ;;  %p11956_p2 = scmp.lt.s32.totalorder %s10358_s22, 10  ;;  %s10567_s25 = int_to_ptr.vmem [resolvable:$true] %s215_s25 }
  0x42   : > { %s204_s27 = scalar_lea.sflag [#allocation5], %s203_s11  ;;  %s10234_s1 = scalar_lea.hbm %s10565_s6, 64 }
  0x43   : > { %p10573_p4 = pnand %p11956_p2, %p10535_p7  ;;  %p10235_p8 = scmp.ne.s32.totalorder %s10565_s6, %s10234_s1 }
  0x44   : > { %s10239_s15 = scalar_lea.hbm %s11935_s2, 128  ;;  %p10240_p0 = scmp.lt.u32.totalorder %s10565_s6, %s11935_s2 }
  0x45   : > { %p10236_p10 = pneg %p10573_p4  ;;  %p10241_p7 = scmp.lt.u32.totalorder %s10239_s15, %s10234_s1 }
  0x46   : > { %p10243_p11 = scmp.lt.u32.totalorder %s10234_s1, %s10565_s6 }
  0x47   : > { %p10237_p5 = pnand %p10236_p10, %p10235_p8  ;;  %p10242_p9 = por %p10241_p7, %p10240_p0 }
  0x49   : > { %p10238_p3 = pneg %p10237_p5  ;;  %p10244_p12 = por %p10243_p11, %p10242_p9 }
  0x4b   : > { %p10245_p2 = pnand %p10244_p12, %p10238_p3 }
  0x4d   : > { %10248 = shalt.err (!%p10245_p2)
}
  0x4e   : > { %s10249_s11 = scalar_lea.vmem %s10567_s25, 64  ;;  %s10364_s12 = smov [#allocation4]  }
  0x4f   : > { %p10250_p8 = scmp.ne.s32.totalorder %s10567_s25, %s10249_s11  ;;  %s10254_s4 = sshll.u32 %s10364_s12, 4  ;;  %s10255_s4 = int_to_ptr.vmem [resolvable:$false] %s10254_s4 }
  0x50   : > { %s10256_s8 = scalar_lea.vmem %s10255_s4, 128  ;;  %p10257_p1 = scmp.lt.s32.totalorder %s10567_s25, %s10255_s4 }
  0x51   : > { %p10252_p5 = pnand %p10250_p8, %p10236_p10  ;;  %p10258_p0 = scmp.lt.s32.totalorder %s10256_s8, %s10249_s11 }
  0x53   : > { %p10253_p13 = pneg %p10252_p5  ;;  %p10259_p7 = por %p10258_p0, %p10257_p1 }
  0x55   : > { %p10260_p9 = pnand %p10259_p7, %p10253_p13 }
  0x57   : > { %10263 = shalt.err (!%p10260_p9)
}
  0x58   : > { %8640 = dma.hbm_to_vmem [thread:$0]  (!%p10573_p4), %s10565_s6, 64, %s10567_s25, %s204_s27  }
  0x59   : > { %224 = sbr.rel (%p10507_p6) target bundleno = 1304 (0x518), region = 32  ;;  %s226_s1 = sand.u32 (!%p10507_p6), 1, %s10334_s16  }
  0x5a   : > { %s8629_s26 = smul.u32 (!%p10507_p6), 7680, %s226_s1  ;;  %s227_s15 = scalar_lea.sflag (!%p10507_p6), [#allocation3], %s226_s1 }
  0x5b   : > { %p11958_p10 = scmp.ne.s32.totalorder (!%p10507_p6), %s11949_s7, 0 }
  0x5c   : > { %s10605_s29 = scalar_lea.vmem (!%p10507_p6), [#allocation2], %s8629_s26 }
  0x60   : > { %10309 = dma.done.wait (%p11958_p10), %s227_s15, 122880  }
  0x61   : > { %10311 = vsyncadd (%p11958_p10), %s227_s15, 4294844416  ;;  %s235_s24 = sand.u32 1, %s10322_s13   ;;  %p11959_p6 = scmp.ne.s32.totalorder %s11954_s9, 0 }
  0x62   : > { %s10612_s5 = sshll.u32 %s235_s24, 2  ;;  %s236_s30 = scalar_lea.sflag [#allocation5], %s235_s24 }
  0x63   : > { %s239_s6 = scalar_lea.vmem [#allocation4], %s10612_s5 }
  0x64   : > { %10313 = dma.done.wait (%p11959_p6), %s236_s30, 64  }
  0x65   : > { %10315 = vsyncadd (%p11959_p6), %s236_s30, 4294967232  ;;  %s280_s25 = smul.u32 30, %s10342_s18  ;;  %s7630_s27 = sshll.u32 %s10346_s19, 2 }
  0x66   : > { %p296_p1 = scmp.lt.s32.totalorder %s7630_s27, 7  ;;  %p7632_p4 = scmp.ne.s32.totalorder %s10342_s18, 0 }
  0x67   : > { %p283_p13 = scmp.lt.s32.totalorder %s280_s25, 149  ;;  %v10365_v0 = vmov (!%p7632_p4), 0.0  }
  0x68   : > { %s11978_s27 = smov (!%p296_p1, %s7630_s27), 7  ;;  %306 = sbr.rel (%p7632_p4) target bundleno = 111 (0x6f), region = 44 }
  0x69   : > { %s11980_s25 = smov (!%p283_p13, %s280_s25), 149  ;;  %s7631_s7 = sshll.u32 %s11978_s27, 3 }
  0x6a   : > { %s7629_s11 = sshll.u32 %s11980_s25, 2  ;;  %s10624_s8 = scalar_lea.vmem %s11936_s3, %s7631_s7 }
  0x6b   : > { %s10629_s9 = scalar_lea.vmem %s11933_s0, %s7629_s11  ;;  %307 = vst [vmem:[%s10624_s8] sm:$0xff] (!%p7632_p4), %v10365_v0  ;;  %308 = vst [vmem:[%s10624_s8 + $0x8] sm:$0xff] (!%p7632_p4), %v10365_v0 }
  0x6c   : > { %309 = vst [vmem:[%s10624_s8 + $0x10] sm:$0xff] (!%p7632_p4), %v10365_v0  ;;  %310 = vst [vmem:[%s10624_s8 + $0x18] sm:$0xff] (!%p7632_p4), %v10365_v0 }
  0x6f PF: > { %v8734_v1 = vld [vmem:[%s10605_s29 + $0x4] ss:$16 sps:$4 sm:$0xff]   ;;  %v8738_v3 = vld [vmem:[%s10605_s29] ss:$16 sps:$4 sm:$0xff]   ;;  %v316_v49 = vld [vmem:[%s10629_s9 + $0x8] sm:$0xff]  ;;  %p8623_p3 = scmp.ne.s32.totalorder %s10342_s18, 4 }
  0x70   : > { %v8736_v2 = vld [vmem:[%s10605_s29 + $0x204] ss:$16 sps:$4 sm:$0xff]   ;;  %6195 = vmatprep.subr.bf16.mxu0 %v8734_v1  ;;  %v8739_v4 = vld [vmem:[%s10605_s29 + $0x200] ss:$16 sps:$4 sm:$0xff]   ;;  %v10688_v52 = vcombine.high %v316_v49, %v316_v49 }
  0x71   : > { %6236 = vmatprep.subr.bf16.mxu1 %v8736_v2  ;;  %v8740_v5 = vld [vmem:[%s10605_s29 + $0x24] ss:$16 sps:$4 sm:$0xff]   ;;  %6196 = vmatpush1.bf16.msra.mxu0 %v8738_v3  ;;  %v8744_v7 = vld [vmem:[%s10605_s29 + $0x20] ss:$16 sps:$4 sm:$0xff]  }
  0x72   : > { %6237 = vmatpush1.bf16.msra.mxu1 %v8739_v4  ;;  %v8742_v6 = vld [vmem:[%s10605_s29 + $0x224] ss:$16 sps:$4 sm:$0xff]   ;;  %6197 = vmatprep.subr.bf16.mxu0 %v8740_v5  ;;  %v8745_v8 = vld [vmem:[%s10605_s29 + $0x220] ss:$16 sps:$4 sm:$0xff]  }
  0x73   : > { %6238 = vmatprep.subr.bf16.mxu1 %v8742_v6  ;;  %v8746_v9 = vld [vmem:[%s10605_s29 + $0x44] ss:$16 sps:$4 sm:$0xff]   ;;  %v8750_v11 = vld [vmem:[%s10605_s29 + $0x40] ss:$16 sps:$4 sm:$0xff]   ;;  %6268 = vmatprep.mubr.bf16.mxu1 %v10688_v52 }
  0x74   : > { %v8748_v10 = vld [vmem:[%s10605_s29 + $0x244] ss:$16 sps:$4 sm:$0xff]   ;;  %v8751_v12 = vld [vmem:[%s10605_s29 + $0x240] ss:$16 sps:$4 sm:$0xff]  }
  0x75   : > { %6198 = vmatpush1.bf16.msra.mxu0 %v8744_v7  ;;  %v8752_v13 = vld [vmem:[%s10605_s29 + $0x64] ss:$16 sps:$4 sm:$0xff]   ;;  %v8756_v15 = vld [vmem:[%s10605_s29 + $0x60] ss:$16 sps:$4 sm:$0xff]  }
  0x76   : > { %6239 = vmatpush1.bf16.msra.mxu1 %v8745_v8  ;;  %6199 = vmatprep.subr.bf16.mxu0 %v8746_v9  ;;  %v8754_v14 = vld [vmem:[%s10605_s29 + $0x264] ss:$16 sps:$4 sm:$0xff]   ;;  %v8757_v16 = vld [vmem:[%s10605_s29 + $0x260] ss:$16 sps:$4 sm:$0xff]   ;;  %v10712_v8 = vcombine.low %v316_v49, %v316_v49 }
  0x77   : > { %6240 = vmatprep.subr.bf16.mxu1 %v8748_v10  ;;  %v8758_v17 = vld [vmem:[%s10605_s29 + $0x84] ss:$16 sps:$4 sm:$0xff]   ;;  %v8762_v19 = vld [vmem:[%s10605_s29 + $0x80] ss:$16 sps:$4 sm:$0xff]  }
  0x78   : > { %v8760_v18 = vld [vmem:[%s10605_s29 + $0x284] ss:$16 sps:$4 sm:$0xff]   ;;  %v8763_v20 = vld [vmem:[%s10605_s29 + $0x280] ss:$16 sps:$4 sm:$0xff]  }
  0x79   : > { %6200 = vmatpush1.bf16.msra.mxu0 %v8750_v11  ;;  %v8764_v21 = vld [vmem:[%s10605_s29 + $0xa4] ss:$16 sps:$4 sm:$0xff]   ;;  %v8768_v23 = vld [vmem:[%s10605_s29 + $0xa0] ss:$16 sps:$4 sm:$0xff]  }
  0x7a   : > { %6241 = vmatpush1.bf16.msra.mxu1 %v8751_v12  ;;  %6201 = vmatprep.subr.bf16.mxu0 %v8752_v13  ;;  %v8766_v22 = vld [vmem:[%s10605_s29 + $0x2a4] ss:$16 sps:$4 sm:$0xff]   ;;  %v8769_v24 = vld [vmem:[%s10605_s29 + $0x2a0] ss:$16 sps:$4 sm:$0xff]  }
  0x7b   : > { %6242 = vmatprep.subr.bf16.mxu1 %v8754_v14  ;;  %v8770_v25 = vld [vmem:[%s10605_s29 + $0xc4] ss:$16 sps:$4 sm:$0xff]   ;;  %v8774_v27 = vld [vmem:[%s10605_s29 + $0xc0] ss:$16 sps:$4 sm:$0xff]  }
  0x7c   : > { %v8772_v26 = vld [vmem:[%s10605_s29 + $0x2c4] ss:$16 sps:$4 sm:$0xff]   ;;  %v8775_v28 = vld [vmem:[%s10605_s29 + $0x2c0] ss:$16 sps:$4 sm:$0xff]  }
  0x7d   : > { %6202 = vmatpush1.bf16.msra.mxu0 %v8756_v15  ;;  %v8776_v29 = vld [vmem:[%s10605_s29 + $0xe4] ss:$16 sps:$4 sm:$0xff]   ;;  %v8780_v31 = vld [vmem:[%s10605_s29 + $0xe0] ss:$16 sps:$4 sm:$0xff]  }
  0x7e   : > { %6243 = vmatpush1.bf16.msra.mxu1 %v8757_v16  ;;  %6203 = vmatprep.subr.bf16.mxu0 %v8758_v17  ;;  %v8778_v30 = vld [vmem:[%s10605_s29 + $0x2e4] ss:$16 sps:$4 sm:$0xff]   ;;  %v8781_v32 = vld [vmem:[%s10605_s29 + $0x2e0] ss:$16 sps:$4 sm:$0xff]  }
  0x7f   : > { %6244 = vmatprep.subr.bf16.mxu1 %v8760_v18  ;;  %v8782_v33 = vld [vmem:[%s10605_s29 + $0x104] ss:$16 sps:$4 sm:$0xff]   ;;  %v8786_v35 = vld [vmem:[%s10605_s29 + $0x100] ss:$16 sps:$4 sm:$0xff]  }
  0x80   : > { %v8784_v34 = vld [vmem:[%s10605_s29 + $0x304] ss:$16 sps:$4 sm:$0xff]   ;;  %v8787_v36 = vld [vmem:[%s10605_s29 + $0x300] ss:$16 sps:$4 sm:$0xff]  }
  0x81   : > { %6204 = vmatpush1.bf16.msra.mxu0 %v8762_v19  ;;  %v8788_v37 = vld [vmem:[%s10605_s29 + $0x124] ss:$16 sps:$4 sm:$0xff]   ;;  %v8792_v39 = vld [vmem:[%s10605_s29 + $0x120] ss:$16 sps:$4 sm:$0xff]  }
  0x82   : > { %6245 = vmatpush1.bf16.msra.mxu1 %v8763_v20  ;;  %6205 = vmatprep.subr.bf16.mxu0 %v8764_v21  ;;  %v8790_v38 = vld [vmem:[%s10605_s29 + $0x324] ss:$16 sps:$4 sm:$0xff]   ;;  %v8793_v40 = vld [vmem:[%s10605_s29 + $0x320] ss:$16 sps:$4 sm:$0xff]  }
  0x83   : > { %6246 = vmatprep.subr.bf16.mxu1 %v8766_v22  ;;  %v8794_v41 = vld [vmem:[%s10605_s29 + $0x144] ss:$16 sps:$4 sm:$0xff]   ;;  %v8798_v43 = vld [vmem:[%s10605_s29 + $0x140] ss:$16 sps:$4 sm:$0xff]  }
  0x84   : > { %v8796_v42 = vld [vmem:[%s10605_s29 + $0x344] ss:$16 sps:$4 sm:$0xff]   ;;  %v8799_v44 = vld [vmem:[%s10605_s29 + $0x340] ss:$16 sps:$4 sm:$0xff]  }
  0x85   : > { %6206 = vmatpush1.bf16.msra.mxu0 %v8768_v23  ;;  %v8800_v45 = vld [vmem:[%s10605_s29 + $0x164] ss:$16 sps:$4 sm:$0xff]   ;;  %v8804_v50 = vld [vmem:[%s10605_s29 + $0x160] ss:$16 sps:$4 sm:$0xff]  }
  0x86   : > { %6247 = vmatpush1.bf16.msra.mxu1 %v8769_v24  ;;  %6207 = vmatprep.subr.bf16.mxu0 %v8770_v25  ;;  %v8802_v46 = vld [vmem:[%s10605_s29 + $0x364] ss:$16 sps:$4 sm:$0xff]   ;;  %v8805_v51 = vld [vmem:[%s10605_s29 + $0x360] ss:$16 sps:$4 sm:$0xff]  }
  0x87   : > { %6248 = vmatprep.subr.bf16.mxu1 %v8772_v26  ;;  %v315_v47 = vld [vmem:[%s10629_s9] sm:$0xff] }
  0x88   : > { %v10683_v48 = vcombine.high %v315_v47, %v315_v47  ;;  %v8806_v53 = vld [vmem:[%s10605_s29 + $0x184] ss:$16 sps:$4 sm:$0xff]   ;;  %v8810_v55 = vld [vmem:[%s10605_s29 + $0x180] ss:$16 sps:$4 sm:$0xff]   ;;  %v10710_v7 = vcombine.low %v315_v47, %v315_v47 }
  0x89   : > { %6208 = vmatpush1.bf16.msra.mxu0 %v8774_v27  ;;  %v8808_v54 = vld [vmem:[%s10605_s29 + $0x384] ss:$16 sps:$4 sm:$0xff]   ;;  %v8811_v56 = vld [vmem:[%s10605_s29 + $0x380] ss:$16 sps:$4 sm:$0xff]  }
  0x8a   : > { %6249 = vmatpush1.bf16.msra.mxu1 %v8775_v28  ;;  %6209 = vmatprep.subr.bf16.mxu0 %v8776_v29  ;;  %v8812_v57 = vld [vmem:[%s10605_s29 + $0x1a4] ss:$16 sps:$4 sm:$0xff]   ;;  %v8816_v59 = vld [vmem:[%s10605_s29 + $0x1a0] ss:$16 sps:$4 sm:$0xff]  }
  0x8b   : > { %6250 = vmatprep.subr.bf16.mxu1 %v8778_v30  ;;  %6227 = vmatprep.mubr.bf16.mxu0 %v10683_v48  ;;  %v8814_v58 = vld [vmem:[%s10605_s29 + $0x3a4] ss:$16 sps:$4 sm:$0xff]   ;;  %v8817_v60 = vld [vmem:[%s10605_s29 + $0x3a0] ss:$16 sps:$4 sm:$0xff]  }
  0x8c   : > { %v8818_v61 = vld [vmem:[%s10605_s29 + $0x1c4] ss:$16 sps:$4 sm:$0xff]   ;;  %v8822_v63 = vld [vmem:[%s10605_s29 + $0x1c0] ss:$16 sps:$4 sm:$0xff]  }
  0x8d   : > { %6210 = vmatpush1.bf16.msra.mxu0 %v8780_v31  ;;  %v8820_v62 = vld [vmem:[%s10605_s29 + $0x3c4] ss:$16 sps:$4 sm:$0xff]   ;;  %v8823_v0 = vld [vmem:[%s10605_s29 + $0x3c0] ss:$16 sps:$4 sm:$0xff]  }
  0x8e   : > { %6251 = vmatpush1.bf16.msra.mxu1 %v8781_v32  ;;  %6211 = vmatprep.subr.bf16.mxu0 %v8782_v33  ;;  %v8824_v1 = vld [vmem:[%s10605_s29 + $0x1e4] ss:$16 sps:$4 sm:$0xff]   ;;  %v8828_v3 = vld [vmem:[%s10605_s29 + $0x1e0] ss:$16 sps:$4 sm:$0xff]  }
  0x8f   : > { %6252 = vmatprep.subr.bf16.mxu1 %v8784_v34  ;;  %v8826_v2 = vld [vmem:[%s10605_s29 + $0x3e4] ss:$16 sps:$4 sm:$0xff]   ;;  %v8829_v4 = vld [vmem:[%s10605_s29 + $0x3e0] ss:$16 sps:$4 sm:$0xff]   ;;  %v10744_v34 = vld [vmem:[%s10629_s9 + $0x18] sm:$0xff] }
  0x90   : > { %v8836_v5 = vld [vmem:[%s10605_s29 + $0x404] ss:$16 sps:$4 sm:$0xff]   ;;  %v8834_v9 = vld [vmem:[%s10605_s29 + $0x400] ss:$16 sps:$4 sm:$0xff]  }
  0x91   : > { %6212 = vmatpush1.bf16.msra.mxu0 %v8786_v35  ;;  %v8839_v6 = vld [vmem:[%s10605_s29 + $0x604] ss:$16 sps:$4 sm:$0xff]   ;;  %v8837_v10 = vld [vmem:[%s10605_s29 + $0x600] ss:$16 sps:$4 sm:$0xff]  }
  0x92   : > { %6253 = vmatpush1.bf16.msra.mxu1 %v8787_v36  ;;  %6213 = vmatprep.subr.bf16.mxu0 %v8788_v37  ;;  %v8842_v11 = vld [vmem:[%s10605_s29 + $0x424] ss:$16 sps:$4 sm:$0xff]   ;;  %v8840_v13 = vld [vmem:[%s10605_s29 + $0x420] ss:$16 sps:$4 sm:$0xff]  }
  0x93   : > { %6254 = vmatprep.subr.bf16.mxu1 %v8790_v38  ;;  %v8845_v12 = vld [vmem:[%s10605_s29 + $0x624] ss:$16 sps:$4 sm:$0xff]   ;;  %v8843_v14 = vld [vmem:[%s10605_s29 + $0x620] ss:$16 sps:$4 sm:$0xff]   ;;  %v10754_v38 = vcombine.high %v10744_v34, %v10744_v34 }
  0x94   : > { %v8848_v15 = vld [vmem:[%s10605_s29 + $0x444] ss:$16 sps:$4 sm:$0xff]   ;;  %v8846_v17 = vld [vmem:[%s10605_s29 + $0x440] ss:$16 sps:$4 sm:$0xff]  }
  0x95   : > { %6214 = vmatpush1.bf16.msra.mxu0 %v8792_v39  ;;  %v8851_v16 = vld [vmem:[%s10605_s29 + $0x644] ss:$16 sps:$4 sm:$0xff]   ;;  %v8849_v18 = vld [vmem:[%s10605_s29 + $0x640] ss:$16 sps:$4 sm:$0xff]  }
  0x96   : > { %6255 = vmatpush1.bf16.msra.mxu1 %v8793_v40  ;;  %6215 = vmatprep.subr.bf16.mxu0 %v8794_v41  ;;  %v8854_v19 = vld [vmem:[%s10605_s29 + $0x464] ss:$16 sps:$4 sm:$0xff]   ;;  %v8852_v21 = vld [vmem:[%s10605_s29 + $0x460] ss:$16 sps:$4 sm:$0xff]  }
  0x97   : > { %6256 = vmatprep.subr.bf16.mxu1 %v8796_v42  ;;  %v8857_v20 = vld [vmem:[%s10605_s29 + $0x664] ss:$16 sps:$4 sm:$0xff]   ;;  %v8855_v22 = vld [vmem:[%s10605_s29 + $0x660] ss:$16 sps:$4 sm:$0xff]  }
  0x98   : > { %v8860_v23 = vld [vmem:[%s10605_s29 + $0x484] ss:$16 sps:$4 sm:$0xff]   ;;  %v8858_v25 = vld [vmem:[%s10605_s29 + $0x480] ss:$16 sps:$4 sm:$0xff]  }
  0x99   : > { %6216 = vmatpush1.bf16.msra.mxu0 %v8798_v43  ;;  %v8863_v24 = vld [vmem:[%s10605_s29 + $0x684] ss:$16 sps:$4 sm:$0xff]   ;;  %v8861_v26 = vld [vmem:[%s10605_s29 + $0x680] ss:$16 sps:$4 sm:$0xff]  }
  0x9a   : > { %6257 = vmatpush1.bf16.msra.mxu1 %v8799_v44  ;;  %6217 = vmatprep.subr.bf16.mxu0 %v8800_v45  ;;  %v8866_v27 = vld [vmem:[%s10605_s29 + $0x4a4] ss:$16 sps:$4 sm:$0xff]   ;;  %v8864_v29 = vld [vmem:[%s10605_s29 + $0x4a0] ss:$16 sps:$4 sm:$0xff]  }
  0x9b   : > { %6258 = vmatprep.subr.bf16.mxu1 %v8802_v46  ;;  %v8869_v28 = vld [vmem:[%s10605_s29 + $0x6a4] ss:$16 sps:$4 sm:$0xff]   ;;  %v8867_v30 = vld [vmem:[%s10605_s29 + $0x6a0] ss:$16 sps:$4 sm:$0xff]  }
  0x9c   : > { %v8872_v31 = vld [vmem:[%s10605_s29 + $0x4c4] ss:$16 sps:$4 sm:$0xff]   ;;  %v8870_v35 = vld [vmem:[%s10605_s29 + $0x4c0] ss:$16 sps:$4 sm:$0xff]  }
  0x9d   : > { %6218 = vmatpush1.bf16.msra.mxu0 %v8804_v50  ;;  %v8875_v32 = vld [vmem:[%s10605_s29 + $0x6c4] ss:$16 sps:$4 sm:$0xff]   ;;  %v8873_v36 = vld [vmem:[%s10605_s29 + $0x6c0] ss:$16 sps:$4 sm:$0xff]  }
  0x9e   : > { %6259 = vmatpush1.bf16.msra.mxu1 %v8805_v51  ;;  %6219 = vmatprep.subr.bf16.mxu0 %v8806_v53  ;;  %v10741_v33 = vld [vmem:[%s10629_s9 + $0x10] sm:$0xff] }
  0x9f   : > { %6260 = vmatprep.subr.bf16.mxu1 %v8808_v54  ;;  %v10750_v37 = vcombine.high %v10741_v33, %v10741_v33  ;;  %v8878_v39 = vld [vmem:[%s10605_s29 + $0x4e4] ss:$16 sps:$4 sm:$0xff]   ;;  %v8876_v41 = vld [vmem:[%s10605_s29 + $0x4e0] ss:$16 sps:$4 sm:$0xff]  }
  0xa0   : > { %v8881_v40 = vld [vmem:[%s10605_s29 + $0x6e4] ss:$16 sps:$4 sm:$0xff]   ;;  %v8879_v42 = vld [vmem:[%s10605_s29 + $0x6e0] ss:$16 sps:$4 sm:$0xff]  }
  0xa1   : > { %6220 = vmatpush1.bf16.msra.mxu0 %v8810_v55  ;;  %v8884_v43 = vld [vmem:[%s10605_s29 + $0x504] ss:$16 sps:$4 sm:$0xff]   ;;  %v8882_v45 = vld [vmem:[%s10605_s29 + $0x500] ss:$16 sps:$4 sm:$0xff]  }
  0xa2   : > { %6261 = vmatpush1.bf16.msra.mxu1 %v8811_v56  ;;  %6221 = vmatprep.subr.bf16.mxu0 %v8812_v57  ;;  %v8887_v44 = vld [vmem:[%s10605_s29 + $0x704] ss:$16 sps:$4 sm:$0xff]   ;;  %v8885_v46 = vld [vmem:[%s10605_s29 + $0x700] ss:$16 sps:$4 sm:$0xff]  }
  0xa3   : > { %6262 = vmatprep.subr.bf16.mxu1 %v8814_v58  ;;  %v8890_v47 = vld [vmem:[%s10605_s29 + $0x524] ss:$16 sps:$4 sm:$0xff]   ;;  %v8888_v50 = vld [vmem:[%s10605_s29 + $0x520] ss:$16 sps:$4 sm:$0xff]  }
  0xa4   : > { %v8893_v49 = vld [vmem:[%s10605_s29 + $0x724] ss:$16 sps:$4 sm:$0xff]   ;;  %v8891_v51 = vld [vmem:[%s10605_s29 + $0x720] ss:$16 sps:$4 sm:$0xff]  }
  0xa5   : > { %6222 = vmatpush1.bf16.msra.mxu0 %v8816_v59  ;;  %v8896_v53 = vld [vmem:[%s10605_s29 + $0x544] ss:$16 sps:$4 sm:$0xff]   ;;  %v8894_v55 = vld [vmem:[%s10605_s29 + $0x540] ss:$16 sps:$4 sm:$0xff]  }
  0xa6   : > { %6263 = vmatpush1.bf16.msra.mxu1 %v8817_v60  ;;  %6223 = vmatprep.subr.bf16.mxu0 %v8818_v61  ;;  %v8899_v54 = vld [vmem:[%s10605_s29 + $0x744] ss:$16 sps:$4 sm:$0xff]   ;;  %v8897_v56 = vld [vmem:[%s10605_s29 + $0x740] ss:$16 sps:$4 sm:$0xff]  }
  0xa7   : > { %6264 = vmatprep.subr.bf16.mxu1 %v8820_v62  ;;  %v8902_v57 = vld [vmem:[%s10605_s29 + $0x564] ss:$16 sps:$4 sm:$0xff]   ;;  %v8900_v59 = vld [vmem:[%s10605_s29 + $0x560] ss:$16 sps:$4 sm:$0xff]  }
  0xa8   : > { %v8905_v58 = vld [vmem:[%s10605_s29 + $0x764] ss:$16 sps:$4 sm:$0xff]   ;;  %v8903_v60 = vld [vmem:[%s10605_s29 + $0x760] ss:$16 sps:$4 sm:$0xff]  }
  0xa9   : > { %6224 = vmatpush1.bf16.msra.mxu0 %v8822_v63  ;;  %v8908_v61 = vld [vmem:[%s10605_s29 + $0x584] ss:$16 sps:$4 sm:$0xff]   ;;  %v8906_v63 = vld [vmem:[%s10605_s29 + $0x580] ss:$16 sps:$4 sm:$0xff]  }
  0xaa   : > { %6265 = vmatpush1.bf16.msra.mxu1 %v8823_v0  ;;  %6225 = vmatprep.subr.bf16.mxu0 %v8824_v1  ;;  %v8911_v62 = vld [vmem:[%s10605_s29 + $0x784] ss:$16 sps:$4 sm:$0xff]   ;;  %v8909_v0 = vld [vmem:[%s10605_s29 + $0x780] ss:$16 sps:$4 sm:$0xff]  }
  0xab   : > { %6266 = vmatprep.subr.bf16.mxu1 %v8826_v2  ;;  %v8914_v1 = vld [vmem:[%s10605_s29 + $0x5a4] ss:$16 sps:$4 sm:$0xff]  }
  0xac   : > { %v8917_v2 = vld [vmem:[%s10605_s29 + $0x7a4] ss:$16 sps:$4 sm:$0xff]  }
  0xad   : > { %6226 = vmatpush1.bf16.msra.mxu0 %v8828_v3  ;;  %v8912_v3 = vld [vmem:[%s10605_s29 + $0x5a0] ss:$16 sps:$4 sm:$0xff]  }
  0xae   : > { %6267 = vmatpush1.bf16.msra.mxu1 %v8829_v4  ;;  %6277 = vmatprep.subr.bf16.mxu0 %v8836_v5  ;;  %v8915_v4 = vld [vmem:[%s10605_s29 + $0x7a0] ss:$16 sps:$4 sm:$0xff]   ;;  %v8920_v5 = vld [vmem:[%s10605_s29 + $0x5c4] ss:$16 sps:$4 sm:$0xff]  }
  0xaf   : > { %6318 = vmatprep.subr.bf16.mxu1 %v8839_v6  ;;  %v8923_v6 = vld [vmem:[%s10605_s29 + $0x7c4] ss:$16 sps:$4 sm:$0xff]  }
  0xb0   : > { %6228 = vmatmul.mubr.bf16.vlgmr.msra.gmra.mrb[0].mxu0 %v10710_v7 }
  0xb1   : > { %6269 = vmatmul.mubr.bf16.vlgmr.msra.gmra.mrb[0].mxu1 %v10712_v8  ;;  %6278 = vmatpush1.bf16.msra.mxu0 %v8834_v9  ;;  %v8918_v9 = vld [vmem:[%s10605_s29 + $0x5c0] ss:$16 sps:$4 sm:$0xff]  }
  0xb2   : > { %6319 = vmatpush1.bf16.msra.mxu1 %v8837_v10  ;;  %6279 = vmatprep.subr.bf16.mxu0 %v8842_v11  ;;  %v8921_v10 = vld [vmem:[%s10605_s29 + $0x7c0] ss:$16 sps:$4 sm:$0xff]   ;;  %v8926_v11 = vld [vmem:[%s10605_s29 + $0x5e4] ss:$16 sps:$4 sm:$0xff]  }
  0xb3   : > { %6320 = vmatprep.subr.bf16.mxu1 %v8845_v12  ;;  %6309 = vmatprep.mubr.bf16.mxu0 %v10750_v37  ;;  %v8929_v12 = vld [vmem:[%s10605_s29 + $0x7e4] ss:$16 sps:$4 sm:$0xff]  }
  0xb4   : > { %6350 = vmatprep.mubr.bf16.mxu1 %v10754_v38 }
  0xb5   : > { %6280 = vmatpush1.bf16.msra.mxu0 %v8840_v13  ;;  %v8924_v13 = vld [vmem:[%s10605_s29 + $0x5e0] ss:$16 sps:$4 sm:$0xff]  }
  0xb6   : > { %6321 = vmatpush1.bf16.msra.mxu1 %v8843_v14  ;;  %6281 = vmatprep.subr.bf16.mxu0 %v8848_v15  ;;  %v8927_v14 = vld [vmem:[%s10605_s29 + $0x7e0] ss:$16 sps:$4 sm:$0xff]   ;;  %v8936_v15 = vld [vmem:[%s10605_s29 + $0x804] ss:$16 sps:$4 sm:$0xff]  }
  0xb7   : > { %6322 = vmatprep.subr.bf16.mxu1 %v8851_v16  ;;  %v8939_v16 = vld [vmem:[%s10605_s29 + $0xa04] ss:$16 sps:$4 sm:$0xff]  }
  0xb9   : > { %6282 = vmatpush1.bf16.msra.mxu0 %v8846_v17  ;;  %v10798_v17 = vcombine.low %v10741_v33, %v10741_v33  ;;  %v8954_v33 = vld [vmem:[%s10605_s29 + $0x864] ss:$16 sps:$4 sm:$0xff]  }
  0xba   : > { %6323 = vmatpush1.bf16.msra.mxu1 %v8849_v18  ;;  %6283 = vmatprep.subr.bf16.mxu0 %v8854_v19  ;;  %v10802_v18 = vcombine.low %v10744_v34, %v10744_v34  ;;  %v8934_v19 = vld [vmem:[%s10605_s29 + $0x800] ss:$16 sps:$4 sm:$0xff]   ;;  %v8957_v34 = vld [vmem:[%s10605_s29 + $0xa64] ss:$16 sps:$4 sm:$0xff]  }
  0xbb   : > { %6324 = vmatprep.subr.bf16.mxu1 %v8857_v20  ;;  %v8937_v20 = vld [vmem:[%s10605_s29 + $0xa00] ss:$16 sps:$4 sm:$0xff]  }
  0xbd   : > { %6284 = vmatpush1.bf16.msra.mxu0 %v8852_v21  ;;  %v8942_v21 = vld [vmem:[%s10605_s29 + $0x824] ss:$16 sps:$4 sm:$0xff]  }
  0xbe   : > { %6325 = vmatpush1.bf16.msra.mxu1 %v8855_v22  ;;  %6285 = vmatprep.subr.bf16.mxu0 %v8860_v23  ;;  %v8945_v22 = vld [vmem:[%s10605_s29 + $0xa24] ss:$16 sps:$4 sm:$0xff]  }
  0xbf   : > { %6326 = vmatprep.subr.bf16.mxu1 %v8863_v24  ;;  %v10809_v23 = vld [vmem:[%s10629_s9 + $0x20] sm:$0xff]  ;;  %v10812_v24 = vld [vmem:[%s10629_s9 + $0x28] sm:$0xff] }
  0xc1   : > { %6286 = vmatpush1.bf16.msra.mxu0 %v8858_v25  ;;  %v10816_v25 = vcombine.high %v10809_v23, %v10809_v23 }
  0xc2   : > { %6327 = vmatpush1.bf16.msra.mxu1 %v8861_v26  ;;  %6287 = vmatprep.subr.bf16.mxu0 %v8866_v27  ;;  %v10820_v26 = vcombine.high %v10812_v24, %v10812_v24  ;;  %v8940_v27 = vld [vmem:[%s10605_s29 + $0x820] ss:$16 sps:$4 sm:$0xff]  }
  0xc3   : > { %6328 = vmatprep.subr.bf16.mxu1 %v8869_v28  ;;  %v8943_v28 = vld [vmem:[%s10605_s29 + $0xa20] ss:$16 sps:$4 sm:$0xff]  }
  0xc5   : > { %6288 = vmatpush1.bf16.msra.mxu0 %v8864_v29  ;;  %v8948_v29 = vld [vmem:[%s10605_s29 + $0x844] ss:$16 sps:$4 sm:$0xff]  }
  0xc6   : > { %6329 = vmatpush1.bf16.msra.mxu1 %v8867_v30  ;;  %6289 = vmatprep.subr.bf16.mxu0 %v8872_v31  ;;  %v8951_v30 = vld [vmem:[%s10605_s29 + $0xa44] ss:$16 sps:$4 sm:$0xff]   ;;  %v8946_v31 = vld [vmem:[%s10605_s29 + $0x840] ss:$16 sps:$4 sm:$0xff]  }
  0xc7   : > { %6330 = vmatprep.subr.bf16.mxu1 %v8875_v32  ;;  %v8949_v32 = vld [vmem:[%s10605_s29 + $0xa40] ss:$16 sps:$4 sm:$0xff]  }
  0xc9   : > { %6290 = vmatpush1.bf16.msra.mxu0 %v8870_v35  ;;  %v8952_v35 = vld [vmem:[%s10605_s29 + $0x860] ss:$16 sps:$4 sm:$0xff]  }
  0xca   : > { %6331 = vmatpush1.bf16.msra.mxu1 %v8873_v36  ;;  %6291 = vmatprep.subr.bf16.mxu0 %v8878_v39  ;;  %v8955_v36 = vld [vmem:[%s10605_s29 + $0xa60] ss:$16 sps:$4 sm:$0xff]   ;;  %v8960_v39 = vld [vmem:[%s10605_s29 + $0x884] ss:$16 sps:$4 sm:$0xff]  }
  0xcb   : > { %6332 = vmatprep.subr.bf16.mxu1 %v8881_v40  ;;  %v8963_v40 = vld [vmem:[%s10605_s29 + $0xa84] ss:$16 sps:$4 sm:$0xff]  }
  0xcd   : > { %6292 = vmatpush1.bf16.msra.mxu0 %v8876_v41  ;;  %v8958_v41 = vld [vmem:[%s10605_s29 + $0x880] ss:$16 sps:$4 sm:$0xff]  }
  0xce   : > { %6333 = vmatpush1.bf16.msra.mxu1 %v8879_v42  ;;  %6293 = vmatprep.subr.bf16.mxu0 %v8884_v43  ;;  %v8961_v42 = vld [vmem:[%s10605_s29 + $0xa80] ss:$16 sps:$4 sm:$0xff]   ;;  %v8966_v43 = vld [vmem:[%s10605_s29 + $0x8a4] ss:$16 sps:$4 sm:$0xff]  }
  0xcf   : > { %6334 = vmatprep.subr.bf16.mxu1 %v8887_v44  ;;  %v8969_v44 = vld [vmem:[%s10605_s29 + $0xaa4] ss:$16 sps:$4 sm:$0xff]  }
  0xd1   : > { %6294 = vmatpush1.bf16.msra.mxu0 %v8882_v45  ;;  %v8964_v45 = vld [vmem:[%s10605_s29 + $0x8a0] ss:$16 sps:$4 sm:$0xff]  }
  0xd2   : > { %6335 = vmatpush1.bf16.msra.mxu1 %v8885_v46  ;;  %6295 = vmatprep.subr.bf16.mxu0 %v8890_v47  ;;  %v8967_v46 = vld [vmem:[%s10605_s29 + $0xaa0] ss:$16 sps:$4 sm:$0xff]   ;;  %v8972_v47 = vld [vmem:[%s10605_s29 + $0x8c4] ss:$16 sps:$4 sm:$0xff]  }
  0xd3   : > { %6336 = vmatprep.subr.bf16.mxu1 %v8893_v49  ;;  %v8975_v49 = vld [vmem:[%s10605_s29 + $0xac4] ss:$16 sps:$4 sm:$0xff]  }
  0xd5   : > { %6296 = vmatpush1.bf16.msra.mxu0 %v8888_v50  ;;  %v8970_v50 = vld [vmem:[%s10605_s29 + $0x8c0] ss:$16 sps:$4 sm:$0xff]  }
  0xd6   : > { %6337 = vmatpush1.bf16.msra.mxu1 %v8891_v51  ;;  %6297 = vmatprep.subr.bf16.mxu0 %v8896_v53  ;;  %v8973_v51 = vld [vmem:[%s10605_s29 + $0xac0] ss:$16 sps:$4 sm:$0xff]   ;;  %v8978_v53 = vld [vmem:[%s10605_s29 + $0x8e4] ss:$16 sps:$4 sm:$0xff]  }
  0xd7   : > { %6338 = vmatprep.subr.bf16.mxu1 %v8899_v54  ;;  %v8981_v54 = vld [vmem:[%s10605_s29 + $0xae4] ss:$16 sps:$4 sm:$0xff]  }
  0xd9   : > { %6298 = vmatpush1.bf16.msra.mxu0 %v8894_v55  ;;  %v8976_v55 = vld [vmem:[%s10605_s29 + $0x8e0] ss:$16 sps:$4 sm:$0xff]  }
  0xda   : > { %6339 = vmatpush1.bf16.msra.mxu1 %v8897_v56  ;;  %6299 = vmatprep.subr.bf16.mxu0 %v8902_v57  ;;  %v8979_v56 = vld [vmem:[%s10605_s29 + $0xae0] ss:$16 sps:$4 sm:$0xff]   ;;  %v8984_v57 = vld [vmem:[%s10605_s29 + $0x904] ss:$16 sps:$4 sm:$0xff]  }
  0xdb   : > { %6340 = vmatprep.subr.bf16.mxu1 %v8905_v58  ;;  %v8987_v58 = vld [vmem:[%s10605_s29 + $0xb04] ss:$16 sps:$4 sm:$0xff]  }
  0xdd   : > { %6300 = vmatpush1.bf16.msra.mxu0 %v8900_v59  ;;  %v8982_v59 = vld [vmem:[%s10605_s29 + $0x900] ss:$16 sps:$4 sm:$0xff]  }
  0xde   : > { %6341 = vmatpush1.bf16.msra.mxu1 %v8903_v60  ;;  %6301 = vmatprep.subr.bf16.mxu0 %v8908_v61  ;;  %v8985_v60 = vld [vmem:[%s10605_s29 + $0xb00] ss:$16 sps:$4 sm:$0xff]   ;;  %v8990_v61 = vld [vmem:[%s10605_s29 + $0x924] ss:$16 sps:$4 sm:$0xff]  }
  0xdf   : > { %6342 = vmatprep.subr.bf16.mxu1 %v8911_v62  ;;  %v8993_v62 = vld [vmem:[%s10605_s29 + $0xb24] ss:$16 sps:$4 sm:$0xff]  }
  0xe1   : > { %6302 = vmatpush1.bf16.msra.mxu0 %v8906_v63  ;;  %v8988_v63 = vld [vmem:[%s10605_s29 + $0x920] ss:$16 sps:$4 sm:$0xff]  }
  0xe2   : > { %6343 = vmatpush1.bf16.msra.mxu1 %v8909_v0  ;;  %6303 = vmatprep.subr.bf16.mxu0 %v8914_v1  ;;  %v8991_v0 = vld [vmem:[%s10605_s29 + $0xb20] ss:$16 sps:$4 sm:$0xff]   ;;  %v8996_v1 = vld [vmem:[%s10605_s29 + $0x944] ss:$16 sps:$4 sm:$0xff]  }
  0xe3   : > { %6344 = vmatprep.subr.bf16.mxu1 %v8917_v2  ;;  %v8999_v2 = vld [vmem:[%s10605_s29 + $0xb44] ss:$16 sps:$4 sm:$0xff]  }
  0xe5   : > { %6304 = vmatpush1.bf16.msra.mxu0 %v8912_v3  ;;  %v8994_v3 = vld [vmem:[%s10605_s29 + $0x940] ss:$16 sps:$4 sm:$0xff]  }
  0xe6   : > { %6345 = vmatpush1.bf16.msra.mxu1 %v8915_v4  ;;  %6305 = vmatprep.subr.bf16.mxu0 %v8920_v5  ;;  %v8997_v4 = vld [vmem:[%s10605_s29 + $0xb40] ss:$16 sps:$4 sm:$0xff]   ;;  %v9002_v5 = vld [vmem:[%s10605_s29 + $0x964] ss:$16 sps:$4 sm:$0xff]  }
  0xe7   : > { %6346 = vmatprep.subr.bf16.mxu1 %v8923_v6  ;;  %v9005_v6 = vld [vmem:[%s10605_s29 + $0xb64] ss:$16 sps:$4 sm:$0xff]  }
  0xe9   : > { %6306 = vmatpush1.bf16.msra.mxu0 %v8918_v9  ;;  %v9000_v9 = vld [vmem:[%s10605_s29 + $0x960] ss:$16 sps:$4 sm:$0xff]  }
  0xea   : > { %6347 = vmatpush1.bf16.msra.mxu1 %v8921_v10  ;;  %6307 = vmatprep.subr.bf16.mxu0 %v8926_v11  ;;  %v9003_v10 = vld [vmem:[%s10605_s29 + $0xb60] ss:$16 sps:$4 sm:$0xff]   ;;  %v9008_v11 = vld [vmem:[%s10605_s29 + $0x984] ss:$16 sps:$4 sm:$0xff]  }
  0xeb   : > { %6348 = vmatprep.subr.bf16.mxu1 %v8929_v12  ;;  %v9011_v12 = vld [vmem:[%s10605_s29 + $0xb84] ss:$16 sps:$4 sm:$0xff]  }
  0xed   : > { %6308 = vmatpush1.bf16.msra.mxu0 %v8924_v13  ;;  %v9006_v13 = vld [vmem:[%s10605_s29 + $0x980] ss:$16 sps:$4 sm:$0xff]  }
  0xee   : > { %6349 = vmatpush1.bf16.msra.mxu1 %v8927_v14  ;;  %6359 = vmatprep.subr.bf16.mxu0 %v8936_v15  ;;  %v9009_v14 = vld [vmem:[%s10605_s29 + $0xb80] ss:$16 sps:$4 sm:$0xff]   ;;  %v9014_v15 = vld [vmem:[%s10605_s29 + $0x9a4] ss:$16 sps:$4 sm:$0xff]  }
  0xef   : > { %6400 = vmatprep.subr.bf16.mxu1 %v8939_v16  ;;  %v9017_v16 = vld [vmem:[%s10605_s29 + $0xba4] ss:$16 sps:$4 sm:$0xff]  }
  0xf0   : > { %6310 = vmatmul.mubr.bf16.vlgmr.msra.gmra.mrb[4].mxu0 %v10798_v17 }
  0xf1   : > { %6351 = vmatmul.mubr.bf16.vlgmr.msra.gmra.mrb[4].mxu1 %v10802_v18  ;;  %6360 = vmatpush1.bf16.msra.mxu0 %v8934_v19  ;;  %v9012_v19 = vld [vmem:[%s10605_s29 + $0x9a0] ss:$16 sps:$4 sm:$0xff]  }
  0xf2   : > { %6401 = vmatpush1.bf16.msra.mxu1 %v8937_v20  ;;  %6361 = vmatprep.subr.bf16.mxu0 %v8942_v21  ;;  %v9015_v20 = vld [vmem:[%s10605_s29 + $0xba0] ss:$16 sps:$4 sm:$0xff]   ;;  %v9020_v21 = vld [vmem:[%s10605_s29 + $0x9c4] ss:$16 sps:$4 sm:$0xff]  }
  0xf3   : > { %6402 = vmatprep.subr.bf16.mxu1 %v8945_v22  ;;  %6391 = vmatprep.mubr.bf16.mxu0 %v10816_v25  ;;  %v9023_v22 = vld [vmem:[%s10605_s29 + $0xbc4] ss:$16 sps:$4 sm:$0xff]  }
  0xf4   : > { %6432 = vmatprep.mubr.bf16.mxu1 %v10820_v26 }
  0xf5   : > { %6362 = vmatpush1.bf16.msra.mxu0 %v8940_v27  ;;  %v9018_v27 = vld [vmem:[%s10605_s29 + $0x9c0] ss:$16 sps:$4 sm:$0xff]  }
  0xf6   : > { %6403 = vmatpush1.bf16.msra.mxu1 %v8943_v28  ;;  %6363 = vmatprep.subr.bf16.mxu0 %v8948_v29  ;;  %v9021_v28 = vld [vmem:[%s10605_s29 + $0xbc0] ss:$16 sps:$4 sm:$0xff]   ;;  %v9026_v29 = vld [vmem:[%s10605_s29 + $0x9e4] ss:$16 sps:$4 sm:$0xff]  }
  0xf7   : > { %6404 = vmatprep.subr.bf16.mxu1 %v8951_v30  ;;  %v9029_v30 = vld [vmem:[%s10605_s29 + $0xbe4] ss:$16 sps:$4 sm:$0xff]  }
  0xf9   : > { %6364 = vmatpush1.bf16.msra.mxu0 %v8946_v31  ;;  %v9024_v31 = vld [vmem:[%s10605_s29 + $0x9e0] ss:$16 sps:$4 sm:$0xff]  }
  0xfa   : > { %6405 = vmatpush1.bf16.msra.mxu1 %v8949_v32  ;;  %6365 = vmatprep.subr.bf16.mxu0 %v8954_v33  ;;  %v9027_v32 = vld [vmem:[%s10605_s29 + $0xbe0] ss:$16 sps:$4 sm:$0xff]   ;;  %v9036_v33 = vld [vmem:[%s10605_s29 + $0xc04] ss:$16 sps:$4 sm:$0xff]  }
  0xfb   : > { %6406 = vmatprep.subr.bf16.mxu1 %v8957_v34  ;;  %v9039_v34 = vld [vmem:[%s10605_s29 + $0xe04] ss:$16 sps:$4 sm:$0xff]  }
  0xfd   : > { %6366 = vmatpush1.bf16.msra.mxu0 %v8952_v35  ;;  %v9034_v35 = vld [vmem:[%s10605_s29 + $0xc00] ss:$16 sps:$4 sm:$0xff]  }
  0xfe   : > { %6407 = vmatpush1.bf16.msra.mxu1 %v8955_v36  ;;  %6367 = vmatprep.subr.bf16.mxu0 %v8960_v39  ;;  %v9037_v36 = vld [vmem:[%s10605_s29 + $0xe00] ss:$16 sps:$4 sm:$0xff]   ;;  %v10890_v39 = vcombine.low %v10809_v23, %v10809_v23 }
  0xff   : > { %6408 = vmatprep.subr.bf16.mxu1 %v8963_v40  ;;  %v10894_v40 = vcombine.low %v10812_v24, %v10812_v24 }
 0x101   : > { %6368 = vmatpush1.bf16.msra.mxu0 %v8958_v41  ;;  %v10897_v41 = vld [vmem:[%s10629_s9 + $0x30] sm:$0xff] }
 0x102   : > { %6409 = vmatpush1.bf16.msra.mxu1 %v8961_v42  ;;  %6369 = vmatprep.subr.bf16.mxu0 %v8966_v43  ;;  %v10900_v42 = vld [vmem:[%s10629_s9 + $0x38] sm:$0xff]  ;;  %v9042_v43 = vld [vmem:[%s10605_s29 + $0xc24] ss:$16 sps:$4 sm:$0xff]   ;;  %v10906_v23 = vcombine.high %v10897_v41, %v10897_v41 }
 0x103   : > { %6410 = vmatprep.subr.bf16.mxu1 %v8969_v44  ;;  %v9045_v44 = vld [vmem:[%s10605_s29 + $0xe24] ss:$16 sps:$4 sm:$0xff]   ;;  %v10910_v24 = vcombine.high %v10900_v42, %v10900_v42 }
 0x105   : > { %6370 = vmatpush1.bf16.msra.mxu0 %v8964_v45  ;;  %v9040_v45 = vld [vmem:[%s10605_s29 + $0xc20] ss:$16 sps:$4 sm:$0xff]  }
 0x106   : > { %6411 = vmatpush1.bf16.msra.mxu1 %v8967_v46  ;;  %6371 = vmatprep.subr.bf16.mxu0 %v8972_v47  ;;  %v9043_v46 = vld [vmem:[%s10605_s29 + $0xe20] ss:$16 sps:$4 sm:$0xff]   ;;  %v9048_v47 = vld [vmem:[%s10605_s29 + $0xc44] ss:$16 sps:$4 sm:$0xff]  }
 0x107   : > { %6412 = vmatprep.subr.bf16.mxu1 %v8975_v49  ;;  %v9051_v49 = vld [vmem:[%s10605_s29 + $0xe44] ss:$16 sps:$4 sm:$0xff]  }
 0x109   : > { %6372 = vmatpush1.bf16.msra.mxu0 %v8970_v50  ;;  %v9046_v50 = vld [vmem:[%s10605_s29 + $0xc40] ss:$16 sps:$4 sm:$0xff]  }
 0x10a   : > { %6413 = vmatpush1.bf16.msra.mxu1 %v8973_v51  ;;  %6373 = vmatprep.subr.bf16.mxu0 %v8978_v53  ;;  %v9049_v51 = vld [vmem:[%s10605_s29 + $0xe40] ss:$16 sps:$4 sm:$0xff]   ;;  %v9054_v53 = vld [vmem:[%s10605_s29 + $0xc64] ss:$16 sps:$4 sm:$0xff]  }
 0x10b   : > { %6414 = vmatprep.subr.bf16.mxu1 %v8981_v54  ;;  %v9057_v54 = vld [vmem:[%s10605_s29 + $0xe64] ss:$16 sps:$4 sm:$0xff]  }
 0x10d   : > { %6374 = vmatpush1.bf16.msra.mxu0 %v8976_v55  ;;  %v9052_v55 = vld [vmem:[%s10605_s29 + $0xc60] ss:$16 sps:$4 sm:$0xff]  }
 0x10e   : > { %6415 = vmatpush1.bf16.msra.mxu1 %v8979_v56  ;;  %6375 = vmatprep.subr.bf16.mxu0 %v8984_v57  ;;  %v9055_v56 = vld [vmem:[%s10605_s29 + $0xe60] ss:$16 sps:$4 sm:$0xff]   ;;  %v9060_v57 = vld [vmem:[%s10605_s29 + $0xc84] ss:$16 sps:$4 sm:$0xff]  }
 0x10f   : > { %6416 = vmatprep.subr.bf16.mxu1 %v8987_v58  ;;  %v9063_v58 = vld [vmem:[%s10605_s29 + $0xe84] ss:$16 sps:$4 sm:$0xff]  }
 0x111   : > { %6376 = vmatpush1.bf16.msra.mxu0 %v8982_v59  ;;  %v9058_v59 = vld [vmem:[%s10605_s29 + $0xc80] ss:$16 sps:$4 sm:$0xff]  }
 0x112   : > { %6417 = vmatpush1.bf16.msra.mxu1 %v8985_v60  ;;  %6377 = vmatprep.subr.bf16.mxu0 %v8990_v61  ;;  %v9061_v60 = vld [vmem:[%s10605_s29 + $0xe80] ss:$16 sps:$4 sm:$0xff]   ;;  %v9066_v61 = vld [vmem:[%s10605_s29 + $0xca4] ss:$16 sps:$4 sm:$0xff]  }
 0x113   : > { %6418 = vmatprep.subr.bf16.mxu1 %v8993_v62  ;;  %v9069_v62 = vld [vmem:[%s10605_s29 + $0xea4] ss:$16 sps:$4 sm:$0xff]  }
 0x115   : > { %6378 = vmatpush1.bf16.msra.mxu0 %v8988_v63  ;;  %v9064_v63 = vld [vmem:[%s10605_s29 + $0xca0] ss:$16 sps:$4 sm:$0xff]  }
 0x116   : > { %6419 = vmatpush1.bf16.msra.mxu1 %v8991_v0  ;;  %6379 = vmatprep.subr.bf16.mxu0 %v8996_v1  ;;  %v9067_v0 = vld [vmem:[%s10605_s29 + $0xea0] ss:$16 sps:$4 sm:$0xff]   ;;  %v9072_v1 = vld [vmem:[%s10605_s29 + $0xcc4] ss:$16 sps:$4 sm:$0xff]  }
 0x117   : > { %6420 = vmatprep.subr.bf16.mxu1 %v8999_v2  ;;  %v9075_v2 = vld [vmem:[%s10605_s29 + $0xec4] ss:$16 sps:$4 sm:$0xff]  }
 0x119   : > { %6380 = vmatpush1.bf16.msra.mxu0 %v8994_v3  ;;  %v9070_v3 = vld [vmem:[%s10605_s29 + $0xcc0] ss:$16 sps:$4 sm:$0xff]  }
 0x11a   : > { %6421 = vmatpush1.bf16.msra.mxu1 %v8997_v4  ;;  %6381 = vmatprep.subr.bf16.mxu0 %v9002_v5  ;;  %v9073_v4 = vld [vmem:[%s10605_s29 + $0xec0] ss:$16 sps:$4 sm:$0xff]   ;;  %v9078_v5 = vld [vmem:[%s10605_s29 + $0xce4] ss:$16 sps:$4 sm:$0xff]  }
 0x11b   : > { %6422 = vmatprep.subr.bf16.mxu1 %v9005_v6  ;;  %v9081_v6 = vld [vmem:[%s10605_s29 + $0xee4] ss:$16 sps:$4 sm:$0xff]  }
 0x11d   : > { %6382 = vmatpush1.bf16.msra.mxu0 %v9000_v9  ;;  %v9076_v9 = vld [vmem:[%s10605_s29 + $0xce0] ss:$16 sps:$4 sm:$0xff]  }
 0x11e   : > { %6423 = vmatpush1.bf16.msra.mxu1 %v9003_v10  ;;  %6383 = vmatprep.subr.bf16.mxu0 %v9008_v11  ;;  %v9079_v10 = vld [vmem:[%s10605_s29 + $0xee0] ss:$16 sps:$4 sm:$0xff]   ;;  %v9084_v11 = vld [vmem:[%s10605_s29 + $0xd04] ss:$16 sps:$4 sm:$0xff]  }
 0x11f   : > { %6424 = vmatprep.subr.bf16.mxu1 %v9011_v12  ;;  %v9087_v12 = vld [vmem:[%s10605_s29 + $0xf04] ss:$16 sps:$4 sm:$0xff]  }
 0x121   : > { %6384 = vmatpush1.bf16.msra.mxu0 %v9006_v13  ;;  %v9082_v13 = vld [vmem:[%s10605_s29 + $0xd00] ss:$16 sps:$4 sm:$0xff]  }
 0x122   : > { %6425 = vmatpush1.bf16.msra.mxu1 %v9009_v14  ;;  %6385 = vmatprep.subr.bf16.mxu0 %v9014_v15  ;;  %v9085_v14 = vld [vmem:[%s10605_s29 + $0xf00] ss:$16 sps:$4 sm:$0xff]   ;;  %v9090_v15 = vld [vmem:[%s10605_s29 + $0xd24] ss:$16 sps:$4 sm:$0xff]  }
 0x123   : > { %6426 = vmatprep.subr.bf16.mxu1 %v9017_v16  ;;  %v9093_v16 = vld [vmem:[%s10605_s29 + $0xf24] ss:$16 sps:$4 sm:$0xff]  }
 0x125   : > { %6386 = vmatpush1.bf16.msra.mxu0 %v9012_v19  ;;  %v9088_v19 = vld [vmem:[%s10605_s29 + $0xd20] ss:$16 sps:$4 sm:$0xff]  }
 0x126   : > { %6427 = vmatpush1.bf16.msra.mxu1 %v9015_v20  ;;  %6387 = vmatprep.subr.bf16.mxu0 %v9020_v21  ;;  %v9091_v20 = vld [vmem:[%s10605_s29 + $0xf20] ss:$16 sps:$4 sm:$0xff]   ;;  %v9096_v21 = vld [vmem:[%s10605_s29 + $0xd44] ss:$16 sps:$4 sm:$0xff]  }
 0x127   : > { %6428 = vmatprep.subr.bf16.mxu1 %v9023_v22  ;;  %v9099_v22 = vld [vmem:[%s10605_s29 + $0xf44] ss:$16 sps:$4 sm:$0xff]  }
 0x129   : > { %6388 = vmatpush1.bf16.msra.mxu0 %v9018_v27  ;;  %v9094_v27 = vld [vmem:[%s10605_s29 + $0xd40] ss:$16 sps:$4 sm:$0xff]  }
 0x12a   : > { %6429 = vmatpush1.bf16.msra.mxu1 %v9021_v28  ;;  %6389 = vmatprep.subr.bf16.mxu0 %v9026_v29  ;;  %v9097_v28 = vld [vmem:[%s10605_s29 + $0xf40] ss:$16 sps:$4 sm:$0xff]   ;;  %v9102_v29 = vld [vmem:[%s10605_s29 + $0xd64] ss:$16 sps:$4 sm:$0xff]  }
 0x12b   : > { %6430 = vmatprep.subr.bf16.mxu1 %v9029_v30  ;;  %v9105_v30 = vld [vmem:[%s10605_s29 + $0xf64] ss:$16 sps:$4 sm:$0xff]  }
 0x12d   : > { %6390 = vmatpush1.bf16.msra.mxu0 %v9024_v31  ;;  %v9100_v31 = vld [vmem:[%s10605_s29 + $0xd60] ss:$16 sps:$4 sm:$0xff]  }
 0x12e   : > { %6431 = vmatpush1.bf16.msra.mxu1 %v9027_v32  ;;  %6441 = vmatprep.subr.bf16.mxu0 %v9036_v33  ;;  %v9103_v32 = vld [vmem:[%s10605_s29 + $0xf60] ss:$16 sps:$4 sm:$0xff]   ;;  %v9108_v33 = vld [vmem:[%s10605_s29 + $0xd84] ss:$16 sps:$4 sm:$0xff]  }
 0x12f   : > { %6482 = vmatprep.subr.bf16.mxu1 %v9039_v34  ;;  %v9111_v34 = vld [vmem:[%s10605_s29 + $0xf84] ss:$16 sps:$4 sm:$0xff]  }
 0x130   : > { %6392 = vmatmul.mubr.bf16.vlgmr.msra.gmra.mrb[8].mxu0 %v10890_v39 }
 0x131   : > { %6433 = vmatmul.mubr.bf16.vlgmr.msra.gmra.mrb[8].mxu1 %v10894_v40  ;;  %6442 = vmatpush1.bf16.msra.mxu0 %v9034_v35  ;;  %v9106_v35 = vld [vmem:[%s10605_s29 + $0xd80] ss:$16 sps:$4 sm:$0xff]  }
 0x132   : > { %6483 = vmatpush1.bf16.msra.mxu1 %v9037_v36  ;;  %6443 = vmatprep.subr.bf16.mxu0 %v9042_v43  ;;  %v9109_v36 = vld [vmem:[%s10605_s29 + $0xf80] ss:$16 sps:$4 sm:$0xff]   ;;  %v9114_v43 = vld [vmem:[%s10605_s29 + $0xda4] ss:$16 sps:$4 sm:$0xff]  }
 0x133   : > { %6484 = vmatprep.subr.bf16.mxu1 %v9045_v44  ;;  %6473 = vmatprep.mubr.bf16.mxu0 %v10906_v23  ;;  %v9117_v44 = vld [vmem:[%s10605_s29 + $0xfa4] ss:$16 sps:$4 sm:$0xff]  }
 0x134   : > { %6514 = vmatprep.mubr.bf16.mxu1 %v10910_v24 }
 0x135   : > { %6444 = vmatpush1.bf16.msra.mxu0 %v9040_v45  ;;  %v9112_v45 = vld [vmem:[%s10605_s29 + $0xda0] ss:$16 sps:$4 sm:$0xff]  }
 0x136   : > { %6485 = vmatpush1.bf16.msra.mxu1 %v9043_v46  ;;  %6445 = vmatprep.subr.bf16.mxu0 %v9048_v47  ;;  %v9115_v46 = vld [vmem:[%s10605_s29 + $0xfa0] ss:$16 sps:$4 sm:$0xff]   ;;  %v9120_v47 = vld [vmem:[%s10605_s29 + $0xdc4] ss:$16 sps:$4 sm:$0xff]  }
 0x137   : > { %6486 = vmatprep.subr.bf16.mxu1 %v9051_v49  ;;  %v9123_v49 = vld [vmem:[%s10605_s29 + $0xfc4] ss:$16 sps:$4 sm:$0xff]  }
 0x139   : > { %6446 = vmatpush1.bf16.msra.mxu0 %v9046_v50  ;;  %v9118_v50 = vld [vmem:[%s10605_s29 + $0xdc0] ss:$16 sps:$4 sm:$0xff]  }
 0x13a   : > { %6487 = vmatpush1.bf16.msra.mxu1 %v9049_v51  ;;  %6447 = vmatprep.subr.bf16.mxu0 %v9054_v53  ;;  %v9121_v51 = vld [vmem:[%s10605_s29 + $0xfc0] ss:$16 sps:$4 sm:$0xff]   ;;  %v9126_v53 = vld [vmem:[%s10605_s29 + $0xde4] ss:$16 sps:$4 sm:$0xff]  }
 0x13b   : > { %6488 = vmatprep.subr.bf16.mxu1 %v9057_v54  ;;  %v9129_v54 = vld [vmem:[%s10605_s29 + $0xfe4] ss:$16 sps:$4 sm:$0xff]  }
 0x13d   : > { %6448 = vmatpush1.bf16.msra.mxu0 %v9052_v55  ;;  %v9124_v55 = vld [vmem:[%s10605_s29 + $0xde0] ss:$16 sps:$4 sm:$0xff]  }
 0x13e   : > { %6489 = vmatpush1.bf16.msra.mxu1 %v9055_v56  ;;  %6449 = vmatprep.subr.bf16.mxu0 %v9060_v57  ;;  %v9127_v56 = vld [vmem:[%s10605_s29 + $0xfe0] ss:$16 sps:$4 sm:$0xff]   ;;  %v9136_v57 = vld [vmem:[%s10605_s29 + $0x1004] ss:$16 sps:$4 sm:$0xff]  }
 0x13f   : > { %6490 = vmatprep.subr.bf16.mxu1 %v9063_v58  ;;  %v9139_v58 = vld [vmem:[%s10605_s29 + $0x1204] ss:$16 sps:$4 sm:$0xff]  }
 0x141   : > { %6450 = vmatpush1.bf16.msra.mxu0 %v9058_v59  ;;  %v10977_v59 = vld [vmem:[%s10629_s9 + $0x40] sm:$0xff] }
 0x142   : > { %6491 = vmatpush1.bf16.msra.mxu1 %v9061_v60  ;;  %6451 = vmatprep.subr.bf16.mxu0 %v9066_v61  ;;  %v10981_v60 = vcombine.low %v10897_v41, %v10897_v41  ;;  %v10985_v61 = vcombine.low %v10900_v42, %v10900_v42  ;;  %v10996_v41 = vcombine.high %v10977_v59, %v10977_v59 }
 0x143   : > { %6492 = vmatprep.subr.bf16.mxu1 %v9069_v62  ;;  %v10988_v62 = vld [vmem:[%s10629_s9 + $0x48] sm:$0xff] }
 0x144   : > { %v11000_v42 = vcombine.high %v10988_v62, %v10988_v62 }
 0x145   : > { %6452 = vmatpush1.bf16.msra.mxu0 %v9064_v63  ;;  %v9134_v63 = vld [vmem:[%s10605_s29 + $0x1000] ss:$16 sps:$4 sm:$0xff]  }
 0x146   : > { %6493 = vmatpush1.bf16.msra.mxu1 %v9067_v0  ;;  %6453 = vmatprep.subr.bf16.mxu0 %v9072_v1  ;;  %v9137_v0 = vld [vmem:[%s10605_s29 + $0x1200] ss:$16 sps:$4 sm:$0xff]   ;;  %v9142_v1 = vld [vmem:[%s10605_s29 + $0x1024] ss:$16 sps:$4 sm:$0xff]  }
 0x147   : > { %6494 = vmatprep.subr.bf16.mxu1 %v9075_v2  ;;  %v9145_v2 = vld [vmem:[%s10605_s29 + $0x1224] ss:$16 sps:$4 sm:$0xff]  }
 0x149   : > { %6454 = vmatpush1.bf16.msra.mxu0 %v9070_v3  ;;  %v9140_v3 = vld [vmem:[%s10605_s29 + $0x1020] ss:$16 sps:$4 sm:$0xff]  }
 0x14a   : > { %6495 = vmatpush1.bf16.msra.mxu1 %v9073_v4  ;;  %6455 = vmatprep.subr.bf16.mxu0 %v9078_v5  ;;  %v9143_v4 = vld [vmem:[%s10605_s29 + $0x1220] ss:$16 sps:$4 sm:$0xff]   ;;  %v9148_v5 = vld [vmem:[%s10605_s29 + $0x1044] ss:$16 sps:$4 sm:$0xff]  }
 0x14b   : > { %6496 = vmatprep.subr.bf16.mxu1 %v9081_v6  ;;  %v9151_v6 = vld [vmem:[%s10605_s29 + $0x1244] ss:$16 sps:$4 sm:$0xff]  }
 0x14d   : > { %6456 = vmatpush1.bf16.msra.mxu0 %v9076_v9  ;;  %v9146_v9 = vld [vmem:[%s10605_s29 + $0x1040] ss:$16 sps:$4 sm:$0xff]  }
 0x14e   : > { %6497 = vmatpush1.bf16.msra.mxu1 %v9079_v10  ;;  %6457 = vmatprep.subr.bf16.mxu0 %v9084_v11  ;;  %v9149_v10 = vld [vmem:[%s10605_s29 + $0x1240] ss:$16 sps:$4 sm:$0xff]   ;;  %v9154_v11 = vld [vmem:[%s10605_s29 + $0x1064] ss:$16 sps:$4 sm:$0xff]  }
 0x14f   : > { %6498 = vmatprep.subr.bf16.mxu1 %v9087_v12  ;;  %v9157_v12 = vld [vmem:[%s10605_s29 + $0x1264] ss:$16 sps:$4 sm:$0xff]  }
 0x151   : > { %6458 = vmatpush1.bf16.msra.mxu0 %v9082_v13  ;;  %v9152_v13 = vld [vmem:[%s10605_s29 + $0x1060] ss:$16 sps:$4 sm:$0xff]  }
 0x152   : > { %6499 = vmatpush1.bf16.msra.mxu1 %v9085_v14  ;;  %6459 = vmatprep.subr.bf16.mxu0 %v9090_v15  ;;  %v9155_v14 = vld [vmem:[%s10605_s29 + $0x1260] ss:$16 sps:$4 sm:$0xff]   ;;  %v9160_v15 = vld [vmem:[%s10605_s29 + $0x1084] ss:$16 sps:$4 sm:$0xff]  }
 0x153   : > { %6500 = vmatprep.subr.bf16.mxu1 %v9093_v16  ;;  %v9163_v16 = vld [vmem:[%s10605_s29 + $0x1284] ss:$16 sps:$4 sm:$0xff]  }
 0x155   : > { %6460 = vmatpush1.bf16.msra.mxu0 %v9088_v19  ;;  %v9158_v19 = vld [vmem:[%s10605_s29 + $0x1080] ss:$16 sps:$4 sm:$0xff]  }
 0x156   : > { %6501 = vmatpush1.bf16.msra.mxu1 %v9091_v20  ;;  %6461 = vmatprep.subr.bf16.mxu0 %v9096_v21  ;;  %v9161_v20 = vld [vmem:[%s10605_s29 + $0x1280] ss:$16 sps:$4 sm:$0xff]   ;;  %v9166_v21 = vld [vmem:[%s10605_s29 + $0x10a4] ss:$16 sps:$4 sm:$0xff]  }
 0x157   : > { %6502 = vmatprep.subr.bf16.mxu1 %v9099_v22  ;;  %v9169_v22 = vld [vmem:[%s10605_s29 + $0x12a4] ss:$16 sps:$4 sm:$0xff]  }
 0x159   : > { %6462 = vmatpush1.bf16.msra.mxu0 %v9094_v27  ;;  %v9164_v27 = vld [vmem:[%s10605_s29 + $0x10a0] ss:$16 sps:$4 sm:$0xff]  }
 0x15a   : > { %6503 = vmatpush1.bf16.msra.mxu1 %v9097_v28  ;;  %6463 = vmatprep.subr.bf16.mxu0 %v9102_v29  ;;  %v9167_v28 = vld [vmem:[%s10605_s29 + $0x12a0] ss:$16 sps:$4 sm:$0xff]   ;;  %v9172_v29 = vld [vmem:[%s10605_s29 + $0x10c4] ss:$16 sps:$4 sm:$0xff]  }
 0x15b   : > { %6504 = vmatprep.subr.bf16.mxu1 %v9105_v30  ;;  %v9175_v30 = vld [vmem:[%s10605_s29 + $0x12c4] ss:$16 sps:$4 sm:$0xff]  }
 0x15d   : > { %6464 = vmatpush1.bf16.msra.mxu0 %v9100_v31 }
 0x15e   : > { %6505 = vmatpush1.bf16.msra.mxu1 %v9103_v32  ;;  %6465 = vmatprep.subr.bf16.mxu0 %v9108_v33  ;;  %v9170_v33 = vld [vmem:[%s10605_s29 + $0x10c0] ss:$16 sps:$4 sm:$0xff]  }
 0x15f   : > { %6506 = vmatprep.subr.bf16.mxu1 %v9111_v34  ;;  %v9173_v34 = vld [vmem:[%s10605_s29 + $0x12c0] ss:$16 sps:$4 sm:$0xff]  }
 0x161   : > { %6466 = vmatpush1.bf16.msra.mxu0 %v9106_v35 }
 0x162   : > { %6507 = vmatpush1.bf16.msra.mxu1 %v9109_v36  ;;  %6467 = vmatprep.subr.bf16.mxu0 %v9114_v43 }
 0x163   : > { %6508 = vmatprep.subr.bf16.mxu1 %v9117_v44 }
 0x165   : > { %6468 = vmatpush1.bf16.msra.mxu0 %v9112_v45 }
 0x166   : > { %6509 = vmatpush1.bf16.msra.mxu1 %v9115_v46  ;;  %6469 = vmatprep.subr.bf16.mxu0 %v9120_v47 }
 0x167   : > { %6510 = vmatprep.subr.bf16.mxu1 %v9123_v49 }
 0x169   : > { %6470 = vmatpush1.bf16.msra.mxu0 %v9118_v50  ;;  %v9178_v50 = vld [vmem:[%s10605_s29 + $0x10e4] ss:$16 sps:$4 sm:$0xff]  }
 0x16a   : > { %6511 = vmatpush1.bf16.msra.mxu1 %v9121_v51  ;;  %6471 = vmatprep.subr.bf16.mxu0 %v9126_v53  ;;  %v9181_v51 = vld [vmem:[%s10605_s29 + $0x12e4] ss:$16 sps:$4 sm:$0xff]   ;;  %v9176_v53 = vld [vmem:[%s10605_s29 + $0x10e0] ss:$16 sps:$4 sm:$0xff]  }
 0x16b   : > { %6512 = vmatprep.subr.bf16.mxu1 %v9129_v54  ;;  %v9179_v54 = vld [vmem:[%s10605_s29 + $0x12e0] ss:$16 sps:$4 sm:$0xff]  }
 0x16d   : > { %6472 = vmatpush1.bf16.msra.mxu0 %v9124_v55  ;;  %v9184_v55 = vld [vmem:[%s10605_s29 + $0x1104] ss:$16 sps:$4 sm:$0xff]  }
 0x16e   : > { %6513 = vmatpush1.bf16.msra.mxu1 %v9127_v56  ;;  %6523 = vmatprep.subr.bf16.mxu0 %v9136_v57  ;;  %v9187_v56 = vld [vmem:[%s10605_s29 + $0x1304] ss:$16 sps:$4 sm:$0xff]   ;;  %v9182_v57 = vld [vmem:[%s10605_s29 + $0x1100] ss:$16 sps:$4 sm:$0xff]  }
 0x16f   : > { %6564 = vmatprep.subr.bf16.mxu1 %v9139_v58  ;;  %v9185_v58 = vld [vmem:[%s10605_s29 + $0x1300] ss:$16 sps:$4 sm:$0xff]  }
 0x170   : > { %6474 = vmatmul.mubr.bf16.vlgmr.msra.gmra.mrb[12].mxu0 %v10981_v60 }
 0x171   : > { %6515 = vmatmul.mubr.bf16.vlgmr.msra.gmra.mrb[12].mxu1 %v10985_v61  ;;  %6524 = vmatpush1.bf16.msra.mxu0 %v9134_v63  ;;  %v9190_v63 = vld [vmem:[%s10605_s29 + $0x1124] ss:$16 sps:$4 sm:$0xff]  }
 0x172   : > { %6565 = vmatpush1.bf16.msra.mxu1 %v9137_v0  ;;  %6525 = vmatprep.subr.bf16.mxu0 %v9142_v1  ;;  %v9193_v0 = vld [vmem:[%s10605_s29 + $0x1324] ss:$16 sps:$4 sm:$0xff]   ;;  %v9188_v1 = vld [vmem:[%s10605_s29 + $0x1120] ss:$16 sps:$4 sm:$0xff]  }
 0x173   : > { %6566 = vmatprep.subr.bf16.mxu1 %v9145_v2  ;;  %6555 = vmatprep.mubr.bf16.mxu0 %v10996_v41  ;;  %v9191_v2 = vld [vmem:[%s10605_s29 + $0x1320] ss:$16 sps:$4 sm:$0xff]  }
 0x174   : > { %6596 = vmatprep.mubr.bf16.mxu1 %v11000_v42 }
 0x175   : > { %6526 = vmatpush1.bf16.msra.mxu0 %v9140_v3  ;;  %v9196_v3 = vld [vmem:[%s10605_s29 + $0x1144] ss:$16 sps:$4 sm:$0xff]  }
 0x176   : > { %6567 = vmatpush1.bf16.msra.mxu1 %v9143_v4  ;;  %6527 = vmatprep.subr.bf16.mxu0 %v9148_v5  ;;  %v9199_v4 = vld [vmem:[%s10605_s29 + $0x1344] ss:$16 sps:$4 sm:$0xff]   ;;  %v9194_v5 = vld [vmem:[%s10605_s29 + $0x1140] ss:$16 sps:$4 sm:$0xff]  }
 0x177   : > { %6568 = vmatprep.subr.bf16.mxu1 %v9151_v6  ;;  %v9197_v6 = vld [vmem:[%s10605_s29 + $0x1340] ss:$16 sps:$4 sm:$0xff]  }
 0x179   : > { %6528 = vmatpush1.bf16.msra.mxu0 %v9146_v9  ;;  %v9202_v9 = vld [vmem:[%s10605_s29 + $0x1164] ss:$16 sps:$4 sm:$0xff]  }
 0x17a   : > { %6569 = vmatpush1.bf16.msra.mxu1 %v9149_v10  ;;  %6529 = vmatprep.subr.bf16.mxu0 %v9154_v11  ;;  %v9205_v10 = vld [vmem:[%s10605_s29 + $0x1364] ss:$16 sps:$4 sm:$0xff]   ;;  %v9200_v11 = vld [vmem:[%s10605_s29 + $0x1160] ss:$16 sps:$4 sm:$0xff]  }
 0x17b   : > { %6570 = vmatprep.subr.bf16.mxu1 %v9157_v12  ;;  %v9203_v12 = vld [vmem:[%s10605_s29 + $0x1360] ss:$16 sps:$4 sm:$0xff]  }
 0x17d   : > { %6530 = vmatpush1.bf16.msra.mxu0 %v9152_v13  ;;  %v9208_v13 = vld [vmem:[%s10605_s29 + $0x1184] ss:$16 sps:$4 sm:$0xff]  }
 0x17e   : > { %6571 = vmatpush1.bf16.msra.mxu1 %v9155_v14  ;;  %6531 = vmatprep.subr.bf16.mxu0 %v9160_v15  ;;  %v9211_v14 = vld [vmem:[%s10605_s29 + $0x1384] ss:$16 sps:$4 sm:$0xff]   ;;  %v9206_v15 = vld [vmem:[%s10605_s29 + $0x1180] ss:$16 sps:$4 sm:$0xff]  }
 0x17f   : > { %6572 = vmatprep.subr.bf16.mxu1 %v9163_v16  ;;  %v9209_v16 = vld [vmem:[%s10605_s29 + $0x1380] ss:$16 sps:$4 sm:$0xff]  }
 0x181   : > { %6532 = vmatpush1.bf16.msra.mxu0 %v9158_v19  ;;  %v9214_v19 = vld [vmem:[%s10605_s29 + $0x11a4] ss:$16 sps:$4 sm:$0xff]  }
 0x182   : > { %6573 = vmatpush1.bf16.msra.mxu1 %v9161_v20  ;;  %6533 = vmatprep.subr.bf16.mxu0 %v9166_v21  ;;  %v9217_v20 = vld [vmem:[%s10605_s29 + $0x13a4] ss:$16 sps:$4 sm:$0xff]   ;;  %v9212_v21 = vld [vmem:[%s10605_s29 + $0x11a0] ss:$16 sps:$4 sm:$0xff]  }
 0x183   : > { %6574 = vmatprep.subr.bf16.mxu1 %v9169_v22  ;;  %v6229_v31 = vpop.f32.mrb[0].mxu0  ;;  %v9215_v22 = vld [vmem:[%s10605_s29 + $0x13a0] ss:$16 sps:$4 sm:$0xff]  }
 0x184   : > { %v6270_v32 = vpop.f32.mrb[0].mxu1  ;;  %v6231_v36 = vpop.f32.mrb[1].mxu0 }
 0x185   : > { %v11028_v35 = vadd.f32 %v6270_v32, %v6229_v31  ;;  %v6272_v43 = vpop.f32.mrb[1].mxu1  ;;  %v6233_v45 = vpop.f32.mrb[2].mxu0  ;;  %6534 = vmatpush1.bf16.msra.mxu0 %v9164_v27  ;;  %v9220_v27 = vld [vmem:[%s10605_s29 + $0x11c4] ss:$16 sps:$4 sm:$0xff]  }
 0x186   : > { %v11030_v44 = vadd.f32 %v6272_v43, %v6231_v36  ;;  %v6274_v46 = vpop.f32.mrb[2].mxu1  ;;  %6575 = vmatpush1.bf16.msra.mxu1 %v9167_v28  ;;  %v6234_v47 = vpop.f32.mrb[3].mxu0  ;;  %6535 = vmatprep.subr.bf16.mxu0 %v9172_v29  ;;  %v9223_v28 = vld [vmem:[%s10605_s29 + $0x13c4] ss:$16 sps:$4 sm:$0xff]   ;;  %v9218_v29 = vld [vmem:[%s10605_s29 + $0x11c0] ss:$16 sps:$4 sm:$0xff]  }
 0x187   : > { %v6275_v49 = vpop.f32.mrb[3].mxu1  ;;  %6576 = vmatprep.subr.bf16.mxu1 %v9175_v30  ;;  %v9221_v30 = vld [vmem:[%s10605_s29 + $0x13c0] ss:$16 sps:$4 sm:$0xff]   ;;  %v9226_v31 = vld [vmem:[%s10605_s29 + $0x11e4] ss:$16 sps:$4 sm:$0xff]   ;;  %v11074_v47 = vcombine.low %v10977_v59, %v10977_v59 }
 0x188   : > { %v9229_v32 = vld [vmem:[%s10605_s29 + $0x13e4] ss:$16 sps:$4 sm:$0xff]   ;;  %v9234_v45 = vld [vmem:[%s10605_s29 + $0x1400] ss:$16 sps:$4 sm:$0xff]   ;;  %v11078_v49 = vcombine.low %v10988_v62, %v10988_v62 }
 0x189   : > { %6536 = vmatpush1.bf16.msra.mxu0 %v9170_v33  ;;  %v9224_v33 = vld [vmem:[%s10605_s29 + $0x11e0] ss:$16 sps:$4 sm:$0xff]   ;;  %v9236_v36 = vld [vmem:[%s10605_s29 + $0x1404] ss:$16 sps:$4 sm:$0xff]  }
 0x18a   : > { %6577 = vmatpush1.bf16.msra.mxu1 %v9173_v34  ;;  %6537 = vmatprep.subr.bf16.mxu0 %v9178_v50  ;;  %v9227_v34 = vld [vmem:[%s10605_s29 + $0x13e0] ss:$16 sps:$4 sm:$0xff]   ;;  %v9239_v43 = vld [vmem:[%s10605_s29 + $0x1604] ss:$16 sps:$4 sm:$0xff]  }
 0x18b   : > { %6578 = vmatprep.subr.bf16.mxu1 %v9181_v51  ;;  %v9237_v46 = vld [vmem:[%s10605_s29 + $0x1600] ss:$16 sps:$4 sm:$0xff]   ;;  %v11084_v51 = vld [vmem:[%s10629_s9 + $0x58] sm:$0xff] }
 0x18c   : > { %v11081_v50 = vld [vmem:[%s10629_s9 + $0x50] sm:$0xff]  ;;  %v11094_v62 = vcombine.high %v11084_v51, %v11084_v51 }
 0x18d   : > { %6538 = vmatpush1.bf16.msra.mxu0 %v9176_v53  ;;  %v9242_v53 = vld [vmem:[%s10605_s29 + $0x1424] ss:$16 sps:$4 sm:$0xff]   ;;  %v11090_v59 = vcombine.high %v11081_v50, %v11081_v50 }
 0x18e   : > { %6579 = vmatpush1.bf16.msra.mxu1 %v9179_v54  ;;  %6539 = vmatprep.subr.bf16.mxu0 %v9184_v55  ;;  %v9245_v54 = vld [vmem:[%s10605_s29 + $0x1624] ss:$16 sps:$4 sm:$0xff]   ;;  %v9240_v55 = vld [vmem:[%s10605_s29 + $0x1420] ss:$16 sps:$4 sm:$0xff]  }
 0x18f   : > { %6580 = vmatprep.subr.bf16.mxu1 %v9187_v56  ;;  %v9243_v56 = vld [vmem:[%s10605_s29 + $0x1620] ss:$16 sps:$4 sm:$0xff]  }
 0x191   : > { %6540 = vmatpush1.bf16.msra.mxu0 %v9182_v57  ;;  %v9248_v57 = vld [vmem:[%s10605_s29 + $0x1444] ss:$16 sps:$4 sm:$0xff]  }
 0x192   : > { %6581 = vmatpush1.bf16.msra.mxu1 %v9185_v58  ;;  %6541 = vmatprep.subr.bf16.mxu0 %v9190_v63  ;;  %v9251_v58 = vld [vmem:[%s10605_s29 + $0x1644] ss:$16 sps:$4 sm:$0xff]   ;;  %v9246_v63 = vld [vmem:[%s10605_s29 + $0x1440] ss:$16 sps:$4 sm:$0xff]  }
 0x193   : > { %6582 = vmatprep.subr.bf16.mxu1 %v9193_v0  ;;  %v9249_v0 = vld [vmem:[%s10605_s29 + $0x1640] ss:$16 sps:$4 sm:$0xff]  }
 0x195   : > { %6542 = vmatpush1.bf16.msra.mxu0 %v9188_v1  ;;  %v9254_v1 = vld [vmem:[%s10605_s29 + $0x1464] ss:$16 sps:$4 sm:$0xff]  }
 0x196   : > { %6583 = vmatpush1.bf16.msra.mxu1 %v9191_v2  ;;  %6543 = vmatprep.subr.bf16.mxu0 %v9196_v3  ;;  %v9257_v2 = vld [vmem:[%s10605_s29 + $0x1664] ss:$16 sps:$4 sm:$0xff]   ;;  %v9252_v3 = vld [vmem:[%s10605_s29 + $0x1460] ss:$16 sps:$4 sm:$0xff]  }
 0x197   : > { %6584 = vmatprep.subr.bf16.mxu1 %v9199_v4  ;;  %v9255_v4 = vld [vmem:[%s10605_s29 + $0x1660] ss:$16 sps:$4 sm:$0xff]  }
 0x199   : > { %6544 = vmatpush1.bf16.msra.mxu0 %v9194_v5  ;;  %v9260_v5 = vld [vmem:[%s10605_s29 + $0x1484] ss:$16 sps:$4 sm:$0xff]  }
 0x19a   : > { %6585 = vmatpush1.bf16.msra.mxu1 %v9197_v6  ;;  %6545 = vmatprep.subr.bf16.mxu0 %v9202_v9  ;;  %v9263_v6 = vld [vmem:[%s10605_s29 + $0x1684] ss:$16 sps:$4 sm:$0xff]   ;;  %v9258_v9 = vld [vmem:[%s10605_s29 + $0x1480] ss:$16 sps:$4 sm:$0xff]  }
 0x19b   : > { %6586 = vmatprep.subr.bf16.mxu1 %v9205_v10  ;;  %v9261_v10 = vld [vmem:[%s10605_s29 + $0x1680] ss:$16 sps:$4 sm:$0xff]  }
 0x19d   : > { %6546 = vmatpush1.bf16.msra.mxu0 %v9200_v11  ;;  %v9266_v11 = vld [vmem:[%s10605_s29 + $0x14a4] ss:$16 sps:$4 sm:$0xff]  }
 0x19e   : > { %6587 = vmatpush1.bf16.msra.mxu1 %v9203_v12  ;;  %6547 = vmatprep.subr.bf16.mxu0 %v9208_v13  ;;  %v9269_v12 = vld [vmem:[%s10605_s29 + $0x16a4] ss:$16 sps:$4 sm:$0xff]   ;;  %v9264_v13 = vld [vmem:[%s10605_s29 + $0x14a0] ss:$16 sps:$4 sm:$0xff]  }
 0x19f   : > { %6588 = vmatprep.subr.bf16.mxu1 %v9211_v14  ;;  %v9267_v14 = vld [vmem:[%s10605_s29 + $0x16a0] ss:$16 sps:$4 sm:$0xff]  }
 0x1a1   : > { %6548 = vmatpush1.bf16.msra.mxu0 %v9206_v15  ;;  %v9272_v15 = vld [vmem:[%s10605_s29 + $0x14c4] ss:$16 sps:$4 sm:$0xff]  }
 0x1a2   : > { %6589 = vmatpush1.bf16.msra.mxu1 %v9209_v16  ;;  %6549 = vmatprep.subr.bf16.mxu0 %v9214_v19  ;;  %v9275_v16 = vld [vmem:[%s10605_s29 + $0x16c4] ss:$16 sps:$4 sm:$0xff]  }
 0x1a3   : > { %6590 = vmatprep.subr.bf16.mxu1 %v9217_v20 }
 0x1a5   : > { %6550 = vmatpush1.bf16.msra.mxu0 %v9212_v21  ;;  %v9270_v21 = vld [vmem:[%s10605_s29 + $0x14c0] ss:$16 sps:$4 sm:$0xff]  }
 0x1a6   : > { %6591 = vmatpush1.bf16.msra.mxu1 %v9215_v22  ;;  %6551 = vmatprep.subr.bf16.mxu0 %v9220_v27  ;;  %v9273_v22 = vld [vmem:[%s10605_s29 + $0x16c0] ss:$16 sps:$4 sm:$0xff]  }
 0x1a7   : > { %6592 = vmatprep.subr.bf16.mxu1 %v9223_v28 }
 0x1a9   : > { %6552 = vmatpush1.bf16.msra.mxu0 %v9218_v29 }
 0x1aa   : > { %6593 = vmatpush1.bf16.msra.mxu1 %v9221_v30  ;;  %6553 = vmatprep.subr.bf16.mxu0 %v9226_v31 }
 0x1ab   : > { %6594 = vmatprep.subr.bf16.mxu1 %v9229_v32 }
 0x1ad   : > { %6554 = vmatpush1.bf16.msra.mxu0 %v9224_v33 }
 0x1ae   : > { %6595 = vmatpush1.bf16.msra.mxu1 %v9227_v34  ;;  %6605 = vmatprep.subr.bf16.mxu0 %v9236_v36 }
 0x1af   : > { %6646 = vmatprep.subr.bf16.mxu1 %v9239_v43  ;;  %v9281_v43 = vld [vmem:[%s10605_s29 + $0x16e4] ss:$16 sps:$4 sm:$0xff]  }
 0x1b0   : > { %6556 = vmatmul.mubr.bf16.vlgmr.msra.gmra.mrb[16].mxu0 %v11074_v47 }
 0x1b1   : > { %6597 = vmatmul.mubr.bf16.vlgmr.msra.gmra.mrb[16].mxu1 %v11078_v49  ;;  %6606 = vmatpush1.bf16.msra.mxu0 %v9234_v45 }
 0x1b2   : > { %6647 = vmatpush1.bf16.msra.mxu1 %v9237_v46  ;;  %6607 = vmatprep.subr.bf16.mxu0 %v9242_v53  ;;  %v9279_v46 = vld [vmem:[%s10605_s29 + $0x16e0] ss:$16 sps:$4 sm:$0xff]   ;;  %v9284_v53 = vld [vmem:[%s10605_s29 + $0x1504] ss:$16 sps:$4 sm:$0xff]  }
 0x1b3   : > { %6648 = vmatprep.subr.bf16.mxu1 %v9245_v54  ;;  %6637 = vmatprep.mubr.bf16.mxu0 %v11090_v59  ;;  %v9287_v54 = vld [vmem:[%s10605_s29 + $0x1704] ss:$16 sps:$4 sm:$0xff]  }
 0x1b4   : > { %6678 = vmatprep.mubr.bf16.mxu1 %v11094_v62 }
 0x1b5   : > { %6608 = vmatpush1.bf16.msra.mxu0 %v9240_v55  ;;  %v9282_v55 = vld [vmem:[%s10605_s29 + $0x1500] ss:$16 sps:$4 sm:$0xff]  }
 0x1b6   : > { %6649 = vmatpush1.bf16.msra.mxu1 %v9243_v56  ;;  %6609 = vmatprep.subr.bf16.mxu0 %v9248_v57  ;;  %v9285_v56 = vld [vmem:[%s10605_s29 + $0x1700] ss:$16 sps:$4 sm:$0xff]   ;;  %v9290_v57 = vld [vmem:[%s10605_s29 + $0x1524] ss:$16 sps:$4 sm:$0xff]  }
 0x1b7   : > { %6650 = vmatprep.subr.bf16.mxu1 %v9251_v58  ;;  %v9293_v58 = vld [vmem:[%s10605_s29 + $0x1724] ss:$16 sps:$4 sm:$0xff]  }
 0x1b9   : > { %6610 = vmatpush1.bf16.msra.mxu0 %v9246_v63  ;;  %v9288_v63 = vld [vmem:[%s10605_s29 + $0x1520] ss:$16 sps:$4 sm:$0xff]  }
 0x1ba   : > { %6651 = vmatpush1.bf16.msra.mxu1 %v9249_v0  ;;  %6611 = vmatprep.subr.bf16.mxu0 %v9254_v1  ;;  %v9291_v0 = vld [vmem:[%s10605_s29 + $0x1720] ss:$16 sps:$4 sm:$0xff]   ;;  %v9296_v1 = vld [vmem:[%s10605_s29 + $0x1544] ss:$16 sps:$4 sm:$0xff]  }
 0x1bb   : > { %6652 = vmatprep.subr.bf16.mxu1 %v9257_v2  ;;  %v9299_v2 = vld [vmem:[%s10605_s29 + $0x1744] ss:$16 sps:$4 sm:$0xff]  }
 0x1bd   : > { %6612 = vmatpush1.bf16.msra.mxu0 %v9252_v3  ;;  %v9294_v3 = vld [vmem:[%s10605_s29 + $0x1540] ss:$16 sps:$4 sm:$0xff]  }
 0x1be   : > { %6653 = vmatpush1.bf16.msra.mxu1 %v9255_v4  ;;  %6613 = vmatprep.subr.bf16.mxu0 %v9260_v5  ;;  %v9297_v4 = vld [vmem:[%s10605_s29 + $0x1740] ss:$16 sps:$4 sm:$0xff]   ;;  %v9302_v5 = vld [vmem:[%s10605_s29 + $0x1564] ss:$16 sps:$4 sm:$0xff]  }
 0x1bf   : > { %6654 = vmatprep.subr.bf16.mxu1 %v9263_v6  ;;  %v9305_v6 = vld [vmem:[%s10605_s29 + $0x1764] ss:$16 sps:$4 sm:$0xff]  }
 0x1c1   : > { %6614 = vmatpush1.bf16.msra.mxu0 %v9258_v9  ;;  %v9300_v9 = vld [vmem:[%s10605_s29 + $0x1560] ss:$16 sps:$4 sm:$0xff]  }
 0x1c2   : > { %6655 = vmatpush1.bf16.msra.mxu1 %v9261_v10  ;;  %6615 = vmatprep.subr.bf16.mxu0 %v9266_v11  ;;  %v9303_v10 = vld [vmem:[%s10605_s29 + $0x1760] ss:$16 sps:$4 sm:$0xff]   ;;  %v9308_v11 = vld [vmem:[%s10605_s29 + $0x1584] ss:$16 sps:$4 sm:$0xff]  }
 0x1c3   : > { %6656 = vmatprep.subr.bf16.mxu1 %v9269_v12  ;;  %v6311_v19 = vpop.f32.mrb[4].mxu0  ;;  %v9311_v12 = vld [vmem:[%s10605_s29 + $0x1784] ss:$16 sps:$4 sm:$0xff]  }
 0x1c4   : > { %v6352_v20 = vpop.f32.mrb[4].mxu1  ;;  %v6312_v27 = vadd.f32 %v6311_v19, %v11028_v35  ;;  %v6313_v28 = vpop.f32.mrb[5].mxu0  ;;  %v9278_v35 = vld [vmem:[%s10605_s29 + $0x14e4] ss:$16 sps:$4 sm:$0xff]   ;;  %v9312_v19 = vld [vmem:[%s10605_s29 + $0x15a0] ss:$16 sps:$4 sm:$0xff]  }
 0x1c5   : > { %v6354_v29 = vpop.f32.mrb[5].mxu1  ;;  %v6314_v30 = vadd.f32 %v6313_v28, %v11030_v44  ;;  %v6315_v31 = vpop.f32.mrb[6].mxu0  ;;  %6616 = vmatpush1.bf16.msra.mxu0 %v9264_v13  ;;  %v9276_v44 = vld [vmem:[%s10605_s29 + $0x14e0] ss:$16 sps:$4 sm:$0xff]  }
 0x1c6   : > { %v6356_v32 = vpop.f32.mrb[6].mxu1  ;;  %6657 = vmatpush1.bf16.msra.mxu1 %v9267_v14  ;;  %v11124_v33 = vadd.f32 %v6352_v20, %v6312_v27  ;;  %v6316_v34 = vpop.f32.mrb[7].mxu0  ;;  %6617 = vmatprep.subr.bf16.mxu0 %v9272_v15  ;;  %v9306_v13 = vld [vmem:[%s10605_s29 + $0x1580] ss:$16 sps:$4 sm:$0xff]   ;;  %v9314_v15 = vld [vmem:[%s10605_s29 + $0x15a4] ss:$16 sps:$4 sm:$0xff]  }
 0x1c7   : > { %v6357_v36 = vpop.f32.mrb[7].mxu1  ;;  %6658 = vmatprep.subr.bf16.mxu1 %v9275_v16  ;;  %v11128_v45 = vadd.f32 %v6354_v29, %v6314_v30  ;;  %v9309_v14 = vld [vmem:[%s10605_s29 + $0x1780] ss:$16 sps:$4 sm:$0xff]   ;;  %v9317_v16 = vld [vmem:[%s10605_s29 + $0x17a4] ss:$16 sps:$4 sm:$0xff]  }
 0x1c8   : > { %v9315_v20 = vld [vmem:[%s10605_s29 + $0x17a0] ss:$16 sps:$4 sm:$0xff]   ;;  %v9326_v29 = vld [vmem:[%s10605_s29 + $0x15e4] ss:$16 sps:$4 sm:$0xff]  }
 0x1c9   : > { %6618 = vmatpush1.bf16.msra.mxu0 %v9270_v21  ;;  %v9320_v21 = vld [vmem:[%s10605_s29 + $0x15c4] ss:$16 sps:$4 sm:$0xff]   ;;  %v9318_v27 = vld [vmem:[%s10605_s29 + $0x15c0] ss:$16 sps:$4 sm:$0xff]  }
 0x1ca   : > { %6659 = vmatpush1.bf16.msra.mxu1 %v9273_v22  ;;  %6619 = vmatprep.subr.bf16.mxu0 %v9278_v35  ;;  %v9323_v22 = vld [vmem:[%s10605_s29 + $0x17c4] ss:$16 sps:$4 sm:$0xff]   ;;  %v9321_v28 = vld [vmem:[%s10605_s29 + $0x17c0] ss:$16 sps:$4 sm:$0xff]  }
 0x1cb   : > { %6660 = vmatprep.subr.bf16.mxu1 %v9281_v43  ;;  %v9329_v30 = vld [vmem:[%s10605_s29 + $0x17e4] ss:$16 sps:$4 sm:$0xff]   ;;  %v9324_v31 = vld [vmem:[%s10605_s29 + $0x15e0] ss:$16 sps:$4 sm:$0xff]  }
 0x1cc   : > { %v9327_v32 = vld [vmem:[%s10605_s29 + $0x17e0] ss:$16 sps:$4 sm:$0xff]   ;;  %v9336_v34 = vld [vmem:[%s10605_s29 + $0x1804] ss:$16 sps:$4 sm:$0xff]  }
 0x1cd   : > { %6620 = vmatpush1.bf16.msra.mxu0 %v9276_v44  ;;  %v9339_v36 = vld [vmem:[%s10605_s29 + $0x1a04] ss:$16 sps:$4 sm:$0xff]   ;;  %v9334_v43 = vld [vmem:[%s10605_s29 + $0x1800] ss:$16 sps:$4 sm:$0xff]  }
 0x1ce   : > { %6661 = vmatpush1.bf16.msra.mxu1 %v9279_v46  ;;  %6621 = vmatprep.subr.bf16.mxu0 %v9284_v53  ;;  %v11167_v35 = vld [vmem:[%s10629_s9 + $0x60] sm:$0xff]  ;;  %v11173_v46 = vcombine.low %v11081_v50, %v11081_v50  ;;  %v11177_v53 = vcombine.low %v11084_v51, %v11084_v51 }
 0x1cf   : > { %6662 = vmatprep.subr.bf16.mxu1 %v9287_v54  ;;  %v9337_v44 = vld [vmem:[%s10605_s29 + $0x1a00] ss:$16 sps:$4 sm:$0xff]   ;;  %v11180_v54 = vld [vmem:[%s10629_s9 + $0x68] sm:$0xff] }
 0x1d0   : > { %v11190_v50 = vcombine.high %v11180_v54, %v11180_v54  ;;  %v9340_v51 = vld [vmem:[%s10605_s29 + $0x1820] ss:$16 sps:$4 sm:$0xff]  }
 0x1d1   : > { %6622 = vmatpush1.bf16.msra.mxu0 %v9282_v55  ;;  %v9342_v55 = vld [vmem:[%s10605_s29 + $0x1824] ss:$16 sps:$4 sm:$0xff]  }
 0x1d2   : > { %6663 = vmatpush1.bf16.msra.mxu1 %v9285_v56  ;;  %6623 = vmatprep.subr.bf16.mxu0 %v9290_v57  ;;  %v9345_v56 = vld [vmem:[%s10605_s29 + $0x1a24] ss:$16 sps:$4 sm:$0xff]   ;;  %v11186_v57 = vcombine.high %v11167_v35, %v11167_v35 }
 0x1d3   : > { %6664 = vmatprep.subr.bf16.mxu1 %v9293_v58  ;;  %v9343_v58 = vld [vmem:[%s10605_s29 + $0x1a20] ss:$16 sps:$4 sm:$0xff]  }
 0x1d5   : > { %6624 = vmatpush1.bf16.msra.mxu0 %v9288_v63  ;;  %v9348_v63 = vld [vmem:[%s10605_s29 + $0x1844] ss:$16 sps:$4 sm:$0xff]  }
 0x1d6   : > { %6665 = vmatpush1.bf16.msra.mxu1 %v9291_v0  ;;  %6625 = vmatprep.subr.bf16.mxu0 %v9296_v1  ;;  %v9351_v0 = vld [vmem:[%s10605_s29 + $0x1a44] ss:$16 sps:$4 sm:$0xff]   ;;  %v9346_v1 = vld [vmem:[%s10605_s29 + $0x1840] ss:$16 sps:$4 sm:$0xff]  }
 0x1d7   : > { %6666 = vmatprep.subr.bf16.mxu1 %v9299_v2  ;;  %v9349_v2 = vld [vmem:[%s10605_s29 + $0x1a40] ss:$16 sps:$4 sm:$0xff]  }
 0x1d9   : > { %6626 = vmatpush1.bf16.msra.mxu0 %v9294_v3  ;;  %v9354_v3 = vld [vmem:[%s10605_s29 + $0x1864] ss:$16 sps:$4 sm:$0xff]  }
 0x1da   : > { %6667 = vmatpush1.bf16.msra.mxu1 %v9297_v4  ;;  %6627 = vmatprep.subr.bf16.mxu0 %v9302_v5  ;;  %v9357_v4 = vld [vmem:[%s10605_s29 + $0x1a64] ss:$16 sps:$4 sm:$0xff]   ;;  %v9352_v5 = vld [vmem:[%s10605_s29 + $0x1860] ss:$16 sps:$4 sm:$0xff]  }
 0x1db   : > { %6668 = vmatprep.subr.bf16.mxu1 %v9305_v6  ;;  %v9355_v6 = vld [vmem:[%s10605_s29 + $0x1a60] ss:$16 sps:$4 sm:$0xff]  }
 0x1dd   : > { %6628 = vmatpush1.bf16.msra.mxu0 %v9300_v9  ;;  %v9360_v9 = vld [vmem:[%s10605_s29 + $0x1884] ss:$16 sps:$4 sm:$0xff]  }
 0x1de   : > { %6669 = vmatpush1.bf16.msra.mxu1 %v9303_v10  ;;  %6629 = vmatprep.subr.bf16.mxu0 %v9308_v11  ;;  %v9363_v10 = vld [vmem:[%s10605_s29 + $0x1a84] ss:$16 sps:$4 sm:$0xff]   ;;  %v9358_v11 = vld [vmem:[%s10605_s29 + $0x1880] ss:$16 sps:$4 sm:$0xff]  }
 0x1df   : > { %6670 = vmatprep.subr.bf16.mxu1 %v9311_v12  ;;  %v9361_v12 = vld [vmem:[%s10605_s29 + $0x1a80] ss:$16 sps:$4 sm:$0xff]  }
 0x1e1   : > { %6630 = vmatpush1.bf16.msra.mxu0 %v9306_v13  ;;  %v9366_v13 = vld [vmem:[%s10605_s29 + $0x18a4] ss:$16 sps:$4 sm:$0xff]  }
 0x1e2   : > { %6671 = vmatpush1.bf16.msra.mxu1 %v9309_v14  ;;  %6631 = vmatprep.subr.bf16.mxu0 %v9314_v15  ;;  %v9369_v14 = vld [vmem:[%s10605_s29 + $0x1aa4] ss:$16 sps:$4 sm:$0xff]   ;;  %v9364_v15 = vld [vmem:[%s10605_s29 + $0x18a0] ss:$16 sps:$4 sm:$0xff]  }
 0x1e3   : > { %6672 = vmatprep.subr.bf16.mxu1 %v9317_v16  ;;  %v9367_v16 = vld [vmem:[%s10605_s29 + $0x1aa0] ss:$16 sps:$4 sm:$0xff]  }
 0x1e5   : > { %6632 = vmatpush1.bf16.msra.mxu0 %v9312_v19  ;;  %v9372_v19 = vld [vmem:[%s10605_s29 + $0x18c4] ss:$16 sps:$4 sm:$0xff]  }
 0x1e6   : > { %6673 = vmatpush1.bf16.msra.mxu1 %v9315_v20  ;;  %6633 = vmatprep.subr.bf16.mxu0 %v9320_v21  ;;  %v9375_v20 = vld [vmem:[%s10605_s29 + $0x1ac4] ss:$16 sps:$4 sm:$0xff]  }
 0x1e7   : > { %6674 = vmatprep.subr.bf16.mxu1 %v9323_v22 }
 0x1e9   : > { %6634 = vmatpush1.bf16.msra.mxu0 %v9318_v27  ;;  %v9370_v27 = vld [vmem:[%s10605_s29 + $0x18c0] ss:$16 sps:$4 sm:$0xff]  }
 0x1ea   : > { %6675 = vmatpush1.bf16.msra.mxu1 %v9321_v28  ;;  %6635 = vmatprep.subr.bf16.mxu0 %v9326_v29  ;;  %v9373_v28 = vld [vmem:[%s10605_s29 + $0x1ac0] ss:$16 sps:$4 sm:$0xff]  }
 0x1eb   : > { %6676 = vmatprep.subr.bf16.mxu1 %v9329_v30 }
 0x1ed   : > { %6636 = vmatpush1.bf16.msra.mxu0 %v9324_v31 }
 0x1ee   : > { %6677 = vmatpush1.bf16.msra.mxu1 %v9327_v32  ;;  %6687 = vmatprep.subr.bf16.mxu0 %v9336_v34 }
 0x1ef   : > { %6728 = vmatprep.subr.bf16.mxu1 %v9339_v36 }
 0x1f0   : > { %6638 = vmatmul.mubr.bf16.vlgmr.msra.gmra.mrb[20].mxu0 %v11173_v46 }
 0x1f1   : > { %6679 = vmatmul.mubr.bf16.vlgmr.msra.gmra.mrb[20].mxu1 %v11177_v53  ;;  %6688 = vmatpush1.bf16.msra.mxu0 %v9334_v43 }
 0x1f2   : > { %6729 = vmatpush1.bf16.msra.mxu1 %v9337_v44  ;;  %6689 = vmatprep.subr.bf16.mxu0 %v9342_v55 }
 0x1f3   : > { %6730 = vmatprep.subr.bf16.mxu1 %v9345_v56  ;;  %6719 = vmatprep.mubr.bf16.mxu0 %v11186_v57  ;;  %v9381_v56 = vld [vmem:[%s10605_s29 + $0x1ae4] ss:$16 sps:$4 sm:$0xff]  }
 0x1f4   : > { %6760 = vmatprep.mubr.bf16.mxu1 %v11190_v50 }
 0x1f5   : > { %6690 = vmatpush1.bf16.msra.mxu0 %v9340_v51 }
 0x1f6   : > { %6731 = vmatpush1.bf16.msra.mxu1 %v9343_v58  ;;  %6691 = vmatprep.subr.bf16.mxu0 %v9348_v63  ;;  %v9379_v58 = vld [vmem:[%s10605_s29 + $0x1ae0] ss:$16 sps:$4 sm:$0xff]   ;;  %v9384_v63 = vld [vmem:[%s10605_s29 + $0x1904] ss:$16 sps:$4 sm:$0xff]  }
 0x1f7   : > { %6732 = vmatprep.subr.bf16.mxu1 %v9351_v0  ;;  %v9387_v0 = vld [vmem:[%s10605_s29 + $0x1b04] ss:$16 sps:$4 sm:$0xff]  }
 0x1f9   : > { %6692 = vmatpush1.bf16.msra.mxu0 %v9346_v1  ;;  %v9382_v1 = vld [vmem:[%s10605_s29 + $0x1900] ss:$16 sps:$4 sm:$0xff]  }
 0x1fa   : > { %6733 = vmatpush1.bf16.msra.mxu1 %v9349_v2  ;;  %6693 = vmatprep.subr.bf16.mxu0 %v9354_v3  ;;  %v9385_v2 = vld [vmem:[%s10605_s29 + $0x1b00] ss:$16 sps:$4 sm:$0xff]   ;;  %v9390_v3 = vld [vmem:[%s10605_s29 + $0x1924] ss:$16 sps:$4 sm:$0xff]  }
 0x1fb   : > { %6734 = vmatprep.subr.bf16.mxu1 %v9357_v4  ;;  %v9393_v4 = vld [vmem:[%s10605_s29 + $0x1b24] ss:$16 sps:$4 sm:$0xff]  }
 0x1fd   : > { %6694 = vmatpush1.bf16.msra.mxu0 %v9352_v5  ;;  %v9388_v5 = vld [vmem:[%s10605_s29 + $0x1920] ss:$16 sps:$4 sm:$0xff]  }
 0x1fe   : > { %6735 = vmatpush1.bf16.msra.mxu1 %v9355_v6  ;;  %6695 = vmatprep.subr.bf16.mxu0 %v9360_v9  ;;  %v9391_v6 = vld [vmem:[%s10605_s29 + $0x1b20] ss:$16 sps:$4 sm:$0xff]   ;;  %v9396_v9 = vld [vmem:[%s10605_s29 + $0x1944] ss:$16 sps:$4 sm:$0xff]  }
 0x1ff   : > { %6736 = vmatprep.subr.bf16.mxu1 %v9363_v10  ;;  %v9399_v10 = vld [vmem:[%s10605_s29 + $0x1b44] ss:$16 sps:$4 sm:$0xff]  }
 0x201   : > { %6696 = vmatpush1.bf16.msra.mxu0 %v9358_v11  ;;  %v9394_v11 = vld [vmem:[%s10605_s29 + $0x1940] ss:$16 sps:$4 sm:$0xff]  }
 0x202   : > { %6737 = vmatpush1.bf16.msra.mxu1 %v9361_v12  ;;  %6697 = vmatprep.subr.bf16.mxu0 %v9366_v13  ;;  %v9397_v12 = vld [vmem:[%s10605_s29 + $0x1b40] ss:$16 sps:$4 sm:$0xff]   ;;  %v9402_v13 = vld [vmem:[%s10605_s29 + $0x1964] ss:$16 sps:$4 sm:$0xff]  }
 0x203   : > { %6738 = vmatprep.subr.bf16.mxu1 %v9369_v14  ;;  %v6393_v21 = vpop.f32.mrb[8].mxu0  ;;  %v9405_v14 = vld [vmem:[%s10605_s29 + $0x1b64] ss:$16 sps:$4 sm:$0xff]  }
 0x204   : > { %v6434_v22 = vpop.f32.mrb[8].mxu1  ;;  %v6394_v29 = vadd.f32 %v6393_v21, %v11124_v33  ;;  %v6395_v30 = vpop.f32.mrb[9].mxu0  ;;  %v9378_v33 = vld [vmem:[%s10605_s29 + $0x18e4] ss:$16 sps:$4 sm:$0xff]   ;;  %v9406_v21 = vld [vmem:[%s10605_s29 + $0x1980] ss:$16 sps:$4 sm:$0xff]  }
 0x205   : > { %v6436_v31 = vpop.f32.mrb[9].mxu1  ;;  %v6396_v32 = vadd.f32 %v6395_v30, %v11128_v45  ;;  %v6397_v34 = vpop.f32.mrb[10].mxu0  ;;  %6698 = vmatpush1.bf16.msra.mxu0 %v9364_v15  ;;  %v9376_v45 = vld [vmem:[%s10605_s29 + $0x18e0] ss:$16 sps:$4 sm:$0xff]  }
 0x206   : > { %v6438_v36 = vpop.f32.mrb[10].mxu1  ;;  %6739 = vmatpush1.bf16.msra.mxu1 %v9367_v16  ;;  %v11220_v43 = vadd.f32 %v6434_v22, %v6394_v29  ;;  %v6398_v44 = vpop.f32.mrb[11].mxu0  ;;  %6699 = vmatprep.subr.bf16.mxu0 %v9372_v19  ;;  %v9400_v15 = vld [vmem:[%s10605_s29 + $0x1960] ss:$16 sps:$4 sm:$0xff]   ;;  %v9408_v19 = vld [vmem:[%s10605_s29 + $0x1984] ss:$16 sps:$4 sm:$0xff]  }
 0x207   : > { %v6439_v55 = vpop.f32.mrb[11].mxu1  ;;  %6740 = vmatprep.subr.bf16.mxu1 %v9375_v20  ;;  %v11224_v51 = vadd.f32 %v6436_v31, %v6396_v32  ;;  %v9403_v16 = vld [vmem:[%s10605_s29 + $0x1b60] ss:$16 sps:$4 sm:$0xff]   ;;  %v9411_v20 = vld [vmem:[%s10605_s29 + $0x1b84] ss:$16 sps:$4 sm:$0xff]  }
 0x208   : > { %v9409_v22 = vld [vmem:[%s10605_s29 + $0x1b80] ss:$16 sps:$4 sm:$0xff]   ;;  %v9420_v31 = vld [vmem:[%s10605_s29 + $0x19c4] ss:$16 sps:$4 sm:$0xff]  }
 0x209   : > { %6700 = vmatpush1.bf16.msra.mxu0 %v9370_v27  ;;  %v9414_v27 = vld [vmem:[%s10605_s29 + $0x19a4] ss:$16 sps:$4 sm:$0xff]   ;;  %v9412_v29 = vld [vmem:[%s10605_s29 + $0x19a0] ss:$16 sps:$4 sm:$0xff]  }
 0x20a   : > { %6741 = vmatpush1.bf16.msra.mxu1 %v9373_v28  ;;  %6701 = vmatprep.subr.bf16.mxu0 %v9378_v33  ;;  %v9417_v28 = vld [vmem:[%s10605_s29 + $0x1ba4] ss:$16 sps:$4 sm:$0xff]   ;;  %v9415_v30 = vld [vmem:[%s10605_s29 + $0x1ba0] ss:$16 sps:$4 sm:$0xff]  }
 0x20b   : > { %6742 = vmatprep.subr.bf16.mxu1 %v9381_v56  ;;  %v9423_v32 = vld [vmem:[%s10605_s29 + $0x1bc4] ss:$16 sps:$4 sm:$0xff]   ;;  %v9418_v34 = vld [vmem:[%s10605_s29 + $0x19c0] ss:$16 sps:$4 sm:$0xff]  }
 0x20c   : > { %v9421_v36 = vld [vmem:[%s10605_s29 + $0x1bc0] ss:$16 sps:$4 sm:$0xff]   ;;  %v9426_v44 = vld [vmem:[%s10605_s29 + $0x19e4] ss:$16 sps:$4 sm:$0xff]  }
 0x20d   : > { %6702 = vmatpush1.bf16.msra.mxu0 %v9376_v45  ;;  %v9429_v55 = vld [vmem:[%s10605_s29 + $0x1be4] ss:$16 sps:$4 sm:$0xff]   ;;  %v9424_v33 = vld [vmem:[%s10605_s29 + $0x19e0] ss:$16 sps:$4 sm:$0xff]  }
 0x20e   : > { %6743 = vmatpush1.bf16.msra.mxu1 %v9379_v58  ;;  %6703 = vmatprep.subr.bf16.mxu0 %v9384_v63  ;;  %v9427_v56 = vld [vmem:[%s10605_s29 + $0x1be0] ss:$16 sps:$4 sm:$0xff]   ;;  %v9436_v45 = vld [vmem:[%s10605_s29 + $0x1c04] ss:$16 sps:$4 sm:$0xff]   ;;  %v9439_v58 = vld [vmem:[%s10605_s29 + $0xc] ss:$16 sps:$4 sm:$0xff]  }
 0x20f   : > { %6744 = vmatprep.subr.bf16.mxu1 %v9387_v0  ;;  %v11263_v63 = vld [vmem:[%s10629_s9 + $0x70] sm:$0xff] }
 0x210   : > { %v9434_v0 = vld [vmem:[%s10605_s29 + $0x1c00] ss:$16 sps:$4 sm:$0xff]  }
 0x211   : > { %6704 = vmatpush1.bf16.msra.mxu0 %v9382_v1  ;;  %v9437_v1 = vld [vmem:[%s10605_s29 + $0x8] ss:$16 sps:$4 sm:$0xff]  }
 0x212   : > { %6745 = vmatpush1.bf16.msra.mxu1 %v9385_v2  ;;  %6705 = vmatprep.subr.bf16.mxu0 %v9390_v3  ;;  %v11269_v2 = vcombine.low %v11167_v35, %v11167_v35  ;;  %v11273_v3 = vcombine.low %v11180_v54, %v11180_v54  ;;  %v9440_v35 = vld [vmem:[%s10605_s29 + $0x1c20] ss:$16 sps:$4 sm:$0xff]   ;;  %v9443_v54 = vld [vmem:[%s10605_s29 + $0x28] ss:$16 sps:$4 sm:$0xff]  }
 0x213   : > { %6746 = vmatprep.subr.bf16.mxu1 %v9393_v4  ;;  %v9442_v4 = vld [vmem:[%s10605_s29 + $0x1c24] ss:$16 sps:$4 sm:$0xff]  }
 0x215   : > { %6706 = vmatpush1.bf16.msra.mxu0 %v9388_v5  ;;  %v9445_v5 = vld [vmem:[%s10605_s29 + $0x2c] ss:$16 sps:$4 sm:$0xff]  }
 0x216   : > { %6747 = vmatpush1.bf16.msra.mxu1 %v9391_v6  ;;  %6707 = vmatprep.subr.bf16.mxu0 %v9396_v9  ;;  %v11279_v6 = vcombine.high %v11263_v63, %v11263_v63  ;;  %v9448_v9 = vld [vmem:[%s10605_s29 + $0x1c44] ss:$16 sps:$4 sm:$0xff]  }
 0x217   : > { %6748 = vmatprep.subr.bf16.mxu1 %v9399_v10  ;;  %v9451_v10 = vld [vmem:[%s10605_s29 + $0x4c] ss:$16 sps:$4 sm:$0xff]  }
 0x219   : > { %6708 = vmatpush1.bf16.msra.mxu0 %v9394_v11  ;;  %v9446_v11 = vld [vmem:[%s10605_s29 + $0x1c40] ss:$16 sps:$4 sm:$0xff]  }
 0x21a   : > { %6749 = vmatpush1.bf16.msra.mxu1 %v9397_v12  ;;  %6709 = vmatprep.subr.bf16.mxu0 %v9402_v13  ;;  %v9449_v12 = vld [vmem:[%s10605_s29 + $0x48] ss:$16 sps:$4 sm:$0xff]   ;;  %v9454_v13 = vld [vmem:[%s10605_s29 + $0x1c64] ss:$16 sps:$4 sm:$0xff]  }
 0x21b   : > { %6750 = vmatprep.subr.bf16.mxu1 %v9405_v14  ;;  %v9457_v14 = vld [vmem:[%s10605_s29 + $0x6c] ss:$16 sps:$4 sm:$0xff]  }
 0x21d   : > { %6710 = vmatpush1.bf16.msra.mxu0 %v9400_v15  ;;  %v9452_v15 = vld [vmem:[%s10605_s29 + $0x1c60] ss:$16 sps:$4 sm:$0xff]  }
 0x21e   : > { %6751 = vmatpush1.bf16.msra.mxu1 %v9403_v16  ;;  %6711 = vmatprep.subr.bf16.mxu0 %v9408_v19  ;;  %v9455_v16 = vld [vmem:[%s10605_s29 + $0x68] ss:$16 sps:$4 sm:$0xff]   ;;  %v9463_v19 = vld [vmem:[%s10605_s29 + $0x8c] ss:$16 sps:$4 sm:$0xff]  }
 0x21f   : > { %6752 = vmatprep.subr.bf16.mxu1 %v9411_v20  ;;  %v9458_v20 = vld [vmem:[%s10605_s29 + $0x1c80] ss:$16 sps:$4 sm:$0xff]  }
 0x221   : > { %6712 = vmatpush1.bf16.msra.mxu0 %v9406_v21  ;;  %v9461_v21 = vld [vmem:[%s10605_s29 + $0x88] ss:$16 sps:$4 sm:$0xff]  }
 0x222   : > { %6753 = vmatpush1.bf16.msra.mxu1 %v9409_v22  ;;  %6713 = vmatprep.subr.bf16.mxu0 %v9414_v27  ;;  %v9466_v22 = vld [vmem:[%s10605_s29 + $0x1ca4] ss:$16 sps:$4 sm:$0xff]   ;;  %v9469_v27 = vld [vmem:[%s10605_s29 + $0xac] ss:$16 sps:$4 sm:$0xff]  }
 0x223   : > { %6754 = vmatprep.subr.bf16.mxu1 %v9417_v28  ;;  %v9464_v28 = vld [vmem:[%s10605_s29 + $0x1ca0] ss:$16 sps:$4 sm:$0xff]  }
 0x225   : > { %6714 = vmatpush1.bf16.msra.mxu0 %v9412_v29  ;;  %v9467_v29 = vld [vmem:[%s10605_s29 + $0xa8] ss:$16 sps:$4 sm:$0xff]  }
 0x226   : > { %6755 = vmatpush1.bf16.msra.mxu1 %v9415_v30  ;;  %6715 = vmatprep.subr.bf16.mxu0 %v9420_v31  ;;  %v9472_v30 = vld [vmem:[%s10605_s29 + $0x1cc4] ss:$16 sps:$4 sm:$0xff]   ;;  %v9475_v31 = vld [vmem:[%s10605_s29 + $0xcc] ss:$16 sps:$4 sm:$0xff]  }
 0x227   : > { %6756 = vmatprep.subr.bf16.mxu1 %v9423_v32 }
 0x229   : > { %6716 = vmatpush1.bf16.msra.mxu0 %v9418_v34 }
 0x22a   : > { %6757 = vmatpush1.bf16.msra.mxu1 %v9421_v36  ;;  %6717 = vmatprep.subr.bf16.mxu0 %v9426_v44  ;;  %v9470_v36 = vld [vmem:[%s10605_s29 + $0x1cc0] ss:$16 sps:$4 sm:$0xff]   ;;  %v9473_v44 = vld [vmem:[%s10605_s29 + $0xc8] ss:$16 sps:$4 sm:$0xff]  }
 0x22b   : > { %6758 = vmatprep.subr.bf16.mxu1 %v9429_v55 }
 0x22d   : > { %6718 = vmatpush1.bf16.msra.mxu0 %v9424_v33 }
 0x22e   : > { %6759 = vmatpush1.bf16.msra.mxu1 %v9427_v56  ;;  %6769 = vmatprep.subr.bf16.mxu0 %v9436_v45 }
 0x22f   : > { %6810 = vmatprep.subr.bf16.mxu1 %v9439_v58 }
 0x230   : > { %6720 = vmatmul.mubr.bf16.vlgmr.msra.gmra.mrb[24].mxu0 %v11269_v2 }
 0x231   : > { %6761 = vmatmul.mubr.bf16.vlgmr.msra.gmra.mrb[24].mxu1 %v11273_v3  ;;  %6770 = vmatpush1.bf16.msra.mxu0 %v9434_v0 }
 0x232   : > { %6811 = vmatpush1.bf16.msra.mxu1 %v9437_v1  ;;  %6771 = vmatprep.subr.bf16.mxu0 %v9442_v4 }
 0x233   : > { %6812 = vmatprep.subr.bf16.mxu1 %v9445_v5  ;;  %6801 = vmatprep.mubr.bf16.mxu0 %v11279_v6 }
 0x234   : > { %6842 = vmatprep.mubr.bf16.mxu1 %v10683_v48  ;;  %v9460_v48 = vld [vmem:[%s10605_s29 + $0x1c84] ss:$16 sps:$4 sm:$0xff]  }
 0x235   : > { %6772 = vmatpush1.bf16.msra.mxu0 %v9440_v35  ;;  %v9481_v35 = vld [vmem:[%s10605_s29 + $0xec] ss:$16 sps:$4 sm:$0xff]  }
 0x236   : > { %6813 = vmatpush1.bf16.msra.mxu1 %v9443_v54  ;;  %6773 = vmatprep.subr.bf16.mxu0 %v9448_v9  ;;  %v9479_v9 = vld [vmem:[%s10605_s29 + $0xe8] ss:$16 sps:$4 sm:$0xff]  }
 0x237   : > { %6814 = vmatprep.subr.bf16.mxu1 %v9451_v10  ;;  %v9484_v10 = vld [vmem:[%s10605_s29 + $0x1d04] ss:$16 sps:$4 sm:$0xff]  }
 0x239   : > { %6774 = vmatpush1.bf16.msra.mxu0 %v9446_v11  ;;  %v9487_v11 = vld [vmem:[%s10605_s29 + $0x10c] ss:$16 sps:$4 sm:$0xff]  }
 0x23a   : > { %6815 = vmatpush1.bf16.msra.mxu1 %v9449_v12  ;;  %6775 = vmatprep.subr.bf16.mxu0 %v9454_v13  ;;  %v9482_v12 = vld [vmem:[%s10605_s29 + $0x1d00] ss:$16 sps:$4 sm:$0xff]   ;;  %v9485_v13 = vld [vmem:[%s10605_s29 + $0x108] ss:$16 sps:$4 sm:$0xff]  }
 0x23b   : > { %6816 = vmatprep.subr.bf16.mxu1 %v9457_v14  ;;  %v9490_v14 = vld [vmem:[%s10605_s29 + $0x1d24] ss:$16 sps:$4 sm:$0xff]  }
 0x23d   : > { %6776 = vmatpush1.bf16.msra.mxu0 %v9452_v15  ;;  %v9493_v15 = vld [vmem:[%s10605_s29 + $0x12c] ss:$16 sps:$4 sm:$0xff]  }
 0x23e   : > { %6817 = vmatpush1.bf16.msra.mxu1 %v9455_v16  ;;  %6777 = vmatprep.subr.bf16.mxu0 %v9460_v48  ;;  %v9488_v16 = vld [vmem:[%s10605_s29 + $0x1d20] ss:$16 sps:$4 sm:$0xff]   ;;  %v9491_v48 = vld [vmem:[%s10605_s29 + $0x128] ss:$16 sps:$4 sm:$0xff]  }
 0x23f   : > { %6818 = vmatprep.subr.bf16.mxu1 %v9463_v19  ;;  %v9496_v19 = vld [vmem:[%s10605_s29 + $0x1d44] ss:$16 sps:$4 sm:$0xff]  }
 0x241   : > { %6778 = vmatpush1.bf16.msra.mxu0 %v9458_v20  ;;  %v9499_v20 = vld [vmem:[%s10605_s29 + $0x14c] ss:$16 sps:$4 sm:$0xff]  }
 0x242   : > { %6819 = vmatpush1.bf16.msra.mxu1 %v9461_v21  ;;  %6779 = vmatprep.subr.bf16.mxu0 %v9466_v22  ;;  %v9494_v21 = vld [vmem:[%s10605_s29 + $0x1d40] ss:$16 sps:$4 sm:$0xff]   ;;  %v9497_v22 = vld [vmem:[%s10605_s29 + $0x148] ss:$16 sps:$4 sm:$0xff]  }
 0x243   : > { %6820 = vmatprep.subr.bf16.mxu1 %v9469_v27  ;;  %v6475_v32 = vpop.f32.mrb[12].mxu0  ;;  %v9502_v27 = vld [vmem:[%s10605_s29 + $0x1d64] ss:$16 sps:$4 sm:$0xff]  }
 0x244   : > { %v6516_v34 = vpop.f32.mrb[12].mxu1  ;;  %v6476_v55 = vadd.f32 %v6475_v32, %v11220_v43  ;;  %v6477_v33 = vpop.f32.mrb[13].mxu0  ;;  %v9478_v43 = vld [vmem:[%s10605_s29 + $0x1ce4] ss:$16 sps:$4 sm:$0xff]   ;;  %v9511_v32 = vld [vmem:[%s10605_s29 + $0x18c] ss:$16 sps:$4 sm:$0xff]  }
 0x245   : > { %v6518_v56 = vpop.f32.mrb[13].mxu1  ;;  %v6478_v45 = vadd.f32 %v6477_v33, %v11224_v51  ;;  %v6479_v58 = vpop.f32.mrb[14].mxu0  ;;  %6780 = vmatpush1.bf16.msra.mxu0 %v9464_v28  ;;  %v9476_v51 = vld [vmem:[%s10605_s29 + $0x1ce0] ss:$16 sps:$4 sm:$0xff]   ;;  %v9505_v28 = vld [vmem:[%s10605_s29 + $0x16c] ss:$16 sps:$4 sm:$0xff]  }
 0x246   : > { %v6520_v0 = vpop.f32.mrb[14].mxu1  ;;  %6821 = vmatpush1.bf16.msra.mxu1 %v9467_v29  ;;  %v11309_v1 = vadd.f32 %v6516_v34, %v6476_v55  ;;  %v6480_v4 = vpop.f32.mrb[15].mxu0  ;;  %6781 = vmatprep.subr.bf16.mxu0 %v9472_v30  ;;  %v9500_v29 = vld [vmem:[%s10605_s29 + $0x1d60] ss:$16 sps:$4 sm:$0xff]   ;;  %v9503_v30 = vld [vmem:[%s10605_s29 + $0x168] ss:$16 sps:$4 sm:$0xff]  }
 0x247   : > { %v6521_v5 = vpop.f32.mrb[15].mxu1  ;;  %6822 = vmatprep.subr.bf16.mxu1 %v9475_v31  ;;  %v11313_v54 = vadd.f32 %v6518_v56, %v6478_v45  ;;  %v9508_v31 = vld [vmem:[%s10605_s29 + $0x1d84] ss:$16 sps:$4 sm:$0xff]   ;;  %v9506_v34 = vld [vmem:[%s10605_s29 + $0x1d80] ss:$16 sps:$4 sm:$0xff]  }
 0x248   : > { %v9517_v55 = vld [vmem:[%s10605_s29 + $0x1ac] ss:$16 sps:$4 sm:$0xff]   ;;  %v9512_v33 = vld [vmem:[%s10605_s29 + $0x1da0] ss:$16 sps:$4 sm:$0xff]   ;;  %v9515_v56 = vld [vmem:[%s10605_s29 + $0x1a8] ss:$16 sps:$4 sm:$0xff]  }
 0x249   : > { %6782 = vmatpush1.bf16.msra.mxu0 %v9470_v36  ;;  %v9509_v36 = vld [vmem:[%s10605_s29 + $0x188] ss:$16 sps:$4 sm:$0xff]   ;;  %v9520_v45 = vld [vmem:[%s10605_s29 + $0x1dc4] ss:$16 sps:$4 sm:$0xff]   ;;  %v9523_v58 = vld [vmem:[%s10605_s29 + $0x1cc] ss:$16 sps:$4 sm:$0xff]  }
 0x24a   : > { %6823 = vmatpush1.bf16.msra.mxu1 %v9473_v44  ;;  %6783 = vmatprep.subr.bf16.mxu0 %v9478_v43  ;;  %v9514_v44 = vld [vmem:[%s10605_s29 + $0x1da4] ss:$16 sps:$4 sm:$0xff]   ;;  %v9518_v0 = vld [vmem:[%s10605_s29 + $0x1dc0] ss:$16 sps:$4 sm:$0xff]   ;;  %v9521_v4 = vld [vmem:[%s10605_s29 + $0x1c8] ss:$16 sps:$4 sm:$0xff]  }
 0x24b   : > { %6824 = vmatprep.subr.bf16.mxu1 %v9481_v35  ;;  %v9526_v5 = vld [vmem:[%s10605_s29 + $0x1de4] ss:$16 sps:$4 sm:$0xff]   ;;  %v9529_v43 = vld [vmem:[%s10605_s29 + $0x1ec] ss:$16 sps:$4 sm:$0xff]   ;;  %v9524_v35 = vld [vmem:[%s10605_s29 + $0x1de0] ss:$16 sps:$4 sm:$0xff]  }
 0x24d   : > { %6784 = vmatpush1.bf16.msra.mxu0 %v9476_v51  ;;  %v9527_v51 = vld [vmem:[%s10605_s29 + $0x1e8] ss:$16 sps:$4 sm:$0xff]  }
 0x24e   : > { %6825 = vmatpush1.bf16.msra.mxu1 %v9479_v9  ;;  %6785 = vmatprep.subr.bf16.mxu0 %v9484_v10  ;;  %v9534_v9 = vld [vmem:[%s10605_s29 + $0x20c] ss:$16 sps:$4 sm:$0xff]  }
 0x24f   : > { %6826 = vmatprep.subr.bf16.mxu1 %v9487_v11  ;;  %v9537_v10 = vld [vmem:[%s10605_s29 + $0x40c] ss:$16 sps:$4 sm:$0xff]   ;;  %v9532_v11 = vld [vmem:[%s10605_s29 + $0x208] ss:$16 sps:$4 sm:$0xff]  }
 0x251   : > { %6786 = vmatpush1.bf16.msra.mxu0 %v9482_v12  ;;  %v9535_v12 = vld [vmem:[%s10605_s29 + $0x408] ss:$16 sps:$4 sm:$0xff]  }
 0x252   : > { %6827 = vmatpush1.bf16.msra.mxu1 %v9485_v13  ;;  %6787 = vmatprep.subr.bf16.mxu0 %v9490_v14  ;;  %v11355_v13 = vcombine.low %v11263_v63, %v11263_v63  ;;  %v9540_v14 = vld [vmem:[%s10605_s29 + $0x22c] ss:$16 sps:$4 sm:$0xff]   ;;  %v9541_v63 = vld [vmem:[%s10605_s29 + $0x428] ss:$16 sps:$4 sm:$0xff]  }
 0x253   : > { %6828 = vmatprep.subr.bf16.mxu1 %v9493_v15  ;;  %v9543_v15 = vld [vmem:[%s10605_s29 + $0x42c] ss:$16 sps:$4 sm:$0xff]  }
 0x255   : > { %6788 = vmatpush1.bf16.msra.mxu0 %v9488_v16  ;;  %v9538_v16 = vld [vmem:[%s10605_s29 + $0x228] ss:$16 sps:$4 sm:$0xff]  }
 0x256   : > { %6829 = vmatpush1.bf16.msra.mxu1 %v9491_v48  ;;  %6789 = vmatprep.subr.bf16.mxu0 %v9496_v19  ;;  %v9546_v48 = vld [vmem:[%s10605_s29 + $0x24c] ss:$16 sps:$4 sm:$0xff]  }
 0x257   : > { %6830 = vmatprep.subr.bf16.mxu1 %v9499_v20  ;;  %v9549_v19 = vld [vmem:[%s10605_s29 + $0x44c] ss:$16 sps:$4 sm:$0xff]   ;;  %v9547_v20 = vld [vmem:[%s10605_s29 + $0x448] ss:$16 sps:$4 sm:$0xff]  }
 0x259   : > { %6790 = vmatpush1.bf16.msra.mxu0 %v9494_v21  ;;  %v9552_v21 = vld [vmem:[%s10605_s29 + $0x26c] ss:$16 sps:$4 sm:$0xff]  }
 0x25a   : > { %6831 = vmatpush1.bf16.msra.mxu1 %v9497_v22  ;;  %6791 = vmatprep.subr.bf16.mxu0 %v9502_v27  ;;  %v9555_v22 = vld [vmem:[%s10605_s29 + $0x46c] ss:$16 sps:$4 sm:$0xff]   ;;  %v9553_v27 = vld [vmem:[%s10605_s29 + $0x468] ss:$16 sps:$4 sm:$0xff]  }
 0x25b   : > { %6832 = vmatprep.subr.bf16.mxu1 %v9505_v28  ;;  %v9561_v28 = vld [vmem:[%s10605_s29 + $0x48c] ss:$16 sps:$4 sm:$0xff]  }
 0x25d   : > { %6792 = vmatpush1.bf16.msra.mxu0 %v9500_v29  ;;  %v9556_v29 = vld [vmem:[%s10605_s29 + $0x288] ss:$16 sps:$4 sm:$0xff]  }
 0x25e   : > { %6833 = vmatpush1.bf16.msra.mxu1 %v9503_v30  ;;  %6793 = vmatprep.subr.bf16.mxu0 %v9508_v31  ;;  %v9559_v30 = vld [vmem:[%s10605_s29 + $0x488] ss:$16 sps:$4 sm:$0xff]   ;;  %v9564_v31 = vld [vmem:[%s10605_s29 + $0x2ac] ss:$16 sps:$4 sm:$0xff]  }
 0x25f   : > { %6834 = vmatprep.subr.bf16.mxu1 %v9511_v32  ;;  %v9567_v32 = vld [vmem:[%s10605_s29 + $0x4ac] ss:$16 sps:$4 sm:$0xff]  }
 0x261   : > { %6794 = vmatpush1.bf16.msra.mxu0 %v9506_v34  ;;  %v9562_v34 = vld [vmem:[%s10605_s29 + $0x2a8] ss:$16 sps:$4 sm:$0xff]  }
 0x262   : > { %6835 = vmatpush1.bf16.msra.mxu1 %v9509_v36  ;;  %6795 = vmatprep.subr.bf16.mxu0 %v9514_v44  ;;  %v9565_v36 = vld [vmem:[%s10605_s29 + $0x4a8] ss:$16 sps:$4 sm:$0xff]   ;;  %v9570_v44 = vld [vmem:[%s10605_s29 + $0x2cc] ss:$16 sps:$4 sm:$0xff]  }
 0x263   : > { %6836 = vmatprep.subr.bf16.mxu1 %v9517_v55  ;;  %v9573_v55 = vld [vmem:[%s10605_s29 + $0x4cc] ss:$16 sps:$4 sm:$0xff]  }
 0x265   : > { %6796 = vmatpush1.bf16.msra.mxu0 %v9512_v33 }
 0x266   : > { %6837 = vmatpush1.bf16.msra.mxu1 %v9515_v56  ;;  %6797 = vmatprep.subr.bf16.mxu0 %v9520_v45  ;;  %v9568_v45 = vld [vmem:[%s10605_s29 + $0x2c8] ss:$16 sps:$4 sm:$0xff]  }
 0x267   : > { %6838 = vmatprep.subr.bf16.mxu1 %v9523_v58  ;;  %v9571_v58 = vld [vmem:[%s10605_s29 + $0x4c8] ss:$16 sps:$4 sm:$0xff]  }
 0x269   : > { %6798 = vmatpush1.bf16.msra.mxu0 %v9518_v0 }
 0x26a   : > { %6839 = vmatpush1.bf16.msra.mxu1 %v9521_v4  ;;  %6799 = vmatprep.subr.bf16.mxu0 %v9526_v5 }
 0x26b   : > { %6840 = vmatprep.subr.bf16.mxu1 %v9529_v43 }
 0x26d   : > { %6800 = vmatpush1.bf16.msra.mxu0 %v9524_v35 }
 0x26e   : > { %6841 = vmatpush1.bf16.msra.mxu1 %v9527_v51  ;;  %6851 = vmatprep.subr.bf16.mxu0 %v9534_v9 }
 0x26f   : > { %6892 = vmatprep.subr.bf16.mxu1 %v9537_v10 }
 0x270   : > { %6802 = vmatmul.mubr.bf16.vlgmr.msra.gmra.mrb[28].mxu0 %v11355_v13 }
 0x271   : > { %6843 = vmatmul.mubr.bf16.vlgmr.msra.gmra.mrb[28].mxu1 %v10710_v7  ;;  %6852 = vmatpush1.bf16.msra.mxu0 %v9532_v11  ;;  %v9544_v7 = vld [vmem:[%s10605_s29 + $0x248] ss:$16 sps:$4 sm:$0xff]  }
 0x272   : > { %6893 = vmatpush1.bf16.msra.mxu1 %v9535_v12  ;;  %6853 = vmatprep.subr.bf16.mxu0 %v9540_v14  ;;  %v9579_v12 = vld [vmem:[%s10605_s29 + $0x4ec] ss:$16 sps:$4 sm:$0xff]  }
 0x273   : > { %6894 = vmatprep.subr.bf16.mxu1 %v9543_v15  ;;  %6883 = vmatprep.mubr.bf16.mxu0 %v10688_v52  ;;  %v9550_v52 = vld [vmem:[%s10605_s29 + $0x268] ss:$16 sps:$4 sm:$0xff]  }
 0x274   : > { %6924 = vmatprep.mubr.bf16.mxu1 %v10750_v37  ;;  %v9558_v37 = vld [vmem:[%s10605_s29 + $0x28c] ss:$16 sps:$4 sm:$0xff]   ;;  %v9577_v15 = vld [vmem:[%s10605_s29 + $0x4e8] ss:$16 sps:$4 sm:$0xff]  }
 0x275   : > { %6854 = vmatpush1.bf16.msra.mxu0 %v9538_v16  ;;  %v9582_v16 = vld [vmem:[%s10605_s29 + $0x30c] ss:$16 sps:$4 sm:$0xff]  }
 0x276   : > { %6895 = vmatpush1.bf16.msra.mxu1 %v9541_v63  ;;  %6855 = vmatprep.subr.bf16.mxu0 %v9546_v48  ;;  %v9585_v63 = vld [vmem:[%s10605_s29 + $0x50c] ss:$16 sps:$4 sm:$0xff]   ;;  %v9580_v48 = vld [vmem:[%s10605_s29 + $0x308] ss:$16 sps:$4 sm:$0xff]  }
 0x277   : > { %6896 = vmatprep.subr.bf16.mxu1 %v9549_v19  ;;  %v9583_v19 = vld [vmem:[%s10605_s29 + $0x508] ss:$16 sps:$4 sm:$0xff]  }
 0x279   : > { %6856 = vmatpush1.bf16.msra.mxu0 %v9544_v7  ;;  %v9588_v7 = vld [vmem:[%s10605_s29 + $0x32c] ss:$16 sps:$4 sm:$0xff]  }
 0x27a   : > { %6897 = vmatpush1.bf16.msra.mxu1 %v9547_v20  ;;  %6857 = vmatprep.subr.bf16.mxu0 %v9552_v21  ;;  %v9591_v20 = vld [vmem:[%s10605_s29 + $0x52c] ss:$16 sps:$4 sm:$0xff]   ;;  %v9586_v21 = vld [vmem:[%s10605_s29 + $0x328] ss:$16 sps:$4 sm:$0xff]  }
 0x27b   : > { %6898 = vmatprep.subr.bf16.mxu1 %v9555_v22  ;;  %v9589_v22 = vld [vmem:[%s10605_s29 + $0x528] ss:$16 sps:$4 sm:$0xff]  }
 0x27d   : > { %6858 = vmatpush1.bf16.msra.mxu0 %v9550_v52  ;;  %v9594_v52 = vld [vmem:[%s10605_s29 + $0x34c] ss:$16 sps:$4 sm:$0xff]  }
 0x27e   : > { %6899 = vmatpush1.bf16.msra.mxu1 %v9553_v27  ;;  %6859 = vmatprep.subr.bf16.mxu0 %v9558_v37  ;;  %v9597_v27 = vld [vmem:[%s10605_s29 + $0x54c] ss:$16 sps:$4 sm:$0xff]   ;;  %v9592_v37 = vld [vmem:[%s10605_s29 + $0x348] ss:$16 sps:$4 sm:$0xff]  }
 0x27f   : > { %6900 = vmatprep.subr.bf16.mxu1 %v9561_v28  ;;  %v9595_v28 = vld [vmem:[%s10605_s29 + $0x548] ss:$16 sps:$4 sm:$0xff]  }
 0x281   : > { %6860 = vmatpush1.bf16.msra.mxu0 %v9556_v29  ;;  %v9600_v29 = vld [vmem:[%s10605_s29 + $0x36c] ss:$16 sps:$4 sm:$0xff]  }
 0x282   : > { %6901 = vmatpush1.bf16.msra.mxu1 %v9559_v30  ;;  %6861 = vmatprep.subr.bf16.mxu0 %v9564_v31  ;;  %v9603_v30 = vld [vmem:[%s10605_s29 + $0x56c] ss:$16 sps:$4 sm:$0xff]   ;;  %v9598_v31 = vld [vmem:[%s10605_s29 + $0x368] ss:$16 sps:$4 sm:$0xff]  }
 0x283   : > { %6902 = vmatprep.subr.bf16.mxu1 %v9567_v32  ;;  %v6557_v33 = vpop.f32.mrb[16].mxu0  ;;  %v9601_v32 = vld [vmem:[%s10605_s29 + $0x568] ss:$16 sps:$4 sm:$0xff]  }
 0x284   : > { %v6598_v56 = vpop.f32.mrb[16].mxu1  ;;  %v6558_v0 = vadd.f32 %v6557_v33, %v11309_v1  ;;  %v6559_v4 = vpop.f32.mrb[17].mxu0  ;;  %v9576_v1 = vld [vmem:[%s10605_s29 + $0x2ec] ss:$16 sps:$4 sm:$0xff]  }
 0x285   : > { %v6600_v5 = vpop.f32.mrb[17].mxu1  ;;  %v6560_v43 = vadd.f32 %v6559_v4, %v11313_v54  ;;  %v6561_v35 = vpop.f32.mrb[18].mxu0  ;;  %6862 = vmatpush1.bf16.msra.mxu0 %v9562_v34  ;;  %v9574_v54 = vld [vmem:[%s10605_s29 + $0x2e8] ss:$16 sps:$4 sm:$0xff]   ;;  %v9606_v34 = vld [vmem:[%s10605_s29 + $0x38c] ss:$16 sps:$4 sm:$0xff]  }
 0x286   : > { %v6602_v51 = vpop.f32.mrb[18].mxu1  ;;  %6903 = vmatpush1.bf16.msra.mxu1 %v9565_v36  ;;  %v11387_v9 = vadd.f32 %v6598_v56, %v6558_v0  ;;  %v6562_v10 = vpop.f32.mrb[19].mxu0  ;;  %6863 = vmatprep.subr.bf16.mxu0 %v9570_v44  ;;  %v9609_v36 = vld [vmem:[%s10605_s29 + $0x58c] ss:$16 sps:$4 sm:$0xff]   ;;  %v9604_v44 = vld [vmem:[%s10605_s29 + $0x388] ss:$16 sps:$4 sm:$0xff]  }
 0x287   : > { %v6603_v11 = vpop.f32.mrb[19].mxu1  ;;  %6904 = vmatprep.subr.bf16.mxu1 %v9573_v55  ;;  %v11391_v14 = vadd.f32 %v6600_v5, %v6560_v43  ;;  %v9607_v55 = vld [vmem:[%s10605_s29 + $0x588] ss:$16 sps:$4 sm:$0xff]   ;;  %v9612_v33 = vld [vmem:[%s10605_s29 + $0x3ac] ss:$16 sps:$4 sm:$0xff]  }
 0x288   : > { %v9615_v56 = vld [vmem:[%s10605_s29 + $0x5ac] ss:$16 sps:$4 sm:$0xff]   ;;  %v9616_v5 = vld [vmem:[%s10605_s29 + $0x3c8] ss:$16 sps:$4 sm:$0xff]  }
 0x289   : > { %6864 = vmatpush1.bf16.msra.mxu0 %v9568_v45  ;;  %v9610_v45 = vld [vmem:[%s10605_s29 + $0x3a8] ss:$16 sps:$4 sm:$0xff]   ;;  %v9618_v0 = vld [vmem:[%s10605_s29 + $0x3cc] ss:$16 sps:$4 sm:$0xff]  }
 0x28a   : > { %6905 = vmatpush1.bf16.msra.mxu1 %v9571_v58  ;;  %6865 = vmatprep.subr.bf16.mxu0 %v9576_v1  ;;  %v9613_v58 = vld [vmem:[%s10605_s29 + $0x5a8] ss:$16 sps:$4 sm:$0xff]   ;;  %v9621_v4 = vld [vmem:[%s10605_s29 + $0x5cc] ss:$16 sps:$4 sm:$0xff]  }
 0x28b   : > { %6906 = vmatprep.subr.bf16.mxu1 %v9579_v12  ;;  %v9619_v43 = vld [vmem:[%s10605_s29 + $0x5c8] ss:$16 sps:$4 sm:$0xff]   ;;  %v9624_v35 = vld [vmem:[%s10605_s29 + $0x3ec] ss:$16 sps:$4 sm:$0xff]  }
 0x28c   : > { %v9627_v51 = vld [vmem:[%s10605_s29 + $0x5ec] ss:$16 sps:$4 sm:$0xff]   ;;  %v9622_v10 = vld [vmem:[%s10605_s29 + $0x3e8] ss:$16 sps:$4 sm:$0xff]  }
 0x28d   : > { %6866 = vmatpush1.bf16.msra.mxu0 %v9574_v54  ;;  %v9625_v11 = vld [vmem:[%s10605_s29 + $0x5e8] ss:$16 sps:$4 sm:$0xff]   ;;  %v9630_v1 = vld [vmem:[%s10605_s29 + $0x60c] ss:$16 sps:$4 sm:$0xff]  }
 0x28e   : > { %6907 = vmatpush1.bf16.msra.mxu1 %v9577_v15  ;;  %6867 = vmatprep.subr.bf16.mxu0 %v9582_v16  ;;  %v9633_v12 = vld [vmem:[%s10605_s29 + $0x80c] ss:$16 sps:$4 sm:$0xff]   ;;  %v9628_v54 = vld [vmem:[%s10605_s29 + $0x608] ss:$16 sps:$4 sm:$0xff]  }
 0x28f   : > { %6908 = vmatprep.subr.bf16.mxu1 %v9585_v63  ;;  %v9631_v15 = vld [vmem:[%s10605_s29 + $0x808] ss:$16 sps:$4 sm:$0xff]   ;;  %v9636_v16 = vld [vmem:[%s10605_s29 + $0x62c] ss:$16 sps:$4 sm:$0xff]  }
 0x290   : > { %v9639_v63 = vld [vmem:[%s10605_s29 + $0x82c] ss:$16 sps:$4 sm:$0xff]  }
 0x291   : > { %6868 = vmatpush1.bf16.msra.mxu0 %v9580_v48  ;;  %v9634_v48 = vld [vmem:[%s10605_s29 + $0x628] ss:$16 sps:$4 sm:$0xff]  }
 0x292   : > { %6909 = vmatpush1.bf16.msra.mxu1 %v9583_v19  ;;  %6869 = vmatprep.subr.bf16.mxu0 %v9588_v7  ;;  %v9637_v19 = vld [vmem:[%s10605_s29 + $0x828] ss:$16 sps:$4 sm:$0xff]   ;;  %v9642_v7 = vld [vmem:[%s10605_s29 + $0x64c] ss:$16 sps:$4 sm:$0xff]  }
 0x293   : > { %6910 = vmatprep.subr.bf16.mxu1 %v9591_v20  ;;  %v9645_v20 = vld [vmem:[%s10605_s29 + $0x84c] ss:$16 sps:$4 sm:$0xff]  }
 0x295   : > { %6870 = vmatpush1.bf16.msra.mxu0 %v9586_v21  ;;  %v9648_v21 = vld [vmem:[%s10605_s29 + $0x66c] ss:$16 sps:$4 sm:$0xff]  }
 0x296   : > { %6911 = vmatpush1.bf16.msra.mxu1 %v9589_v22  ;;  %6871 = vmatprep.subr.bf16.mxu0 %v9594_v52  ;;  %v9651_v22 = vld [vmem:[%s10605_s29 + $0x86c] ss:$16 sps:$4 sm:$0xff]   ;;  %v9646_v52 = vld [vmem:[%s10605_s29 + $0x668] ss:$16 sps:$4 sm:$0xff]  }
 0x297   : > { %6912 = vmatprep.subr.bf16.mxu1 %v9597_v27  ;;  %v9657_v27 = vld [vmem:[%s10605_s29 + $0x88c] ss:$16 sps:$4 sm:$0xff]  }
 0x299   : > { %6872 = vmatpush1.bf16.msra.mxu0 %v9592_v37  ;;  %v9652_v37 = vld [vmem:[%s10605_s29 + $0x688] ss:$16 sps:$4 sm:$0xff]  }
 0x29a   : > { %6913 = vmatpush1.bf16.msra.mxu1 %v9595_v28  ;;  %6873 = vmatprep.subr.bf16.mxu0 %v9600_v29  ;;  %v9655_v28 = vld [vmem:[%s10605_s29 + $0x888] ss:$16 sps:$4 sm:$0xff]   ;;  %v9660_v29 = vld [vmem:[%s10605_s29 + $0x6ac] ss:$16 sps:$4 sm:$0xff]  }
 0x29b   : > { %6914 = vmatprep.subr.bf16.mxu1 %v9603_v30  ;;  %v9663_v30 = vld [vmem:[%s10605_s29 + $0x8ac] ss:$16 sps:$4 sm:$0xff]  }
 0x29d   : > { %6874 = vmatpush1.bf16.msra.mxu0 %v9598_v31  ;;  %v9658_v31 = vld [vmem:[%s10605_s29 + $0x6a8] ss:$16 sps:$4 sm:$0xff]  }
 0x29e   : > { %6915 = vmatpush1.bf16.msra.mxu1 %v9601_v32  ;;  %6875 = vmatprep.subr.bf16.mxu0 %v9606_v34  ;;  %v9661_v32 = vld [vmem:[%s10605_s29 + $0x8a8] ss:$16 sps:$4 sm:$0xff]   ;;  %v9666_v34 = vld [vmem:[%s10605_s29 + $0x6cc] ss:$16 sps:$4 sm:$0xff]  }
 0x29f   : > { %6916 = vmatprep.subr.bf16.mxu1 %v9609_v36  ;;  %v9669_v36 = vld [vmem:[%s10605_s29 + $0x8cc] ss:$16 sps:$4 sm:$0xff]  }
 0x2a1   : > { %6876 = vmatpush1.bf16.msra.mxu0 %v9604_v44 }
 0x2a2   : > { %6917 = vmatpush1.bf16.msra.mxu1 %v9607_v55  ;;  %6877 = vmatprep.subr.bf16.mxu0 %v9612_v33 }
 0x2a3   : > { %6918 = vmatprep.subr.bf16.mxu1 %v9615_v56 }
 0x2a5   : > { %6878 = vmatpush1.bf16.msra.mxu0 %v9610_v45 }
 0x2a6   : > { %6919 = vmatpush1.bf16.msra.mxu1 %v9613_v58  ;;  %6879 = vmatprep.subr.bf16.mxu0 %v9618_v0 }
 0x2a7   : > { %6920 = vmatprep.subr.bf16.mxu1 %v9621_v4 }
 0x2a9   : > { %6880 = vmatpush1.bf16.msra.mxu0 %v9616_v5  ;;  %v9664_v5 = vld [vmem:[%s10605_s29 + $0x6c8] ss:$16 sps:$4 sm:$0xff]  }
 0x2aa   : > { %6921 = vmatpush1.bf16.msra.mxu1 %v9619_v43  ;;  %6881 = vmatprep.subr.bf16.mxu0 %v9624_v35  ;;  %v9667_v43 = vld [vmem:[%s10605_s29 + $0x8c8] ss:$16 sps:$4 sm:$0xff]  }
 0x2ab   : > { %6922 = vmatprep.subr.bf16.mxu1 %v9627_v51 }
 0x2ad   : > { %6882 = vmatpush1.bf16.msra.mxu0 %v9622_v10 }
 0x2ae   : > { %6923 = vmatpush1.bf16.msra.mxu1 %v9625_v11  ;;  %6933 = vmatprep.subr.bf16.mxu0 %v9630_v1  ;;  %v9670_v1 = vld [vmem:[%s10605_s29 + $0x6e8] ss:$16 sps:$4 sm:$0xff]  }
 0x2af   : > { %6974 = vmatprep.subr.bf16.mxu1 %v9633_v12  ;;  %v9673_v12 = vld [vmem:[%s10605_s29 + $0x8e8] ss:$16 sps:$4 sm:$0xff]  }
 0x2b0   : > { %6884 = vmatmul.mubr.bf16.vlgmr.msra.gmra.mrb[32].mxu0 %v10712_v8  ;;  %v9640_v8 = vld [vmem:[%s10605_s29 + $0x648] ss:$16 sps:$4 sm:$0xff]  }
 0x2b1   : > { %6925 = vmatmul.mubr.bf16.vlgmr.msra.gmra.mrb[32].mxu1 %v10798_v17  ;;  %6934 = vmatpush1.bf16.msra.mxu0 %v9628_v54  ;;  %v9643_v17 = vld [vmem:[%s10605_s29 + $0x848] ss:$16 sps:$4 sm:$0xff]   ;;  %v9678_v54 = vld [vmem:[%s10605_s29 + $0x70c] ss:$16 sps:$4 sm:$0xff]  }
 0x2b2   : > { %6975 = vmatpush1.bf16.msra.mxu1 %v9631_v15  ;;  %6935 = vmatprep.subr.bf16.mxu0 %v9636_v16  ;;  %v9681_v15 = vld [vmem:[%s10605_s29 + $0x90c] ss:$16 sps:$4 sm:$0xff]   ;;  %v9676_v16 = vld [vmem:[%s10605_s29 + $0x708] ss:$16 sps:$4 sm:$0xff]  }
 0x2b3   : > { %6976 = vmatprep.subr.bf16.mxu1 %v9639_v63  ;;  %6965 = vmatprep.mubr.bf16.mxu0 %v10754_v38  ;;  %v9649_v38 = vld [vmem:[%s10605_s29 + $0x868] ss:$16 sps:$4 sm:$0xff]  }
 0x2b4   : > { %7006 = vmatprep.mubr.bf16.mxu1 %v10816_v25  ;;  %v9654_v25 = vld [vmem:[%s10605_s29 + $0x68c] ss:$16 sps:$4 sm:$0xff]   ;;  %v9679_v63 = vld [vmem:[%s10605_s29 + $0x908] ss:$16 sps:$4 sm:$0xff]  }
 0x2b5   : > { %6936 = vmatpush1.bf16.msra.mxu0 %v9634_v48  ;;  %v9684_v48 = vld [vmem:[%s10605_s29 + $0x72c] ss:$16 sps:$4 sm:$0xff]  }
 0x2b6   : > { %6977 = vmatpush1.bf16.msra.mxu1 %v9637_v19  ;;  %6937 = vmatprep.subr.bf16.mxu0 %v9642_v7  ;;  %v9687_v19 = vld [vmem:[%s10605_s29 + $0x92c] ss:$16 sps:$4 sm:$0xff]   ;;  %v9682_v7 = vld [vmem:[%s10605_s29 + $0x728] ss:$16 sps:$4 sm:$0xff]  }
 0x2b7   : > { %6978 = vmatprep.subr.bf16.mxu1 %v9645_v20  ;;  %v9685_v20 = vld [vmem:[%s10605_s29 + $0x928] ss:$16 sps:$4 sm:$0xff]  }
 0x2b9   : > { %6938 = vmatpush1.bf16.msra.mxu0 %v9640_v8  ;;  %v9690_v8 = vld [vmem:[%s10605_s29 + $0x74c] ss:$16 sps:$4 sm:$0xff]  }
 0x2ba   : > { %6979 = vmatpush1.bf16.msra.mxu1 %v9643_v17  ;;  %6939 = vmatprep.subr.bf16.mxu0 %v9648_v21  ;;  %v9693_v17 = vld [vmem:[%s10605_s29 + $0x94c] ss:$16 sps:$4 sm:$0xff]   ;;  %v9688_v21 = vld [vmem:[%s10605_s29 + $0x748] ss:$16 sps:$4 sm:$0xff]  }
 0x2bb   : > { %6980 = vmatprep.subr.bf16.mxu1 %v9651_v22  ;;  %v9691_v22 = vld [vmem:[%s10605_s29 + $0x948] ss:$16 sps:$4 sm:$0xff]  }
 0x2bd   : > { %6940 = vmatpush1.bf16.msra.mxu0 %v9646_v52  ;;  %v9696_v52 = vld [vmem:[%s10605_s29 + $0x76c] ss:$16 sps:$4 sm:$0xff]  }
 0x2be   : > { %6981 = vmatpush1.bf16.msra.mxu1 %v9649_v38  ;;  %6941 = vmatprep.subr.bf16.mxu0 %v9654_v25  ;;  %v9699_v38 = vld [vmem:[%s10605_s29 + $0x96c] ss:$16 sps:$4 sm:$0xff]   ;;  %v9694_v25 = vld [vmem:[%s10605_s29 + $0x768] ss:$16 sps:$4 sm:$0xff]  }
 0x2bf   : > { %6982 = vmatprep.subr.bf16.mxu1 %v9657_v27  ;;  %v9697_v27 = vld [vmem:[%s10605_s29 + $0x968] ss:$16 sps:$4 sm:$0xff]  }
 0x2c1   : > { %6942 = vmatpush1.bf16.msra.mxu0 %v9652_v37  ;;  %v9702_v37 = vld [vmem:[%s10605_s29 + $0x78c] ss:$16 sps:$4 sm:$0xff]  }
 0x2c2   : > { %6983 = vmatpush1.bf16.msra.mxu1 %v9655_v28  ;;  %6943 = vmatprep.subr.bf16.mxu0 %v9660_v29  ;;  %v9705_v28 = vld [vmem:[%s10605_s29 + $0x98c] ss:$16 sps:$4 sm:$0xff]   ;;  %v9700_v29 = vld [vmem:[%s10605_s29 + $0x788] ss:$16 sps:$4 sm:$0xff]  }
 0x2c3   : > { %6984 = vmatprep.subr.bf16.mxu1 %v9663_v30  ;;  %v6639_v44 = vpop.f32.mrb[20].mxu0  ;;  %v9703_v30 = vld [vmem:[%s10605_s29 + $0x988] ss:$16 sps:$4 sm:$0xff]  }
 0x2c4   : > { %v6680_v55 = vpop.f32.mrb[20].mxu1  ;;  %v6640_v33 = vadd.f32 %v6639_v44, %v11387_v9  ;;  %v6641_v56 = vpop.f32.mrb[21].mxu0  ;;  %v9672_v9 = vld [vmem:[%s10605_s29 + $0x6ec] ss:$16 sps:$4 sm:$0xff]  }
 0x2c5   : > { %v6682_v45 = vpop.f32.mrb[21].mxu1  ;;  %v6642_v58 = vadd.f32 %v6641_v56, %v11391_v14  ;;  %v6643_v0 = vpop.f32.mrb[22].mxu0  ;;  %6944 = vmatpush1.bf16.msra.mxu0 %v9658_v31  ;;  %v9675_v14 = vld [vmem:[%s10605_s29 + $0x8ec] ss:$16 sps:$4 sm:$0xff]   ;;  %v9715_v56 = vld [vmem:[%s10605_s29 + $0x9c8] ss:$16 sps:$4 sm:$0xff]  }
 0x2c6   : > { %v6684_v4 = vpop.f32.mrb[22].mxu1  ;;  %6985 = vmatpush1.bf16.msra.mxu1 %v9661_v32  ;;  %v11461_v35 = vadd.f32 %v6680_v55, %v6640_v33  ;;  %v6644_v51 = vpop.f32.mrb[23].mxu0  ;;  %6945 = vmatprep.subr.bf16.mxu0 %v9666_v34  ;;  %v9708_v31 = vld [vmem:[%s10605_s29 + $0x7ac] ss:$16 sps:$4 sm:$0xff]   ;;  %v9706_v34 = vld [vmem:[%s10605_s29 + $0x7a8] ss:$16 sps:$4 sm:$0xff]  }
 0x2c7   : > { %v6685_v10 = vpop.f32.mrb[23].mxu1  ;;  %6986 = vmatprep.subr.bf16.mxu1 %v9669_v36  ;;  %v11465_v11 = vadd.f32 %v6682_v45, %v6642_v58  ;;  %v9711_v32 = vld [vmem:[%s10605_s29 + $0x9ac] ss:$16 sps:$4 sm:$0xff]   ;;  %v9709_v36 = vld [vmem:[%s10605_s29 + $0x9a8] ss:$16 sps:$4 sm:$0xff]  }
 0x2c8   : > { %v9714_v44 = vld [vmem:[%s10605_s29 + $0x7cc] ss:$16 sps:$4 sm:$0xff]   ;;  %v9712_v33 = vld [vmem:[%s10605_s29 + $0x7c8] ss:$16 sps:$4 sm:$0xff]  }
 0x2c9   : > { %6946 = vmatpush1.bf16.msra.mxu0 %v9664_v5  ;;  %v9717_v55 = vld [vmem:[%s10605_s29 + $0x9cc] ss:$16 sps:$4 sm:$0xff]   ;;  %v9718_v0 = vld [vmem:[%s10605_s29 + $0x7e8] ss:$16 sps:$4 sm:$0xff]  }
 0x2ca   : > { %6987 = vmatpush1.bf16.msra.mxu1 %v9667_v43  ;;  %6947 = vmatprep.subr.bf16.mxu0 %v9672_v9  ;;  %v9720_v45 = vld [vmem:[%s10605_s29 + $0x7ec] ss:$16 sps:$4 sm:$0xff]   ;;  %v9721_v4 = vld [vmem:[%s10605_s29 + $0x9e8] ss:$16 sps:$4 sm:$0xff]  }
 0x2cb   : > { %6988 = vmatprep.subr.bf16.mxu1 %v9675_v14  ;;  %v9723_v58 = vld [vmem:[%s10605_s29 + $0x9ec] ss:$16 sps:$4 sm:$0xff]   ;;  %v9724_v51 = vld [vmem:[%s10605_s29 + $0xa08] ss:$16 sps:$4 sm:$0xff]  }
 0x2cc   : > { %v9726_v5 = vld [vmem:[%s10605_s29 + $0xa0c] ss:$16 sps:$4 sm:$0xff]   ;;  %v9727_v10 = vld [vmem:[%s10605_s29 + $0xc08] ss:$16 sps:$4 sm:$0xff]  }
 0x2cd   : > { %6948 = vmatpush1.bf16.msra.mxu0 %v9670_v1  ;;  %v9729_v43 = vld [vmem:[%s10605_s29 + $0xc0c] ss:$16 sps:$4 sm:$0xff]   ;;  %v9730_v1 = vld [vmem:[%s10605_s29 + $0xa28] ss:$16 sps:$4 sm:$0xff]  }
 0x2ce   : > { %6989 = vmatpush1.bf16.msra.mxu1 %v9673_v12  ;;  %6949 = vmatprep.subr.bf16.mxu0 %v9678_v54  ;;  %v9732_v9 = vld [vmem:[%s10605_s29 + $0xa2c] ss:$16 sps:$4 sm:$0xff]   ;;  %v9733_v12 = vld [vmem:[%s10605_s29 + $0xc28] ss:$16 sps:$4 sm:$0xff]  }
 0x2cf   : > { %6990 = vmatprep.subr.bf16.mxu1 %v9681_v15  ;;  %v9735_v14 = vld [vmem:[%s10605_s29 + $0xc2c] ss:$16 sps:$4 sm:$0xff]  }
 0x2d0   : > { %v9738_v54 = vld [vmem:[%s10605_s29 + $0xa4c] ss:$16 sps:$4 sm:$0xff]  }
 0x2d1   : > { %6950 = vmatpush1.bf16.msra.mxu0 %v9676_v16  ;;  %v9741_v15 = vld [vmem:[%s10605_s29 + $0xc4c] ss:$16 sps:$4 sm:$0xff]  }
 0x2d2   : > { %6991 = vmatpush1.bf16.msra.mxu1 %v9679_v63  ;;  %6951 = vmatprep.subr.bf16.mxu0 %v9684_v48  ;;  %v9744_v16 = vld [vmem:[%s10605_s29 + $0xa6c] ss:$16 sps:$4 sm:$0xff]   ;;  %v9742_v48 = vld [vmem:[%s10605_s29 + $0xa68] ss:$16 sps:$4 sm:$0xff]  }
 0x2d3   : > { %6992 = vmatprep.subr.bf16.mxu1 %v9687_v19  ;;  %v9747_v63 = vld [vmem:[%s10605_s29 + $0xc6c] ss:$16 sps:$4 sm:$0xff]  }
 0x2d4   : > { %v9753_v19 = vld [vmem:[%s10605_s29 + $0xc8c] ss:$16 sps:$4 sm:$0xff]  }
 0x2d5   : > { %6952 = vmatpush1.bf16.msra.mxu0 %v9682_v7  ;;  %v9748_v7 = vld [vmem:[%s10605_s29 + $0xa88] ss:$16 sps:$4 sm:$0xff]  }
 0x2d6   : > { %6993 = vmatpush1.bf16.msra.mxu1 %v9685_v20  ;;  %6953 = vmatprep.subr.bf16.mxu0 %v9690_v8  ;;  %v9751_v20 = vld [vmem:[%s10605_s29 + $0xc88] ss:$16 sps:$4 sm:$0xff]   ;;  %v9756_v8 = vld [vmem:[%s10605_s29 + $0xaac] ss:$16 sps:$4 sm:$0xff]  }
 0x2d7   : > { %6994 = vmatprep.subr.bf16.mxu1 %v9693_v17  ;;  %v9759_v17 = vld [vmem:[%s10605_s29 + $0xcac] ss:$16 sps:$4 sm:$0xff]  }
 0x2d9   : > { %6954 = vmatpush1.bf16.msra.mxu0 %v9688_v21  ;;  %v9754_v21 = vld [vmem:[%s10605_s29 + $0xaa8] ss:$16 sps:$4 sm:$0xff]  }
 0x2da   : > { %6995 = vmatpush1.bf16.msra.mxu1 %v9691_v22  ;;  %6955 = vmatprep.subr.bf16.mxu0 %v9696_v52  ;;  %v9757_v22 = vld [vmem:[%s10605_s29 + $0xca8] ss:$16 sps:$4 sm:$0xff]   ;;  %v9762_v52 = vld [vmem:[%s10605_s29 + $0xacc] ss:$16 sps:$4 sm:$0xff]  }
 0x2db   : > { %6996 = vmatprep.subr.bf16.mxu1 %v9699_v38  ;;  %v9765_v38 = vld [vmem:[%s10605_s29 + $0xccc] ss:$16 sps:$4 sm:$0xff]  }
 0x2dd   : > { %6956 = vmatpush1.bf16.msra.mxu0 %v9694_v25 }
 0x2de   : > { %6997 = vmatpush1.bf16.msra.mxu1 %v9697_v27  ;;  %6957 = vmatprep.subr.bf16.mxu0 %v9702_v37 }
 0x2df   : > { %6998 = vmatprep.subr.bf16.mxu1 %v9705_v28 }
 0x2e1   : > { %6958 = vmatpush1.bf16.msra.mxu0 %v9700_v29 }
 0x2e2   : > { %6999 = vmatpush1.bf16.msra.mxu1 %v9703_v30  ;;  %6959 = vmatprep.subr.bf16.mxu0 %v9708_v31 }
 0x2e3   : > { %7000 = vmatprep.subr.bf16.mxu1 %v9711_v32 }
 0x2e5   : > { %6960 = vmatpush1.bf16.msra.mxu0 %v9706_v34  ;;  %v9760_v34 = vld [vmem:[%s10605_s29 + $0xac8] ss:$16 sps:$4 sm:$0xff]  }
 0x2e6   : > { %7001 = vmatpush1.bf16.msra.mxu1 %v9709_v36  ;;  %6961 = vmatprep.subr.bf16.mxu0 %v9714_v44  ;;  %v9763_v36 = vld [vmem:[%s10605_s29 + $0xcc8] ss:$16 sps:$4 sm:$0xff]  }
 0x2e7   : > { %7002 = vmatprep.subr.bf16.mxu1 %v9717_v55 }
 0x2e9   : > { %6962 = vmatpush1.bf16.msra.mxu0 %v9712_v33 }
 0x2ea   : > { %7003 = vmatpush1.bf16.msra.mxu1 %v9715_v56  ;;  %6963 = vmatprep.subr.bf16.mxu0 %v9720_v45  ;;  %v9766_v45 = vld [vmem:[%s10605_s29 + $0xae8] ss:$16 sps:$4 sm:$0xff]  }
 0x2eb   : > { %7004 = vmatprep.subr.bf16.mxu1 %v9723_v58  ;;  %v9769_v58 = vld [vmem:[%s10605_s29 + $0xce8] ss:$16 sps:$4 sm:$0xff]  }
 0x2ed   : > { %6964 = vmatpush1.bf16.msra.mxu0 %v9718_v0  ;;  %v9774_v0 = vld [vmem:[%s10605_s29 + $0xb0c] ss:$16 sps:$4 sm:$0xff]  }
 0x2ee   : > { %7005 = vmatpush1.bf16.msra.mxu1 %v9721_v4  ;;  %7015 = vmatprep.subr.bf16.mxu0 %v9726_v5  ;;  %v9777_v4 = vld [vmem:[%s10605_s29 + $0xd0c] ss:$16 sps:$4 sm:$0xff]   ;;  %v9772_v5 = vld [vmem:[%s10605_s29 + $0xb08] ss:$16 sps:$4 sm:$0xff]  }
 0x2ef   : > { %7056 = vmatprep.subr.bf16.mxu1 %v9729_v43  ;;  %v9775_v43 = vld [vmem:[%s10605_s29 + $0xd08] ss:$16 sps:$4 sm:$0xff]  }
 0x2f0   : > { %6966 = vmatmul.mubr.bf16.vlgmr.msra.gmra.mrb[36].mxu0 %v10802_v18  ;;  %v9736_v18 = vld [vmem:[%s10605_s29 + $0xa48] ss:$16 sps:$4 sm:$0xff]  }
 0x2f1   : > { %7007 = vmatmul.mubr.bf16.vlgmr.msra.gmra.mrb[36].mxu1 %v10890_v39  ;;  %7016 = vmatpush1.bf16.msra.mxu0 %v9724_v51  ;;  %v9739_v39 = vld [vmem:[%s10605_s29 + $0xc48] ss:$16 sps:$4 sm:$0xff]   ;;  %v9780_v51 = vld [vmem:[%s10605_s29 + $0xb2c] ss:$16 sps:$4 sm:$0xff]  }
 0x2f2   : > { %7057 = vmatpush1.bf16.msra.mxu1 %v9727_v10  ;;  %7017 = vmatprep.subr.bf16.mxu0 %v9732_v9  ;;  %v9783_v10 = vld [vmem:[%s10605_s29 + $0xd2c] ss:$16 sps:$4 sm:$0xff]   ;;  %v9778_v9 = vld [vmem:[%s10605_s29 + $0xb28] ss:$16 sps:$4 sm:$0xff]  }
 0x2f3   : > { %7058 = vmatprep.subr.bf16.mxu1 %v9735_v14  ;;  %7047 = vmatprep.mubr.bf16.mxu0 %v10820_v26  ;;  %v9745_v26 = vld [vmem:[%s10605_s29 + $0xc68] ss:$16 sps:$4 sm:$0xff]  }
 0x2f4   : > { %7088 = vmatprep.mubr.bf16.mxu1 %v10906_v23  ;;  %v9750_v23 = vld [vmem:[%s10605_s29 + $0xa8c] ss:$16 sps:$4 sm:$0xff]   ;;  %v9781_v14 = vld [vmem:[%s10605_s29 + $0xd28] ss:$16 sps:$4 sm:$0xff]  }
 0x2f5   : > { %7018 = vmatpush1.bf16.msra.mxu0 %v9730_v1  ;;  %v9786_v1 = vld [vmem:[%s10605_s29 + $0xb4c] ss:$16 sps:$4 sm:$0xff]  }
 0x2f6   : > { %7059 = vmatpush1.bf16.msra.mxu1 %v9733_v12  ;;  %7019 = vmatprep.subr.bf16.mxu0 %v9738_v54  ;;  %v9789_v12 = vld [vmem:[%s10605_s29 + $0xd4c] ss:$16 sps:$4 sm:$0xff]   ;;  %v9784_v54 = vld [vmem:[%s10605_s29 + $0xb48] ss:$16 sps:$4 sm:$0xff]  }
 0x2f7   : > { %7060 = vmatprep.subr.bf16.mxu1 %v9741_v15  ;;  %v9787_v15 = vld [vmem:[%s10605_s29 + $0xd48] ss:$16 sps:$4 sm:$0xff]  }
 0x2f9   : > { %7020 = vmatpush1.bf16.msra.mxu0 %v9736_v18  ;;  %v9792_v18 = vld [vmem:[%s10605_s29 + $0xb6c] ss:$16 sps:$4 sm:$0xff]  }
 0x2fa   : > { %7061 = vmatpush1.bf16.msra.mxu1 %v9739_v39  ;;  %7021 = vmatprep.subr.bf16.mxu0 %v9744_v16  ;;  %v9795_v39 = vld [vmem:[%s10605_s29 + $0xd6c] ss:$16 sps:$4 sm:$0xff]   ;;  %v9790_v16 = vld [vmem:[%s10605_s29 + $0xb68] ss:$16 sps:$4 sm:$0xff]  }
 0x2fb   : > { %7062 = vmatprep.subr.bf16.mxu1 %v9747_v63  ;;  %v9793_v63 = vld [vmem:[%s10605_s29 + $0xd68] ss:$16 sps:$4 sm:$0xff]  }
 0x2fd   : > { %7022 = vmatpush1.bf16.msra.mxu0 %v9742_v48  ;;  %v9798_v48 = vld [vmem:[%s10605_s29 + $0xb8c] ss:$16 sps:$4 sm:$0xff]  }
 0x2fe   : > { %7063 = vmatpush1.bf16.msra.mxu1 %v9745_v26  ;;  %7023 = vmatprep.subr.bf16.mxu0 %v9750_v23  ;;  %v9801_v26 = vld [vmem:[%s10605_s29 + $0xd8c] ss:$16 sps:$4 sm:$0xff]   ;;  %v9796_v23 = vld [vmem:[%s10605_s29 + $0xb88] ss:$16 sps:$4 sm:$0xff]  }
 0x2ff   : > { %7064 = vmatprep.subr.bf16.mxu1 %v9753_v19  ;;  %v9799_v19 = vld [vmem:[%s10605_s29 + $0xd88] ss:$16 sps:$4 sm:$0xff]  }
 0x301   : > { %7024 = vmatpush1.bf16.msra.mxu0 %v9748_v7  ;;  %v9804_v7 = vld [vmem:[%s10605_s29 + $0xbac] ss:$16 sps:$4 sm:$0xff]  }
 0x302   : > { %7065 = vmatpush1.bf16.msra.mxu1 %v9751_v20  ;;  %7025 = vmatprep.subr.bf16.mxu0 %v9756_v8  ;;  %v9807_v20 = vld [vmem:[%s10605_s29 + $0xdac] ss:$16 sps:$4 sm:$0xff]   ;;  %v9802_v8 = vld [vmem:[%s10605_s29 + $0xba8] ss:$16 sps:$4 sm:$0xff]  }
 0x303   : > { %7066 = vmatprep.subr.bf16.mxu1 %v9759_v17  ;;  %v6721_v25 = vpop.f32.mrb[24].mxu0  ;;  %v9805_v17 = vld [vmem:[%s10605_s29 + $0xda8] ss:$16 sps:$4 sm:$0xff]  }
 0x304   : > { %v6762_v27 = vpop.f32.mrb[24].mxu1  ;;  %v6722_v37 = vadd.f32 %v6721_v25, %v11461_v35  ;;  %v6723_v28 = vpop.f32.mrb[25].mxu0  ;;  %v9768_v35 = vld [vmem:[%s10605_s29 + $0xaec] ss:$16 sps:$4 sm:$0xff]  }
 0x305   : > { %v6764_v29 = vpop.f32.mrb[25].mxu1  ;;  %v6724_v30 = vadd.f32 %v6723_v28, %v11465_v11  ;;  %v6725_v31 = vpop.f32.mrb[26].mxu0  ;;  %7026 = vmatpush1.bf16.msra.mxu0 %v9754_v21  ;;  %v9771_v11 = vld [vmem:[%s10605_s29 + $0xcec] ss:$16 sps:$4 sm:$0xff]   ;;  %v9817_v28 = vld [vmem:[%s10605_s29 + $0xde8] ss:$16 sps:$4 sm:$0xff]  }
 0x306   : > { %v6766_v32 = vpop.f32.mrb[26].mxu1  ;;  %7067 = vmatpush1.bf16.msra.mxu1 %v9757_v22  ;;  %v11535_v44 = vadd.f32 %v6762_v27, %v6722_v37  ;;  %v6726_v55 = vpop.f32.mrb[27].mxu0  ;;  %7027 = vmatprep.subr.bf16.mxu0 %v9762_v52  ;;  %v9810_v21 = vld [vmem:[%s10605_s29 + $0xbcc] ss:$16 sps:$4 sm:$0xff]   ;;  %v9808_v52 = vld [vmem:[%s10605_s29 + $0xbc8] ss:$16 sps:$4 sm:$0xff]  }
 0x307   : > { %v6767_v33 = vpop.f32.mrb[27].mxu1  ;;  %7068 = vmatprep.subr.bf16.mxu1 %v9765_v38  ;;  %v11539_v56 = vadd.f32 %v6764_v29, %v6724_v30  ;;  %v9813_v22 = vld [vmem:[%s10605_s29 + $0xdcc] ss:$16 sps:$4 sm:$0xff]   ;;  %v9811_v38 = vld [vmem:[%s10605_s29 + $0xdc8] ss:$16 sps:$4 sm:$0xff]  }
 0x308   : > { %v9816_v25 = vld [vmem:[%s10605_s29 + $0xbec] ss:$16 sps:$4 sm:$0xff]   ;;  %v9814_v37 = vld [vmem:[%s10605_s29 + $0xbe8] ss:$16 sps:$4 sm:$0xff]  }
 0x309   : > { %7028 = vmatpush1.bf16.msra.mxu0 %v9760_v34  ;;  %v9819_v27 = vld [vmem:[%s10605_s29 + $0xdec] ss:$16 sps:$4 sm:$0xff]   ;;  %v9820_v31 = vld [vmem:[%s10605_s29 + $0xe08] ss:$16 sps:$4 sm:$0xff]  }
 0x30a   : > { %7069 = vmatpush1.bf16.msra.mxu1 %v9763_v36  ;;  %7029 = vmatprep.subr.bf16.mxu0 %v9768_v35  ;;  %v9822_v29 = vld [vmem:[%s10605_s29 + $0xe0c] ss:$16 sps:$4 sm:$0xff]   ;;  %v9823_v32 = vld [vmem:[%s10605_s29 + $0x1008] ss:$16 sps:$4 sm:$0xff]  }
 0x30b   : > { %7070 = vmatprep.subr.bf16.mxu1 %v9771_v11  ;;  %v9825_v30 = vld [vmem:[%s10605_s29 + $0x100c] ss:$16 sps:$4 sm:$0xff]   ;;  %v9826_v55 = vld [vmem:[%s10605_s29 + $0xe28] ss:$16 sps:$4 sm:$0xff]  }
 0x30c   : > { %v9828_v34 = vld [vmem:[%s10605_s29 + $0xe2c] ss:$16 sps:$4 sm:$0xff]   ;;  %v9829_v33 = vld [vmem:[%s10605_s29 + $0x1028] ss:$16 sps:$4 sm:$0xff]  }
 0x30d   : > { %7030 = vmatpush1.bf16.msra.mxu0 %v9766_v45  ;;  %v9831_v36 = vld [vmem:[%s10605_s29 + $0x102c] ss:$16 sps:$4 sm:$0xff]  }
 0x30e   : > { %7071 = vmatpush1.bf16.msra.mxu1 %v9769_v58  ;;  %7031 = vmatprep.subr.bf16.mxu0 %v9774_v0  ;;  %v9834_v35 = vld [vmem:[%s10605_s29 + $0xe4c] ss:$16 sps:$4 sm:$0xff]   ;;  %v9838_v0 = vld [vmem:[%s10605_s29 + $0xe68] ss:$16 sps:$4 sm:$0xff]  }
 0x30f   : > { %7072 = vmatprep.subr.bf16.mxu1 %v9777_v4  ;;  %v9837_v11 = vld [vmem:[%s10605_s29 + $0x104c] ss:$16 sps:$4 sm:$0xff]  }
 0x310   : > { %v9840_v45 = vld [vmem:[%s10605_s29 + $0xe6c] ss:$16 sps:$4 sm:$0xff]  }
 0x311   : > { %7032 = vmatpush1.bf16.msra.mxu0 %v9772_v5  ;;  %v9843_v58 = vld [vmem:[%s10605_s29 + $0x106c] ss:$16 sps:$4 sm:$0xff]   ;;  %v9844_v5 = vld [vmem:[%s10605_s29 + $0xe88] ss:$16 sps:$4 sm:$0xff]  }
 0x312   : > { %7073 = vmatpush1.bf16.msra.mxu1 %v9775_v43  ;;  %7033 = vmatprep.subr.bf16.mxu0 %v9780_v51  ;;  %v9849_v4 = vld [vmem:[%s10605_s29 + $0x108c] ss:$16 sps:$4 sm:$0xff]   ;;  %v9847_v43 = vld [vmem:[%s10605_s29 + $0x1088] ss:$16 sps:$4 sm:$0xff]  }
 0x313   : > { %7074 = vmatprep.subr.bf16.mxu1 %v9783_v10  ;;  %v9852_v51 = vld [vmem:[%s10605_s29 + $0xeac] ss:$16 sps:$4 sm:$0xff]  }
 0x314   : > { %v9855_v10 = vld [vmem:[%s10605_s29 + $0x10ac] ss:$16 sps:$4 sm:$0xff]  }
 0x315   : > { %7034 = vmatpush1.bf16.msra.mxu0 %v9778_v9  ;;  %v9850_v9 = vld [vmem:[%s10605_s29 + $0xea8] ss:$16 sps:$4 sm:$0xff]  }
 0x316   : > { %7075 = vmatpush1.bf16.msra.mxu1 %v9781_v14  ;;  %7035 = vmatprep.subr.bf16.mxu0 %v9786_v1  ;;  %v9853_v14 = vld [vmem:[%s10605_s29 + $0x10a8] ss:$16 sps:$4 sm:$0xff]   ;;  %v9858_v1 = vld [vmem:[%s10605_s29 + $0xecc] ss:$16 sps:$4 sm:$0xff]  }
 0x317   : > { %7076 = vmatprep.subr.bf16.mxu1 %v9789_v12  ;;  %v9861_v12 = vld [vmem:[%s10605_s29 + $0x10cc] ss:$16 sps:$4 sm:$0xff]  }
 0x319   : > { %7036 = vmatpush1.bf16.msra.mxu0 %v9784_v54  ;;  %v311_v54 = vld [vmem:[%s10624_s8] sm:$0xff] }
 0x31a   : > { %7077 = vmatpush1.bf16.msra.mxu1 %v9787_v15  ;;  %7037 = vmatprep.subr.bf16.mxu0 %v9792_v18 }
 0x31b   : > { %7078 = vmatprep.subr.bf16.mxu1 %v9795_v39 }
 0x31d   : > { %7038 = vmatpush1.bf16.msra.mxu0 %v9790_v16  ;;  %v312_v16 = vld [vmem:[%s10624_s8 + $0x8] sm:$0xff] }
 0x31e   : > { %7079 = vmatpush1.bf16.msra.mxu1 %v9793_v63  ;;  %7039 = vmatprep.subr.bf16.mxu0 %v9798_v48 }
 0x31f   : > { %7080 = vmatprep.subr.bf16.mxu1 %v9801_v26  ;;  %v9856_v26 = vld [vmem:[%s10605_s29 + $0xec8] ss:$16 sps:$4 sm:$0xff]  }
 0x321   : > { %7040 = vmatpush1.bf16.msra.mxu0 %v9796_v23 }
 0x322   : > { %7081 = vmatpush1.bf16.msra.mxu1 %v9799_v19  ;;  %7041 = vmatprep.subr.bf16.mxu0 %v9804_v7 }
 0x323   : > { %7082 = vmatprep.subr.bf16.mxu1 %v9807_v20  ;;  %v9859_v20 = vld [vmem:[%s10605_s29 + $0x10c8] ss:$16 sps:$4 sm:$0xff]  }
 0x325   : > { %7042 = vmatpush1.bf16.msra.mxu0 %v9802_v8  ;;  %v11616_v8 = vld [vmem:[%s10624_s8 + $0x10] sm:$0xff] }
 0x326   : > { %7083 = vmatpush1.bf16.msra.mxu1 %v9805_v17  ;;  %7043 = vmatprep.subr.bf16.mxu0 %v9810_v21 }
 0x327   : > { %7084 = vmatprep.subr.bf16.mxu1 %v9813_v22 }
 0x329   : > { %7044 = vmatpush1.bf16.msra.mxu0 %v9808_v52  ;;  %v9867_v52 = vld [vmem:[%s10605_s29 + $0x10ec] ss:$16 sps:$4 sm:$0xff]  }
 0x32a   : > { %7085 = vmatpush1.bf16.msra.mxu1 %v9811_v38  ;;  %7045 = vmatprep.subr.bf16.mxu0 %v9816_v25  ;;  %v9862_v25 = vld [vmem:[%s10605_s29 + $0xee8] ss:$16 sps:$4 sm:$0xff]  }
 0x32b   : > { %7086 = vmatprep.subr.bf16.mxu1 %v9819_v27  ;;  %v9865_v27 = vld [vmem:[%s10605_s29 + $0x10e8] ss:$16 sps:$4 sm:$0xff]  }
 0x32d   : > { %7046 = vmatpush1.bf16.msra.mxu0 %v9814_v37  ;;  %v9870_v37 = vld [vmem:[%s10605_s29 + $0xf0c] ss:$16 sps:$4 sm:$0xff]  }
 0x32e   : > { %7087 = vmatpush1.bf16.msra.mxu1 %v9817_v28  ;;  %7097 = vmatprep.subr.bf16.mxu0 %v9822_v29  ;;  %v9873_v28 = vld [vmem:[%s10605_s29 + $0x110c] ss:$16 sps:$4 sm:$0xff]   ;;  %v9868_v29 = vld [vmem:[%s10605_s29 + $0xf08] ss:$16 sps:$4 sm:$0xff]  }
 0x32f   : > { %7138 = vmatprep.subr.bf16.mxu1 %v9825_v30  ;;  %v9871_v30 = vld [vmem:[%s10605_s29 + $0x1108] ss:$16 sps:$4 sm:$0xff]  }
 0x330   : > { %7048 = vmatmul.mubr.bf16.vlgmr.msra.gmra.mrb[40].mxu0 %v10894_v40  ;;  %v9832_v40 = vld [vmem:[%s10605_s29 + $0xe48] ss:$16 sps:$4 sm:$0xff]  }
 0x331   : > { %7089 = vmatmul.mubr.bf16.vlgmr.msra.gmra.mrb[40].mxu1 %v10981_v60  ;;  %7098 = vmatpush1.bf16.msra.mxu0 %v9820_v31  ;;  %v9835_v60 = vld [vmem:[%s10605_s29 + $0x1048] ss:$16 sps:$4 sm:$0xff]   ;;  %v9876_v31 = vld [vmem:[%s10605_s29 + $0xf2c] ss:$16 sps:$4 sm:$0xff]  }
 0x332   : > { %7139 = vmatpush1.bf16.msra.mxu1 %v9823_v32  ;;  %7099 = vmatprep.subr.bf16.mxu0 %v9828_v34  ;;  %v9879_v32 = vld [vmem:[%s10605_s29 + $0x112c] ss:$16 sps:$4 sm:$0xff]   ;;  %v9874_v34 = vld [vmem:[%s10605_s29 + $0xf28] ss:$16 sps:$4 sm:$0xff]  }
 0x333   : > { %7140 = vmatprep.subr.bf16.mxu1 %v9831_v36  ;;  %7129 = vmatprep.mubr.bf16.mxu0 %v10910_v24  ;;  %v9841_v24 = vld [vmem:[%s10605_s29 + $0x1068] ss:$16 sps:$4 sm:$0xff]  }
 0x334   : > { %7170 = vmatprep.mubr.bf16.mxu1 %v10996_v41  ;;  %v9846_v41 = vld [vmem:[%s10605_s29 + $0xe8c] ss:$16 sps:$4 sm:$0xff]   ;;  %v9877_v36 = vld [vmem:[%s10605_s29 + $0x1128] ss:$16 sps:$4 sm:$0xff]  }
 0x335   : > { %7100 = vmatpush1.bf16.msra.mxu0 %v9826_v55  ;;  %v9882_v55 = vld [vmem:[%s10605_s29 + $0xf4c] ss:$16 sps:$4 sm:$0xff]  }
 0x336   : > { %7141 = vmatpush1.bf16.msra.mxu1 %v9829_v33  ;;  %7101 = vmatprep.subr.bf16.mxu0 %v9834_v35  ;;  %v9885_v33 = vld [vmem:[%s10605_s29 + $0x114c] ss:$16 sps:$4 sm:$0xff]   ;;  %v9880_v35 = vld [vmem:[%s10605_s29 + $0xf48] ss:$16 sps:$4 sm:$0xff]  }
 0x337   : > { %7142 = vmatprep.subr.bf16.mxu1 %v9837_v11  ;;  %v9883_v11 = vld [vmem:[%s10605_s29 + $0x1148] ss:$16 sps:$4 sm:$0xff]  }
 0x339   : > { %7102 = vmatpush1.bf16.msra.mxu0 %v9832_v40  ;;  %v9888_v40 = vld [vmem:[%s10605_s29 + $0xf6c] ss:$16 sps:$4 sm:$0xff]  }
 0x33a   : > { %7143 = vmatpush1.bf16.msra.mxu1 %v9835_v60  ;;  %7103 = vmatprep.subr.bf16.mxu0 %v9840_v45  ;;  %v9891_v60 = vld [vmem:[%s10605_s29 + $0x116c] ss:$16 sps:$4 sm:$0xff]   ;;  %v9886_v45 = vld [vmem:[%s10605_s29 + $0xf68] ss:$16 sps:$4 sm:$0xff]  }
 0x33b   : > { %7144 = vmatprep.subr.bf16.mxu1 %v9843_v58  ;;  %v9889_v58 = vld [vmem:[%s10605_s29 + $0x1168] ss:$16 sps:$4 sm:$0xff]  }
 0x33d   : > { %7104 = vmatpush1.bf16.msra.mxu0 %v9838_v0  ;;  %v9894_v0 = vld [vmem:[%s10605_s29 + $0xf8c] ss:$16 sps:$4 sm:$0xff]  }
 0x33e   : > { %7145 = vmatpush1.bf16.msra.mxu1 %v9841_v24  ;;  %7105 = vmatprep.subr.bf16.mxu0 %v9846_v41  ;;  %v9897_v24 = vld [vmem:[%s10605_s29 + $0x118c] ss:$16 sps:$4 sm:$0xff]   ;;  %v9892_v41 = vld [vmem:[%s10605_s29 + $0xf88] ss:$16 sps:$4 sm:$0xff]  }
 0x33f   : > { %7146 = vmatprep.subr.bf16.mxu1 %v9849_v4  ;;  %v9895_v4 = vld [vmem:[%s10605_s29 + $0x1188] ss:$16 sps:$4 sm:$0xff]  }
 0x341   : > { %7106 = vmatpush1.bf16.msra.mxu0 %v9844_v5  ;;  %v9900_v5 = vld [vmem:[%s10605_s29 + $0xfac] ss:$16 sps:$4 sm:$0xff]  }
 0x342   : > { %7147 = vmatpush1.bf16.msra.mxu1 %v9847_v43  ;;  %7107 = vmatprep.subr.bf16.mxu0 %v9852_v51  ;;  %v9903_v43 = vld [vmem:[%s10605_s29 + $0x11ac] ss:$16 sps:$4 sm:$0xff]   ;;  %v9898_v51 = vld [vmem:[%s10605_s29 + $0xfa8] ss:$16 sps:$4 sm:$0xff]  }
 0x343   : > { %7148 = vmatprep.subr.bf16.mxu1 %v9855_v10  ;;  %v6803_v15 = vpop.f32.mrb[28].mxu0  ;;  %v9901_v10 = vld [vmem:[%s10605_s29 + $0x11a8] ss:$16 sps:$4 sm:$0xff]  }
 0x344   : > { %v11606_v18 = vpop.f32.mrb[28].mxu1  ;;  %v6804_v39 = vadd.f32 %v6803_v15, %v11535_v44  ;;  %v6805_v63 = vpop.f32.mrb[29].mxu0  ;;  %v11619_v44 = vld [vmem:[%s10624_s8 + $0x18] sm:$0xff] }
 0x345   : > { %v11610_v48 = vpop.f32.mrb[29].mxu1  ;;  %v6806_v23 = vadd.f32 %v6805_v63, %v11539_v56  ;;  %v6807_v19 = vpop.f32.mrb[30].mxu0  ;;  %7108 = vmatpush1.bf16.msra.mxu0 %v9850_v9  ;;  %v9864_v56 = vld [vmem:[%s10605_s29 + $0xeec] ss:$16 sps:$4 sm:$0xff]  }
 0x346   : > { %v6848_v7 = vpop.f32.mrb[30].mxu1  ;;  %7149 = vmatpush1.bf16.msra.mxu1 %v9853_v14  ;;  %v7425_v17 = vadd.f32 %v6804_v39, %v311_v54  ;;  %v6808_v21 = vpop.f32.mrb[31].mxu0  ;;  %7109 = vmatprep.subr.bf16.mxu0 %v9858_v1  ;;  %v9906_v9 = vld [vmem:[%s10605_s29 + $0xfcc] ss:$16 sps:$4 sm:$0xff]   ;;  %v9904_v1 = vld [vmem:[%s10605_s29 + $0xfc8] ss:$16 sps:$4 sm:$0xff]  }
 0x347   : > { %v6849_v22 = vpop.f32.mrb[31].mxu1  ;;  %7150 = vmatprep.subr.bf16.mxu1 %v9861_v12  ;;  %v7426_v38 = vadd.f32 %v6806_v23, %v312_v16  ;;  %v9909_v14 = vld [vmem:[%s10605_s29 + $0x11cc] ss:$16 sps:$4 sm:$0xff]   ;;  %v9907_v12 = vld [vmem:[%s10605_s29 + $0x11c8] ss:$16 sps:$4 sm:$0xff]  }
 0x348   : > { %7429 = vst [vmem:[%s10624_s8] sm:$0xff] %v7425_v17  ;;  %v9912_v54 = vld [vmem:[%s10605_s29 + $0xfec] ss:$16 sps:$4 sm:$0xff]   ;;  %v9910_v39 = vld [vmem:[%s10605_s29 + $0xfe8] ss:$16 sps:$4 sm:$0xff]  }
 0x349   : > { %7110 = vmatpush1.bf16.msra.mxu0 %v9856_v26  ;;  %7430 = vst [vmem:[%s10624_s8 + $0x8] sm:$0xff] %v7426_v38  ;;  %v9915_v15 = vld [vmem:[%s10605_s29 + $0x11ec] ss:$16 sps:$4 sm:$0xff]   ;;  %v9913_v16 = vld [vmem:[%s10605_s29 + $0x11e8] ss:$16 sps:$4 sm:$0xff]  }
 0x34a   : > { %7151 = vmatpush1.bf16.msra.mxu1 %v9859_v20  ;;  %7111 = vmatprep.subr.bf16.mxu0 %v9864_v56  ;;  %v9918_v63 = vld [vmem:[%s10605_s29 + $0x120c] ss:$16 sps:$4 sm:$0xff]   ;;  %v9916_v23 = vld [vmem:[%s10605_s29 + $0x1208] ss:$16 sps:$4 sm:$0xff]  }
 0x34b   : > { %7152 = vmatprep.subr.bf16.mxu1 %v9867_v52  ;;  %v9921_v26 = vld [vmem:[%s10605_s29 + $0x140c] ss:$16 sps:$4 sm:$0xff]   ;;  %v9919_v19 = vld [vmem:[%s10605_s29 + $0x1408] ss:$16 sps:$4 sm:$0xff]  }
 0x34c   : > { %v9924_v7 = vld [vmem:[%s10605_s29 + $0x122c] ss:$16 sps:$4 sm:$0xff]   ;;  %v9922_v17 = vld [vmem:[%s10605_s29 + $0x1228] ss:$16 sps:$4 sm:$0xff]  }
 0x34d   : > { %7112 = vmatpush1.bf16.msra.mxu0 %v9862_v25  ;;  %v9927_v20 = vld [vmem:[%s10605_s29 + $0x142c] ss:$16 sps:$4 sm:$0xff]   ;;  %v9925_v21 = vld [vmem:[%s10605_s29 + $0x1428] ss:$16 sps:$4 sm:$0xff]  }
 0x34e   : > { %7153 = vmatpush1.bf16.msra.mxu1 %v9865_v27  ;;  %7113 = vmatprep.subr.bf16.mxu0 %v9870_v37  ;;  %v9930_v22 = vld [vmem:[%s10605_s29 + $0x124c] ss:$16 sps:$4 sm:$0xff]   ;;  %v9934_v25 = vld [vmem:[%s10605_s29 + $0x1268] ss:$16 sps:$4 sm:$0xff]  }
 0x34f   : > { %7154 = vmatprep.subr.bf16.mxu1 %v9873_v28  ;;  %v9933_v56 = vld [vmem:[%s10605_s29 + $0x144c] ss:$16 sps:$4 sm:$0xff]   ;;  %v9940_v37 = vld [vmem:[%s10605_s29 + $0x1288] ss:$16 sps:$4 sm:$0xff]  }
 0x350   : > { %v9936_v52 = vld [vmem:[%s10605_s29 + $0x126c] ss:$16 sps:$4 sm:$0xff]   ;;  %v9943_v28 = vld [vmem:[%s10605_s29 + $0x1488] ss:$16 sps:$4 sm:$0xff]  }
 0x351   : > { %7114 = vmatpush1.bf16.msra.mxu0 %v9868_v29  ;;  %v9939_v38 = vld [vmem:[%s10605_s29 + $0x146c] ss:$16 sps:$4 sm:$0xff]  }
 0x352   : > { %7155 = vmatpush1.bf16.msra.mxu1 %v9871_v30  ;;  %7115 = vmatprep.subr.bf16.mxu0 %v9876_v31  ;;  %v9945_v27 = vld [vmem:[%s10605_s29 + $0x148c] ss:$16 sps:$4 sm:$0xff]   ;;  %v9946_v31 = vld [vmem:[%s10605_s29 + $0x12a8] ss:$16 sps:$4 sm:$0xff]  }
 0x353   : > { %7156 = vmatprep.subr.bf16.mxu1 %v9879_v32  ;;  %v9948_v29 = vld [vmem:[%s10605_s29 + $0x12ac] ss:$16 sps:$4 sm:$0xff]   ;;  %v9949_v32 = vld [vmem:[%s10605_s29 + $0x14a8] ss:$16 sps:$4 sm:$0xff]  }
 0x354   : > { %v9951_v30 = vld [vmem:[%s10605_s29 + $0x14ac] ss:$16 sps:$4 sm:$0xff]  }
 0x355   : > { %7116 = vmatpush1.bf16.msra.mxu0 %v9874_v34  ;;  %v9954_v34 = vld [vmem:[%s10605_s29 + $0x12cc] ss:$16 sps:$4 sm:$0xff]  }
 0x356   : > { %7157 = vmatpush1.bf16.msra.mxu1 %v9877_v36  ;;  %7117 = vmatprep.subr.bf16.mxu0 %v9882_v55  ;;  %v9957_v36 = vld [vmem:[%s10605_s29 + $0x14cc] ss:$16 sps:$4 sm:$0xff]  }
 0x357   : > { %7158 = vmatprep.subr.bf16.mxu1 %v9885_v33 }
 0x359   : > { %7118 = vmatpush1.bf16.msra.mxu0 %v9880_v35 }
 0x35a   : > { %7159 = vmatpush1.bf16.msra.mxu1 %v9883_v11  ;;  %7119 = vmatprep.subr.bf16.mxu0 %v9888_v40 }
 0x35b   : > { %7160 = vmatprep.subr.bf16.mxu1 %v9891_v60 }
 0x35d   : > { %7120 = vmatpush1.bf16.msra.mxu0 %v9886_v45 }
 0x35e   : > { %7161 = vmatpush1.bf16.msra.mxu1 %v9889_v58  ;;  %7121 = vmatprep.subr.bf16.mxu0 %v9894_v0  ;;  %v9952_v0 = vld [vmem:[%s10605_s29 + $0x12c8] ss:$16 sps:$4 sm:$0xff]  }
 0x35f   : > { %7162 = vmatprep.subr.bf16.mxu1 %v9897_v24  ;;  %v9955_v24 = vld [vmem:[%s10605_s29 + $0x14c8] ss:$16 sps:$4 sm:$0xff]  }
 0x361   : > { %7122 = vmatpush1.bf16.msra.mxu0 %v9892_v41 }
 0x362   : > { %7163 = vmatpush1.bf16.msra.mxu1 %v9895_v4  ;;  %7123 = vmatprep.subr.bf16.mxu0 %v9900_v5 }
 0x363   : > { %7164 = vmatprep.subr.bf16.mxu1 %v9903_v43 }
 0x365   : > { %7124 = vmatpush1.bf16.msra.mxu0 %v9898_v51  ;;  %v9958_v51 = vld [vmem:[%s10605_s29 + $0x12e8] ss:$16 sps:$4 sm:$0xff]  }
 0x366   : > { %7165 = vmatpush1.bf16.msra.mxu1 %v9901_v10  ;;  %7125 = vmatprep.subr.bf16.mxu0 %v9906_v9  ;;  %v9961_v10 = vld [vmem:[%s10605_s29 + $0x14e8] ss:$16 sps:$4 sm:$0xff]   ;;  %v9966_v9 = vld [vmem:[%s10605_s29 + $0x130c] ss:$16 sps:$4 sm:$0xff]  }
 0x367   : > { %7166 = vmatprep.subr.bf16.mxu1 %v9909_v14  ;;  %v9969_v14 = vld [vmem:[%s10605_s29 + $0x150c] ss:$16 sps:$4 sm:$0xff]  }
 0x369   : > { %7126 = vmatpush1.bf16.msra.mxu0 %v9904_v1  ;;  %v9964_v1 = vld [vmem:[%s10605_s29 + $0x1308] ss:$16 sps:$4 sm:$0xff]  }
 0x36a   : > { %7167 = vmatpush1.bf16.msra.mxu1 %v9907_v12  ;;  %7127 = vmatprep.subr.bf16.mxu0 %v9912_v54  ;;  %v9967_v12 = vld [vmem:[%s10605_s29 + $0x1508] ss:$16 sps:$4 sm:$0xff]   ;;  %v9972_v54 = vld [vmem:[%s10605_s29 + $0x132c] ss:$16 sps:$4 sm:$0xff]  }
 0x36b   : > { %7168 = vmatprep.subr.bf16.mxu1 %v9915_v15  ;;  %v9975_v15 = vld [vmem:[%s10605_s29 + $0x152c] ss:$16 sps:$4 sm:$0xff]  }
 0x36d   : > { %7128 = vmatpush1.bf16.msra.mxu0 %v9910_v39  ;;  %v9970_v39 = vld [vmem:[%s10605_s29 + $0x1328] ss:$16 sps:$4 sm:$0xff]  }
 0x36e   : > { %7169 = vmatpush1.bf16.msra.mxu1 %v9913_v16  ;;  %7179 = vmatprep.subr.bf16.mxu0 %v9918_v63  ;;  %v9973_v16 = vld [vmem:[%s10605_s29 + $0x1528] ss:$16 sps:$4 sm:$0xff]   ;;  %v9978_v63 = vld [vmem:[%s10605_s29 + $0x134c] ss:$16 sps:$4 sm:$0xff]  }
 0x36f   : > { %7220 = vmatprep.subr.bf16.mxu1 %v9921_v26  ;;  %v9981_v26 = vld [vmem:[%s10605_s29 + $0x154c] ss:$16 sps:$4 sm:$0xff]  }
 0x370   : > { %7130 = vmatmul.mubr.bf16.vlgmr.msra.gmra.mrb[44].mxu0 %v10985_v61  ;;  %v9928_v61 = vld [vmem:[%s10605_s29 + $0x1248] ss:$16 sps:$4 sm:$0xff]  }
 0x371   : > { %7171 = vmatmul.mubr.bf16.vlgmr.msra.gmra.mrb[44].mxu1 %v11074_v47  ;;  %7180 = vmatpush1.bf16.msra.mxu0 %v9916_v23  ;;  %v9931_v47 = vld [vmem:[%s10605_s29 + $0x1448] ss:$16 sps:$4 sm:$0xff]  }
 0x372   : > { %7221 = vmatpush1.bf16.msra.mxu1 %v9919_v19  ;;  %7181 = vmatprep.subr.bf16.mxu0 %v9924_v7  ;;  %v9976_v23 = vld [vmem:[%s10605_s29 + $0x1348] ss:$16 sps:$4 sm:$0xff]   ;;  %v9984_v7 = vld [vmem:[%s10605_s29 + $0x136c] ss:$16 sps:$4 sm:$0xff]  }
 0x373   : > { %7222 = vmatprep.subr.bf16.mxu1 %v9927_v20  ;;  %7211 = vmatprep.mubr.bf16.mxu0 %v11000_v42  ;;  %v9937_v42 = vld [vmem:[%s10605_s29 + $0x1468] ss:$16 sps:$4 sm:$0xff]   ;;  %v9987_v20 = vld [vmem:[%s10605_s29 + $0x156c] ss:$16 sps:$4 sm:$0xff]  }
 0x374   : > { %7252 = vmatprep.mubr.bf16.mxu1 %v11090_v59  ;;  %v9942_v59 = vld [vmem:[%s10605_s29 + $0x128c] ss:$16 sps:$4 sm:$0xff]   ;;  %v9979_v19 = vld [vmem:[%s10605_s29 + $0x1548] ss:$16 sps:$4 sm:$0xff]  }
 0x375   : > { %7182 = vmatpush1.bf16.msra.mxu0 %v9922_v17  ;;  %v9982_v17 = vld [vmem:[%s10605_s29 + $0x1368] ss:$16 sps:$4 sm:$0xff]  }
 0x376   : > { %7223 = vmatpush1.bf16.msra.mxu1 %v9925_v21  ;;  %7183 = vmatprep.subr.bf16.mxu0 %v9930_v22  ;;  %v9985_v21 = vld [vmem:[%s10605_s29 + $0x1568] ss:$16 sps:$4 sm:$0xff]   ;;  %v9990_v22 = vld [vmem:[%s10605_s29 + $0x138c] ss:$16 sps:$4 sm:$0xff]  }
 0x377   : > { %7224 = vmatprep.subr.bf16.mxu1 %v9933_v56  ;;  %v9993_v56 = vld [vmem:[%s10605_s29 + $0x158c] ss:$16 sps:$4 sm:$0xff]  }
 0x379   : > { %7184 = vmatpush1.bf16.msra.mxu0 %v9928_v61  ;;  %v9988_v61 = vld [vmem:[%s10605_s29 + $0x1388] ss:$16 sps:$4 sm:$0xff]  }
 0x37a   : > { %7225 = vmatpush1.bf16.msra.mxu1 %v9931_v47  ;;  %7185 = vmatprep.subr.bf16.mxu0 %v9936_v52  ;;  %v9991_v47 = vld [vmem:[%s10605_s29 + $0x1588] ss:$16 sps:$4 sm:$0xff]   ;;  %v9996_v52 = vld [vmem:[%s10605_s29 + $0x13ac] ss:$16 sps:$4 sm:$0xff]  }
 0x37b   : > { %7226 = vmatprep.subr.bf16.mxu1 %v9939_v38  ;;  %v9999_v38 = vld [vmem:[%s10605_s29 + $0x15ac] ss:$16 sps:$4 sm:$0xff]  }
 0x37d   : > { %7186 = vmatpush1.bf16.msra.mxu0 %v9934_v25  ;;  %v9994_v25 = vld [vmem:[%s10605_s29 + $0x13a8] ss:$16 sps:$4 sm:$0xff]  }
 0x37e   : > { %7227 = vmatpush1.bf16.msra.mxu1 %v9937_v42  ;;  %7187 = vmatprep.subr.bf16.mxu0 %v9942_v59  ;;  %v9997_v42 = vld [vmem:[%s10605_s29 + $0x15a8] ss:$16 sps:$4 sm:$0xff]   ;;  %v10002_v59 = vld [vmem:[%s10605_s29 + $0x13cc] ss:$16 sps:$4 sm:$0xff]  }
 0x37f   : > { %7228 = vmatprep.subr.bf16.mxu1 %v9945_v27  ;;  %v10005_v27 = vld [vmem:[%s10605_s29 + $0x15cc] ss:$16 sps:$4 sm:$0xff]  }
 0x381   : > { %7188 = vmatpush1.bf16.msra.mxu0 %v9940_v37  ;;  %v10000_v37 = vld [vmem:[%s10605_s29 + $0x13c8] ss:$16 sps:$4 sm:$0xff]  }
 0x382   : > { %7229 = vmatpush1.bf16.msra.mxu1 %v9943_v28  ;;  %7189 = vmatprep.subr.bf16.mxu0 %v9948_v29  ;;  %v10003_v28 = vld [vmem:[%s10605_s29 + $0x15c8] ss:$16 sps:$4 sm:$0xff]   ;;  %v10008_v29 = vld [vmem:[%s10605_s29 + $0x13ec] ss:$16 sps:$4 sm:$0xff]  }
 0x383   : > { %7230 = vmatprep.subr.bf16.mxu1 %v9951_v30  ;;  %v6885_v55 = vpop.f32.mrb[32].mxu0  ;;  %v10011_v30 = vld [vmem:[%s10605_s29 + $0x15ec] ss:$16 sps:$4 sm:$0xff]  }
 0x384   : > { %v6926_v33 = vpop.f32.mrb[32].mxu1  ;;  %v6886_v35 = vadd.f32 %v6885_v55, %v11606_v18  ;;  %v6887_v11 = vpop.f32.mrb[33].mxu0  ;;  %v9960_v18 = vld [vmem:[%s10605_s29 + $0x12ec] ss:$16 sps:$4 sm:$0xff]   ;;  %v10012_v55 = vld [vmem:[%s10605_s29 + $0x1608] ss:$16 sps:$4 sm:$0xff]  }
 0x385   : > { %v6928_v40 = vpop.f32.mrb[33].mxu1  ;;  %v6888_v60 = vadd.f32 %v6887_v11, %v11610_v48  ;;  %v6889_v45 = vpop.f32.mrb[34].mxu0  ;;  %7190 = vmatpush1.bf16.msra.mxu0 %v9946_v31  ;;  %v9963_v48 = vld [vmem:[%s10605_s29 + $0x14ec] ss:$16 sps:$4 sm:$0xff]   ;;  %v10006_v31 = vld [vmem:[%s10605_s29 + $0x13e8] ss:$16 sps:$4 sm:$0xff]  }
 0x386   : > { %v6930_v58 = vpop.f32.mrb[34].mxu1  ;;  %7231 = vmatpush1.bf16.msra.mxu1 %v9949_v32  ;;  %v11693_v41 = vadd.f32 %v6926_v33, %v6886_v35  ;;  %v6890_v4 = vpop.f32.mrb[35].mxu0  ;;  %7191 = vmatprep.subr.bf16.mxu0 %v9954_v34  ;;  %v10009_v32 = vld [vmem:[%s10605_s29 + $0x15e8] ss:$16 sps:$4 sm:$0xff]   ;;  %v10014_v34 = vld [vmem:[%s10605_s29 + $0x160c] ss:$16 sps:$4 sm:$0xff]  }
 0x387   : > { %v6931_v5 = vpop.f32.mrb[35].mxu1  ;;  %7232 = vmatprep.subr.bf16.mxu1 %v9957_v36  ;;  %v11697_v43 = vadd.f32 %v6928_v40, %v6888_v60  ;;  %v10017_v36 = vld [vmem:[%s10605_s29 + $0x180c] ss:$16 sps:$4 sm:$0xff]   ;;  %v10015_v33 = vld [vmem:[%s10605_s29 + $0x1808] ss:$16 sps:$4 sm:$0xff]  }
 0x388   : > { %v10020_v35 = vld [vmem:[%s10605_s29 + $0x162c] ss:$16 sps:$4 sm:$0xff]   ;;  %v10018_v40 = vld [vmem:[%s10605_s29 + $0x1628] ss:$16 sps:$4 sm:$0xff]  }
 0x389   : > { %7192 = vmatpush1.bf16.msra.mxu0 %v9952_v0  ;;  %v10023_v11 = vld [vmem:[%s10605_s29 + $0x182c] ss:$16 sps:$4 sm:$0xff]   ;;  %v10021_v60 = vld [vmem:[%s10605_s29 + $0x1828] ss:$16 sps:$4 sm:$0xff]  }
 0x38a   : > { %7233 = vmatpush1.bf16.msra.mxu1 %v9955_v24  ;;  %7193 = vmatprep.subr.bf16.mxu0 %v9960_v18  ;;  %v10026_v45 = vld [vmem:[%s10605_s29 + $0x164c] ss:$16 sps:$4 sm:$0xff]   ;;  %v10030_v4 = vld [vmem:[%s10605_s29 + $0x1668] ss:$16 sps:$4 sm:$0xff]  }
 0x38b   : > { %7234 = vmatprep.subr.bf16.mxu1 %v9963_v48  ;;  %v10029_v58 = vld [vmem:[%s10605_s29 + $0x184c] ss:$16 sps:$4 sm:$0xff]   ;;  %v10036_v18 = vld [vmem:[%s10605_s29 + $0x1688] ss:$16 sps:$4 sm:$0xff]  }
 0x38c   : > { %v10032_v0 = vld [vmem:[%s10605_s29 + $0x166c] ss:$16 sps:$4 sm:$0xff]   ;;  %v10039_v48 = vld [vmem:[%s10605_s29 + $0x1888] ss:$16 sps:$4 sm:$0xff]  }
 0x38d   : > { %7194 = vmatpush1.bf16.msra.mxu0 %v9958_v51  ;;  %v10035_v24 = vld [vmem:[%s10605_s29 + $0x186c] ss:$16 sps:$4 sm:$0xff]  }
 0x38e   : > { %7235 = vmatpush1.bf16.msra.mxu1 %v9961_v10  ;;  %7195 = vmatprep.subr.bf16.mxu0 %v9966_v9  ;;  %v10041_v5 = vld [vmem:[%s10605_s29 + $0x188c] ss:$16 sps:$4 sm:$0xff]   ;;  %v10042_v9 = vld [vmem:[%s10605_s29 + $0x16a8] ss:$16 sps:$4 sm:$0xff]  }
 0x38f   : > { %7236 = vmatprep.subr.bf16.mxu1 %v9969_v14  ;;  %v10044_v51 = vld [vmem:[%s10605_s29 + $0x16ac] ss:$16 sps:$4 sm:$0xff]   ;;  %v10045_v14 = vld [vmem:[%s10605_s29 + $0x18a8] ss:$16 sps:$4 sm:$0xff]  }
 0x390   : > { %v10047_v10 = vld [vmem:[%s10605_s29 + $0x18ac] ss:$16 sps:$4 sm:$0xff]  }
 0x391   : > { %7196 = vmatpush1.bf16.msra.mxu0 %v9964_v1  ;;  %v10050_v1 = vld [vmem:[%s10605_s29 + $0x16cc] ss:$16 sps:$4 sm:$0xff]  }
 0x392   : > { %7237 = vmatpush1.bf16.msra.mxu1 %v9967_v12  ;;  %7197 = vmatprep.subr.bf16.mxu0 %v9972_v54  ;;  %v10053_v12 = vld [vmem:[%s10605_s29 + $0x18cc] ss:$16 sps:$4 sm:$0xff]  }
 0x393   : > { %7238 = vmatprep.subr.bf16.mxu1 %v9975_v15 }
 0x395   : > { %7198 = vmatpush1.bf16.msra.mxu0 %v9970_v39 }
 0x396   : > { %7239 = vmatpush1.bf16.msra.mxu1 %v9973_v16  ;;  %7199 = vmatprep.subr.bf16.mxu0 %v9978_v63 }
 0x397   : > { %7240 = vmatprep.subr.bf16.mxu1 %v9981_v26 }
 0x399   : > { %7200 = vmatpush1.bf16.msra.mxu0 %v9976_v23 }
 0x39a   : > { %7241 = vmatpush1.bf16.msra.mxu1 %v9979_v19  ;;  %7201 = vmatprep.subr.bf16.mxu0 %v9984_v7  ;;  %v10048_v7 = vld [vmem:[%s10605_s29 + $0x16c8] ss:$16 sps:$4 sm:$0xff]  }
 0x39b   : > { %7242 = vmatprep.subr.bf16.mxu1 %v9987_v20  ;;  %v10051_v20 = vld [vmem:[%s10605_s29 + $0x18c8] ss:$16 sps:$4 sm:$0xff]  }
 0x39d   : > { %7202 = vmatpush1.bf16.msra.mxu0 %v9982_v17 }
 0x39e   : > { %7243 = vmatpush1.bf16.msra.mxu1 %v9985_v21  ;;  %7203 = vmatprep.subr.bf16.mxu0 %v9990_v22 }
 0x39f   : > { %7244 = vmatprep.subr.bf16.mxu1 %v9993_v56 }
 0x3a1   : > { %7204 = vmatpush1.bf16.msra.mxu0 %v9988_v61  ;;  %v10054_v61 = vld [vmem:[%s10605_s29 + $0x16e8] ss:$16 sps:$4 sm:$0xff]  }
 0x3a2   : > { %7245 = vmatpush1.bf16.msra.mxu1 %v9991_v47  ;;  %7205 = vmatprep.subr.bf16.mxu0 %v9996_v52  ;;  %v10057_v47 = vld [vmem:[%s10605_s29 + $0x18e8] ss:$16 sps:$4 sm:$0xff]   ;;  %v10062_v52 = vld [vmem:[%s10605_s29 + $0x170c] ss:$16 sps:$4 sm:$0xff]  }
 0x3a3   : > { %7246 = vmatprep.subr.bf16.mxu1 %v9999_v38  ;;  %v10065_v38 = vld [vmem:[%s10605_s29 + $0x190c] ss:$16 sps:$4 sm:$0xff]  }
 0x3a5   : > { %7206 = vmatpush1.bf16.msra.mxu0 %v9994_v25  ;;  %v10060_v25 = vld [vmem:[%s10605_s29 + $0x1708] ss:$16 sps:$4 sm:$0xff]  }
 0x3a6   : > { %7247 = vmatpush1.bf16.msra.mxu1 %v9997_v42  ;;  %7207 = vmatprep.subr.bf16.mxu0 %v10002_v59  ;;  %v10063_v42 = vld [vmem:[%s10605_s29 + $0x1908] ss:$16 sps:$4 sm:$0xff]   ;;  %v10068_v59 = vld [vmem:[%s10605_s29 + $0x172c] ss:$16 sps:$4 sm:$0xff]  }
 0x3a7   : > { %7248 = vmatprep.subr.bf16.mxu1 %v10005_v27  ;;  %v10071_v27 = vld [vmem:[%s10605_s29 + $0x192c] ss:$16 sps:$4 sm:$0xff]  }
 0x3a9   : > { %7208 = vmatpush1.bf16.msra.mxu0 %v10000_v37  ;;  %v10066_v37 = vld [vmem:[%s10605_s29 + $0x1728] ss:$16 sps:$4 sm:$0xff]  }
 0x3aa   : > { %7249 = vmatpush1.bf16.msra.mxu1 %v10003_v28  ;;  %7209 = vmatprep.subr.bf16.mxu0 %v10008_v29  ;;  %v10069_v28 = vld [vmem:[%s10605_s29 + $0x1928] ss:$16 sps:$4 sm:$0xff]   ;;  %v10074_v29 = vld [vmem:[%s10605_s29 + $0x174c] ss:$16 sps:$4 sm:$0xff]  }
 0x3ab   : > { %7250 = vmatprep.subr.bf16.mxu1 %v10011_v30  ;;  %v10077_v30 = vld [vmem:[%s10605_s29 + $0x194c] ss:$16 sps:$4 sm:$0xff]  }
 0x3ad   : > { %7210 = vmatpush1.bf16.msra.mxu0 %v10006_v31  ;;  %v10072_v31 = vld [vmem:[%s10605_s29 + $0x1748] ss:$16 sps:$4 sm:$0xff]  }
 0x3ae   : > { %7251 = vmatpush1.bf16.msra.mxu1 %v10009_v32  ;;  %7261 = vmatprep.subr.bf16.mxu0 %v10014_v34  ;;  %v10075_v32 = vld [vmem:[%s10605_s29 + $0x1948] ss:$16 sps:$4 sm:$0xff]   ;;  %v10080_v34 = vld [vmem:[%s10605_s29 + $0x176c] ss:$16 sps:$4 sm:$0xff]  }
 0x3af   : > { %7302 = vmatprep.subr.bf16.mxu1 %v10017_v36  ;;  %v10083_v36 = vld [vmem:[%s10605_s29 + $0x196c] ss:$16 sps:$4 sm:$0xff]  }
 0x3b0   : > { %7212 = vmatmul.mubr.bf16.vlgmr.msra.gmra.mrb[48].mxu0 %v11078_v49  ;;  %v10024_v49 = vld [vmem:[%s10605_s29 + $0x1648] ss:$16 sps:$4 sm:$0xff]  }
 0x3b1   : > { %7253 = vmatmul.mubr.bf16.vlgmr.msra.gmra.mrb[48].mxu1 %v11173_v46  ;;  %7262 = vmatpush1.bf16.msra.mxu0 %v10012_v55  ;;  %v10027_v46 = vld [vmem:[%s10605_s29 + $0x1848] ss:$16 sps:$4 sm:$0xff]  }
 0x3b2   : > { %7303 = vmatpush1.bf16.msra.mxu1 %v10015_v33  ;;  %7263 = vmatprep.subr.bf16.mxu0 %v10020_v35  ;;  %v10078_v55 = vld [vmem:[%s10605_s29 + $0x1768] ss:$16 sps:$4 sm:$0xff]   ;;  %v10086_v35 = vld [vmem:[%s10605_s29 + $0x178c] ss:$16 sps:$4 sm:$0xff]  }
 0x3b3   : > { %7304 = vmatprep.subr.bf16.mxu1 %v10023_v11  ;;  %7293 = vmatprep.mubr.bf16.mxu0 %v11094_v62  ;;  %v10033_v62 = vld [vmem:[%s10605_s29 + $0x1868] ss:$16 sps:$4 sm:$0xff]   ;;  %v10089_v11 = vld [vmem:[%s10605_s29 + $0x198c] ss:$16 sps:$4 sm:$0xff]  }
 0x3b4   : > { %7334 = vmatprep.mubr.bf16.mxu1 %v11186_v57  ;;  %v10038_v57 = vld [vmem:[%s10605_s29 + $0x168c] ss:$16 sps:$4 sm:$0xff]   ;;  %v10081_v33 = vld [vmem:[%s10605_s29 + $0x1968] ss:$16 sps:$4 sm:$0xff]  }
 0x3b5   : > { %7264 = vmatpush1.bf16.msra.mxu0 %v10018_v40  ;;  %v10084_v40 = vld [vmem:[%s10605_s29 + $0x1788] ss:$16 sps:$4 sm:$0xff]  }
 0x3b6   : > { %7305 = vmatpush1.bf16.msra.mxu1 %v10021_v60  ;;  %7265 = vmatprep.subr.bf16.mxu0 %v10026_v45  ;;  %v10087_v60 = vld [vmem:[%s10605_s29 + $0x1988] ss:$16 sps:$4 sm:$0xff]   ;;  %v10092_v45 = vld [vmem:[%s10605_s29 + $0x17ac] ss:$16 sps:$4 sm:$0xff]  }
 0x3b7   : > { %7306 = vmatprep.subr.bf16.mxu1 %v10029_v58  ;;  %v10095_v58 = vld [vmem:[%s10605_s29 + $0x19ac] ss:$16 sps:$4 sm:$0xff]  }
 0x3b9   : > { %7266 = vmatpush1.bf16.msra.mxu0 %v10024_v49  ;;  %v10090_v49 = vld [vmem:[%s10605_s29 + $0x17a8] ss:$16 sps:$4 sm:$0xff]  }
 0x3ba   : > { %7307 = vmatpush1.bf16.msra.mxu1 %v10027_v46  ;;  %7267 = vmatprep.subr.bf16.mxu0 %v10032_v0  ;;  %v10093_v46 = vld [vmem:[%s10605_s29 + $0x19a8] ss:$16 sps:$4 sm:$0xff]   ;;  %v10098_v0 = vld [vmem:[%s10605_s29 + $0x17cc] ss:$16 sps:$4 sm:$0xff]  }
 0x3bb   : > { %7308 = vmatprep.subr.bf16.mxu1 %v10035_v24  ;;  %v10101_v24 = vld [vmem:[%s10605_s29 + $0x19cc] ss:$16 sps:$4 sm:$0xff]  }
 0x3bd   : > { %7268 = vmatpush1.bf16.msra.mxu0 %v10030_v4  ;;  %v10096_v4 = vld [vmem:[%s10605_s29 + $0x17c8] ss:$16 sps:$4 sm:$0xff]  }
 0x3be   : > { %7309 = vmatpush1.bf16.msra.mxu1 %v10033_v62  ;;  %7269 = vmatprep.subr.bf16.mxu0 %v10038_v57  ;;  %v10099_v62 = vld [vmem:[%s10605_s29 + $0x19c8] ss:$16 sps:$4 sm:$0xff]   ;;  %v10104_v57 = vld [vmem:[%s10605_s29 + $0x17ec] ss:$16 sps:$4 sm:$0xff]  }
 0x3bf   : > { %7310 = vmatprep.subr.bf16.mxu1 %v10041_v5  ;;  %v10107_v5 = vld [vmem:[%s10605_s29 + $0x19ec] ss:$16 sps:$4 sm:$0xff]  }
 0x3c1   : > { %7270 = vmatpush1.bf16.msra.mxu0 %v10036_v18  ;;  %v10102_v18 = vld [vmem:[%s10605_s29 + $0x17e8] ss:$16 sps:$4 sm:$0xff]  }
 0x3c2   : > { %7311 = vmatpush1.bf16.msra.mxu1 %v10039_v48  ;;  %7271 = vmatprep.subr.bf16.mxu0 %v10044_v51  ;;  %v10105_v48 = vld [vmem:[%s10605_s29 + $0x19e8] ss:$16 sps:$4 sm:$0xff]   ;;  %v10110_v51 = vld [vmem:[%s10605_s29 + $0x1a0c] ss:$16 sps:$4 sm:$0xff]  }
 0x3c3   : > { %7312 = vmatprep.subr.bf16.mxu1 %v10047_v10  ;;  %v6967_v54 = vpop.f32.mrb[36].mxu0  ;;  %v10113_v10 = vld [vmem:[%s10605_s29 + $0x1c0c] ss:$16 sps:$4 sm:$0xff]  }
 0x3c4   : > { %v7008_v15 = vpop.f32.mrb[36].mxu1  ;;  %v6968_v39 = vadd.f32 %v6967_v54, %v11693_v41  ;;  %v6969_v16 = vpop.f32.mrb[37].mxu0  ;;  %v10056_v41 = vld [vmem:[%s10605_s29 + $0x16ec] ss:$16 sps:$4 sm:$0xff]   ;;  %v10114_v54 = vld [vmem:[%s10605_s29 + $0x1a28] ss:$16 sps:$4 sm:$0xff]  }
 0x3c5   : > { %v7010_v63 = vpop.f32.mrb[37].mxu1  ;;  %v6970_v26 = vadd.f32 %v6969_v16, %v11697_v43  ;;  %v6971_v23 = vpop.f32.mrb[38].mxu0  ;;  %7272 = vmatpush1.bf16.msra.mxu0 %v10042_v9  ;;  %v10059_v43 = vld [vmem:[%s10605_s29 + $0x18ec] ss:$16 sps:$4 sm:$0xff]   ;;  %v10108_v9 = vld [vmem:[%s10605_s29 + $0x1a08] ss:$16 sps:$4 sm:$0xff]  }
 0x3c6   : > { %v7012_v19 = vpop.f32.mrb[38].mxu1  ;;  %7313 = vmatpush1.bf16.msra.mxu1 %v10045_v14  ;;  %v11767_v17 = vadd.f32 %v7008_v15, %v6968_v39  ;;  %v6972_v21 = vpop.f32.mrb[39].mxu0  ;;  %7273 = vmatprep.subr.bf16.mxu0 %v10050_v1  ;;  %v10111_v14 = vld [vmem:[%s10605_s29 + $0x1c08] ss:$16 sps:$4 sm:$0xff]   ;;  %v10116_v1 = vld [vmem:[%s10605_s29 + $0x1a2c] ss:$16 sps:$4 sm:$0xff]  }
 0x3c7   : > { %v7013_v22 = vpop.f32.mrb[39].mxu1  ;;  %7314 = vmatprep.subr.bf16.mxu1 %v10053_v12  ;;  %v11771_v56 = vadd.f32 %v7010_v63, %v6970_v26  ;;  %v10119_v12 = vld [vmem:[%s10605_s29 + $0x1c2c] ss:$16 sps:$4 sm:$0xff]   ;;  %v10117_v15 = vld [vmem:[%s10605_s29 + $0x1c28] ss:$16 sps:$4 sm:$0xff]  }
 0x3c8   : > { %v10122_v39 = vld [vmem:[%s10605_s29 + $0x1a4c] ss:$16 sps:$4 sm:$0xff]   ;;  %v10126_v23 = vld [vmem:[%s10605_s29 + $0x1a68] ss:$16 sps:$4 sm:$0xff]  }
 0x3c9   : > { %7274 = vmatpush1.bf16.msra.mxu0 %v10048_v7  ;;  %v10125_v16 = vld [vmem:[%s10605_s29 + $0x1c4c] ss:$16 sps:$4 sm:$0xff]   ;;  %v10132_v7 = vld [vmem:[%s10605_s29 + $0x1a88] ss:$16 sps:$4 sm:$0xff]  }
 0x3ca   : > { %7315 = vmatpush1.bf16.msra.mxu1 %v10051_v20  ;;  %7275 = vmatprep.subr.bf16.mxu0 %v10056_v41  ;;  %v10128_v63 = vld [vmem:[%s10605_s29 + $0x1a6c] ss:$16 sps:$4 sm:$0xff]   ;;  %v10135_v20 = vld [vmem:[%s10605_s29 + $0x1c88] ss:$16 sps:$4 sm:$0xff]  }
 0x3cb   : > { %7316 = vmatprep.subr.bf16.mxu1 %v10059_v43  ;;  %v10131_v26 = vld [vmem:[%s10605_s29 + $0x1c6c] ss:$16 sps:$4 sm:$0xff]   ;;  %v10138_v41 = vld [vmem:[%s10605_s29 + $0x1aa8] ss:$16 sps:$4 sm:$0xff]  }
 0x3cc   : > { %v10137_v19 = vld [vmem:[%s10605_s29 + $0x1c8c] ss:$16 sps:$4 sm:$0xff]   ;;  %v10141_v43 = vld [vmem:[%s10605_s29 + $0x1ca8] ss:$16 sps:$4 sm:$0xff]  }
 0x3cd   : > { %7276 = vmatpush1.bf16.msra.mxu0 %v10054_v61  ;;  %v10140_v21 = vld [vmem:[%s10605_s29 + $0x1aac] ss:$16 sps:$4 sm:$0xff]  }
 0x3ce   : > { %7317 = vmatpush1.bf16.msra.mxu1 %v10057_v47  ;;  %7277 = vmatprep.subr.bf16.mxu0 %v10062_v52  ;;  %v10143_v22 = vld [vmem:[%s10605_s29 + $0x1cac] ss:$16 sps:$4 sm:$0xff]  }
 0x3cf   : > { %7318 = vmatprep.subr.bf16.mxu1 %v10065_v38  ;;  %v10146_v61 = vld [vmem:[%s10605_s29 + $0x1acc] ss:$16 sps:$4 sm:$0xff]  }
 0x3d0   : > { %v10149_v47 = vld [vmem:[%s10605_s29 + $0x1ccc] ss:$16 sps:$4 sm:$0xff]  }
 0x3d1   : > { %7278 = vmatpush1.bf16.msra.mxu0 %v10060_v25 }
 0x3d2   : > { %7319 = vmatpush1.bf16.msra.mxu1 %v10063_v42  ;;  %7279 = vmatprep.subr.bf16.mxu0 %v10068_v59 }
 0x3d3   : > { %7320 = vmatprep.subr.bf16.mxu1 %v10071_v27 }
 0x3d5   : > { %7280 = vmatpush1.bf16.msra.mxu0 %v10066_v37 }
 0x3d6   : > { %7321 = vmatpush1.bf16.msra.mxu1 %v10069_v28  ;;  %7281 = vmatprep.subr.bf16.mxu0 %v10074_v29  ;;  %v10144_v29 = vld [vmem:[%s10605_s29 + $0x1ac8] ss:$16 sps:$4 sm:$0xff]  }
 0x3d7   : > { %7322 = vmatprep.subr.bf16.mxu1 %v10077_v30  ;;  %v10147_v30 = vld [vmem:[%s10605_s29 + $0x1cc8] ss:$16 sps:$4 sm:$0xff]  }
 0x3d9   : > { %7282 = vmatpush1.bf16.msra.mxu0 %v10072_v31 }
 0x3da   : > { %7323 = vmatpush1.bf16.msra.mxu1 %v10075_v32  ;;  %7283 = vmatprep.subr.bf16.mxu0 %v10080_v34 }
 0x3db   : > { %7324 = vmatprep.subr.bf16.mxu1 %v10083_v36 }
 0x3dd   : > { %7284 = vmatpush1.bf16.msra.mxu0 %v10078_v55  ;;  %v10150_v55 = vld [vmem:[%s10605_s29 + $0x1ae8] ss:$16 sps:$4 sm:$0xff]  }
 0x3de   : > { %7325 = vmatpush1.bf16.msra.mxu1 %v10081_v33  ;;  %7285 = vmatprep.subr.bf16.mxu0 %v10086_v35  ;;  %v10153_v33 = vld [vmem:[%s10605_s29 + $0x1ce8] ss:$16 sps:$4 sm:$0xff]   ;;  %v10158_v35 = vld [vmem:[%s10605_s29 + $0x1b0c] ss:$16 sps:$4 sm:$0xff]  }
 0x3df   : > { %7326 = vmatprep.subr.bf16.mxu1 %v10089_v11  ;;  %v10161_v11 = vld [vmem:[%s10605_s29 + $0x1d0c] ss:$16 sps:$4 sm:$0xff]  }
 0x3e1   : > { %7286 = vmatpush1.bf16.msra.mxu0 %v10084_v40  ;;  %v10156_v40 = vld [vmem:[%s10605_s29 + $0x1b08] ss:$16 sps:$4 sm:$0xff]  }
 0x3e2   : > { %7327 = vmatpush1.bf16.msra.mxu1 %v10087_v60  ;;  %7287 = vmatprep.subr.bf16.mxu0 %v10092_v45  ;;  %v10159_v60 = vld [vmem:[%s10605_s29 + $0x1d08] ss:$16 sps:$4 sm:$0xff]   ;;  %v10164_v45 = vld [vmem:[%s10605_s29 + $0x1b2c] ss:$16 sps:$4 sm:$0xff]  }
 0x3e3   : > { %7328 = vmatprep.subr.bf16.mxu1 %v10095_v58  ;;  %v10167_v58 = vld [vmem:[%s10605_s29 + $0x1d2c] ss:$16 sps:$4 sm:$0xff]  }
 0x3e5   : > { %7288 = vmatpush1.bf16.msra.mxu0 %v10090_v49  ;;  %v10162_v49 = vld [vmem:[%s10605_s29 + $0x1b28] ss:$16 sps:$4 sm:$0xff]  }
 0x3e6   : > { %7329 = vmatpush1.bf16.msra.mxu1 %v10093_v46  ;;  %7289 = vmatprep.subr.bf16.mxu0 %v10098_v0  ;;  %v10165_v46 = vld [vmem:[%s10605_s29 + $0x1d28] ss:$16 sps:$4 sm:$0xff]   ;;  %v10170_v0 = vld [vmem:[%s10605_s29 + $0x1b4c] ss:$16 sps:$4 sm:$0xff]  }
 0x3e7   : > { %7330 = vmatprep.subr.bf16.mxu1 %v10101_v24  ;;  %v10173_v24 = vld [vmem:[%s10605_s29 + $0x1d4c] ss:$16 sps:$4 sm:$0xff]  }
 0x3e9   : > { %7290 = vmatpush1.bf16.msra.mxu0 %v10096_v4  ;;  %v10168_v4 = vld [vmem:[%s10605_s29 + $0x1b48] ss:$16 sps:$4 sm:$0xff]  }
 0x3ea   : > { %7331 = vmatpush1.bf16.msra.mxu1 %v10099_v62  ;;  %7291 = vmatprep.subr.bf16.mxu0 %v10104_v57  ;;  %v10171_v62 = vld [vmem:[%s10605_s29 + $0x1d48] ss:$16 sps:$4 sm:$0xff]   ;;  %v10176_v57 = vld [vmem:[%s10605_s29 + $0x1b6c] ss:$16 sps:$4 sm:$0xff]  }
 0x3eb   : > { %7332 = vmatprep.subr.bf16.mxu1 %v10107_v5  ;;  %v10179_v5 = vld [vmem:[%s10605_s29 + $0x1d6c] ss:$16 sps:$4 sm:$0xff]  }
 0x3ed   : > { %7292 = vmatpush1.bf16.msra.mxu0 %v10102_v18  ;;  %v10174_v18 = vld [vmem:[%s10605_s29 + $0x1b68] ss:$16 sps:$4 sm:$0xff]  }
 0x3ee   : > { %7333 = vmatpush1.bf16.msra.mxu1 %v10105_v48  ;;  %7343 = vmatprep.subr.bf16.mxu0 %v10110_v51  ;;  %v10177_v48 = vld [vmem:[%s10605_s29 + $0x1d68] ss:$16 sps:$4 sm:$0xff]   ;;  %v10182_v51 = vld [vmem:[%s10605_s29 + $0x1b8c] ss:$16 sps:$4 sm:$0xff]  }
 0x3ef   : > { %7384 = vmatprep.subr.bf16.mxu1 %v10113_v10  ;;  %v10185_v10 = vld [vmem:[%s10605_s29 + $0x1d8c] ss:$16 sps:$4 sm:$0xff]  }
 0x3f0   : > { %7294 = vmatmul.mubr.bf16.vlgmr.msra.gmra.mrb[52].mxu0 %v11177_v53  ;;  %v10120_v53 = vld [vmem:[%s10605_s29 + $0x1a48] ss:$16 sps:$4 sm:$0xff]  }
 0x3f1   : > { %7335 = vmatmul.mubr.bf16.vlgmr.msra.gmra.mrb[52].mxu1 %v11269_v2  ;;  %7344 = vmatpush1.bf16.msra.mxu0 %v10108_v9  ;;  %v10123_v2 = vld [vmem:[%s10605_s29 + $0x1c48] ss:$16 sps:$4 sm:$0xff]  }
 0x3f2   : > { %7385 = vmatpush1.bf16.msra.mxu1 %v10111_v14  ;;  %7345 = vmatprep.subr.bf16.mxu0 %v10116_v1  ;;  %v10180_v9 = vld [vmem:[%s10605_s29 + $0x1b88] ss:$16 sps:$4 sm:$0xff]   ;;  %v10188_v1 = vld [vmem:[%s10605_s29 + $0x1bac] ss:$16 sps:$4 sm:$0xff]  }
 0x3f3   : > { %7386 = vmatprep.subr.bf16.mxu1 %v10119_v12  ;;  %7375 = vmatprep.mubr.bf16.mxu0 %v11190_v50  ;;  %v10129_v50 = vld [vmem:[%s10605_s29 + $0x1c68] ss:$16 sps:$4 sm:$0xff]   ;;  %v10191_v12 = vld [vmem:[%s10605_s29 + $0x1dac] ss:$16 sps:$4 sm:$0xff]  }
 0x3f4   : > { %7416 = vmatprep.mubr.bf16.mxu1 %v11279_v6  ;;  %v10134_v6 = vld [vmem:[%s10605_s29 + $0x1a8c] ss:$16 sps:$4 sm:$0xff]   ;;  %v10183_v14 = vld [vmem:[%s10605_s29 + $0x1d88] ss:$16 sps:$4 sm:$0xff]  }
 0x3f5   : > { %7346 = vmatpush1.bf16.msra.mxu0 %v10114_v54  ;;  %v10186_v54 = vld [vmem:[%s10605_s29 + $0x1ba8] ss:$16 sps:$4 sm:$0xff]  }
 0x3f6   : > { %7387 = vmatpush1.bf16.msra.mxu1 %v10117_v15  ;;  %7347 = vmatprep.subr.bf16.mxu0 %v10122_v39  ;;  %v10189_v15 = vld [vmem:[%s10605_s29 + $0x1da8] ss:$16 sps:$4 sm:$0xff]   ;;  %v10194_v39 = vld [vmem:[%s10605_s29 + $0x1bcc] ss:$16 sps:$4 sm:$0xff]  }
 0x3f7   : > { %7388 = vmatprep.subr.bf16.mxu1 %v10125_v16  ;;  %v10197_v16 = vld [vmem:[%s10605_s29 + $0x1dcc] ss:$16 sps:$4 sm:$0xff]  }
 0x3f9   : > { %7348 = vmatpush1.bf16.msra.mxu0 %v10120_v53  ;;  %v10192_v53 = vld [vmem:[%s10605_s29 + $0x1bc8] ss:$16 sps:$4 sm:$0xff]  }
 0x3fa   : > { %7389 = vmatpush1.bf16.msra.mxu1 %v10123_v2  ;;  %7349 = vmatprep.subr.bf16.mxu0 %v10128_v63  ;;  %v10195_v2 = vld [vmem:[%s10605_s29 + $0x1dc8] ss:$16 sps:$4 sm:$0xff]   ;;  %v10200_v63 = vld [vmem:[%s10605_s29 + $0x1bec] ss:$16 sps:$4 sm:$0xff]  }
 0x3fb   : > { %7390 = vmatprep.subr.bf16.mxu1 %v10131_v26  ;;  %v10203_v26 = vld [vmem:[%s10605_s29 + $0x1dec] ss:$16 sps:$4 sm:$0xff]  }
 0x3fd   : > { %7350 = vmatpush1.bf16.msra.mxu0 %v10126_v23  ;;  %v10198_v23 = vld [vmem:[%s10605_s29 + $0x1be8] ss:$16 sps:$4 sm:$0xff]  }
 0x3fe   : > { %7391 = vmatpush1.bf16.msra.mxu1 %v10129_v50  ;;  %7351 = vmatprep.subr.bf16.mxu0 %v10134_v6  ;;  %v10201_v50 = vld [vmem:[%s10605_s29 + $0x1de8] ss:$16 sps:$4 sm:$0xff]  }
 0x3ff   : > { %7392 = vmatprep.subr.bf16.mxu1 %v10137_v19 }
 0x401   : > { %7352 = vmatpush1.bf16.msra.mxu0 %v10132_v7 }
 0x402   : > { %7393 = vmatpush1.bf16.msra.mxu1 %v10135_v20  ;;  %7353 = vmatprep.subr.bf16.mxu0 %v10140_v21 }
 0x403   : > { %7394 = vmatprep.subr.bf16.mxu1 %v10143_v22  ;;  %v7049_v52 = vpop.f32.mrb[40].mxu0 }
 0x404   : > { %v7090_v38 = vpop.f32.mrb[40].mxu1  ;;  %v7050_v25 = vadd.f32 %v7049_v52, %v11767_v17  ;;  %v7051_v42 = vpop.f32.mrb[41].mxu0  ;;  %v10152_v17 = vld [vmem:[%s10605_s29 + $0x1aec] ss:$16 sps:$4 sm:$0xff]  }
 0x405   : > { %v7092_v59 = vpop.f32.mrb[41].mxu1  ;;  %v7052_v27 = vadd.f32 %v7051_v42, %v11771_v56  ;;  %v7053_v37 = vpop.f32.mrb[42].mxu0  ;;  %7354 = vmatpush1.bf16.msra.mxu0 %v10138_v41  ;;  %v10155_v56 = vld [vmem:[%s10605_s29 + $0x1cec] ss:$16 sps:$4 sm:$0xff]  }
 0x406   : > { %v7094_v28 = vpop.f32.mrb[42].mxu1  ;;  %7395 = vmatpush1.bf16.msra.mxu1 %v10141_v43  ;;  %v11841_v31 = vadd.f32 %v7090_v38, %v7050_v25  ;;  %v7054_v32 = vpop.f32.mrb[43].mxu0  ;;  %7355 = vmatprep.subr.bf16.mxu0 %v10146_v61 }
 0x407   : > { %v7095_v34 = vpop.f32.mrb[43].mxu1  ;;  %7396 = vmatprep.subr.bf16.mxu1 %v10149_v47  ;;  %v11845_v36 = vadd.f32 %v7092_v59, %v7052_v27 }
 0x409   : > { %7356 = vmatpush1.bf16.msra.mxu0 %v10144_v29 }
 0x40a   : > { %7397 = vmatpush1.bf16.msra.mxu1 %v10147_v30  ;;  %7357 = vmatprep.subr.bf16.mxu0 %v10152_v17 }
 0x40b   : > { %7398 = vmatprep.subr.bf16.mxu1 %v10155_v56 }
 0x40d   : > { %7358 = vmatpush1.bf16.msra.mxu0 %v10150_v55 }
 0x40e   : > { %7399 = vmatpush1.bf16.msra.mxu1 %v10153_v33  ;;  %7359 = vmatprep.subr.bf16.mxu0 %v10158_v35 }
 0x40f   : > { %7400 = vmatprep.subr.bf16.mxu1 %v10161_v11 }
 0x411   : > { %7360 = vmatpush1.bf16.msra.mxu0 %v10156_v40 }
 0x412   : > { %7401 = vmatpush1.bf16.msra.mxu1 %v10159_v60  ;;  %7361 = vmatprep.subr.bf16.mxu0 %v10164_v45 }
 0x413   : > { %7402 = vmatprep.subr.bf16.mxu1 %v10167_v58 }
 0x415   : > { %7362 = vmatpush1.bf16.msra.mxu0 %v10162_v49 }
 0x416   : > { %7403 = vmatpush1.bf16.msra.mxu1 %v10165_v46  ;;  %7363 = vmatprep.subr.bf16.mxu0 %v10170_v0 }
 0x417   : > { %7404 = vmatprep.subr.bf16.mxu1 %v10173_v24 }
 0x419   : > { %7364 = vmatpush1.bf16.msra.mxu0 %v10168_v4 }
 0x41a   : > { %7405 = vmatpush1.bf16.msra.mxu1 %v10171_v62  ;;  %7365 = vmatprep.subr.bf16.mxu0 %v10176_v57 }
 0x41b   : > { %7406 = vmatprep.subr.bf16.mxu1 %v10179_v5 }
 0x41d   : > { %7366 = vmatpush1.bf16.msra.mxu0 %v10174_v18 }
 0x41e   : > { %7407 = vmatpush1.bf16.msra.mxu1 %v10177_v48  ;;  %7367 = vmatprep.subr.bf16.mxu0 %v10182_v51 }
 0x41f   : > { %7408 = vmatprep.subr.bf16.mxu1 %v10185_v10 }
 0x421   : > { %7368 = vmatpush1.bf16.msra.mxu0 %v10180_v9 }
 0x422   : > { %7409 = vmatpush1.bf16.msra.mxu1 %v10183_v14  ;;  %7369 = vmatprep.subr.bf16.mxu0 %v10188_v1  ;;  %v7443_v1 = vlaneseq (!%p8623_p3) }
 0x423   : > { %7410 = vmatprep.subr.bf16.mxu1 %v10191_v12 }
 0x424   : > { %v7444_v12 = vshrl.u32 (!%p8623_p3), %v7443_v1, 7 }
 0x425   : > { %7370 = vmatpush1.bf16.msra.mxu0 %v10186_v54  ;;  %v7441_v54 = vld [vmem:[%s239_s6] sm:$0xf] (!%p8623_p3) }
 0x426   : > { %7411 = vmatpush1.bf16.msra.mxu1 %v10189_v15  ;;  %7371 = vmatprep.subr.bf16.mxu0 %v10194_v39  ;;  %v7437_v15 = vld [vmem:[%s10624_s8] sm:$0xff] (!%p8623_p3)  ;;  %v7445_v39 = vsub.s32 (!%p8623_p3), 0, %v7444_v12 }
 0x427   : > { %7412 = vmatprep.subr.bf16.mxu1 %v10197_v16  ;;  %v7449_v16 = vsub.s32 (!%p8623_p3), 1, %v7444_v12 }
 0x429   : > { %7372 = vmatpush1.bf16.msra.mxu0 %v10192_v53  ;;  %v7457_v53 = vsub.s32 (!%p8623_p3), 3, %v7444_v12 }
 0x42a   : > { %7413 = vmatpush1.bf16.msra.mxu1 %v10195_v2  ;;  %7373 = vmatprep.subr.bf16.mxu0 %v10200_v63 }
 0x42b   : > { %7414 = vmatprep.subr.bf16.mxu1 %v10203_v26  ;;  %v7446_v26 = vrot.slane (!%p8623_p3), %v7441_v54, %v7445_v39 }
 0x42d   : > { %7374 = vmatpush1.bf16.msra.mxu0 %v10198_v23  ;;  %v7450_v23 = vrot.slane (!%p8623_p3), %v7441_v54, %v7449_v16 }
 0x42e   : > { %7415 = vmatpush1.bf16.msra.mxu1 %v10201_v50 }
 0x430   : > { %7376 = vmatmul.mubr.bf16.vlgmr.msra.gmra.mrb[56].mxu0 %v11273_v3 }
 0x431   : > { %7417 = vmatmul.mubr.bf16.vlgmr.msra.gmra.mrb[56].mxu1 %v11355_v13 }
 0x443   : > { %v7131_v6 = vpop.f32.mrb[44].mxu0 }
 0x444   : > { %v7172_v19 = vpop.f32.mrb[44].mxu1  ;;  %v7132_v7 = vadd.f32 %v7131_v6, %v11841_v31  ;;  %v7133_v20 = vpop.f32.mrb[45].mxu0  ;;  %v7458_v6 = vrot.slane (!%p8623_p3), %v7441_v54, %v7457_v53 }
 0x445   : > { %v7174_v21 = vpop.f32.mrb[45].mxu1  ;;  %v7134_v22 = vadd.f32 %v7133_v20, %v11845_v36  ;;  %v7135_v41 = vpop.f32.mrb[46].mxu0 }
 0x446   : > { %v7176_v43 = vpop.f32.mrb[46].mxu1  ;;  %v7173_v61 = vadd.f32 %v7172_v19, %v7132_v7  ;;  %v7136_v47 = vpop.f32.mrb[47].mxu0  ;;  %v7463_v19 = vadd.f32 (!%p8623_p3), %v7446_v26, %v7437_v15 }
 0x447   : > { %v7177_v52 = vpop.f32.mrb[47].mxu1  ;;  %v7175_v38 = vadd.f32 %v7174_v21, %v7134_v22 }
 0x448   : > { %v7467_v22 = vmax.f32 (!%p8623_p3), %v7463_v19, 0.0 }
 0x44a   : > { %7471 = vst [vmem:[%s10624_s8] sm:$0xff] (!%p8623_p3), %v7467_v22 }
 0x483   : > { %v7213_v25 = vpop.f32.mrb[48].mxu0 }
 0x484   : > { %v7254_v42 = vpop.f32.mrb[48].mxu1  ;;  %v7214_v59 = vadd.f32 %v7213_v25, %v7173_v61  ;;  %v7215_v3 = vpop.f32.mrb[49].mxu0 }
 0x485   : > { %v7256_v27 = vpop.f32.mrb[49].mxu1  ;;  %v7216_v13 = vadd.f32 %v7215_v3, %v7175_v38  ;;  %v7217_v37 = vpop.f32.mrb[50].mxu0 }
 0x486   : > { %v7258_v28 = vpop.f32.mrb[50].mxu1  ;;  %v7255_v29 = vadd.f32 %v7254_v42, %v7214_v59  ;;  %v7218_v30 = vpop.f32.mrb[51].mxu0 }
 0x487   : > { %v7259_v31 = vpop.f32.mrb[51].mxu1  ;;  %v7257_v32 = vadd.f32 %v7256_v27, %v7216_v13 }
 0x4c3   : > { %v7295_v34 = vpop.f32.mrb[52].mxu0 }
 0x4c4   : > { %v7336_v17 = vpop.f32.mrb[52].mxu1  ;;  %v7296_v56 = vadd.f32 %v7295_v34, %v7255_v29  ;;  %v7297_v36 = vpop.f32.mrb[53].mxu0 }
 0x4c5   : > { %v7338_v55 = vpop.f32.mrb[53].mxu1  ;;  %v7298_v33 = vadd.f32 %v7297_v36, %v7257_v32  ;;  %v7299_v35 = vpop.f32.mrb[54].mxu0 }
 0x4c6   : > { %v7340_v11 = vpop.f32.mrb[54].mxu1  ;;  %v7337_v40 = vadd.f32 %v7336_v17, %v7296_v56  ;;  %v7300_v60 = vpop.f32.mrb[55].mxu0 }
 0x4c7   : > { %v7341_v45 = vpop.f32.mrb[55].mxu1  ;;  %v7339_v58 = vadd.f32 %v7338_v55, %v7298_v33 }
 0x503   : > { %v7377_v49 = vpop.f32.mrb[56].mxu0 }
 0x504   : > { %v7418_v46 = vpop.f32.mrb[56].mxu1  ;;  %v7378_v0 = vadd.f32 %v7377_v49, %v7337_v40  ;;  %v7379_v24 = vpop.f32.mrb[57].mxu0 }
 0x505   : > { %v7420_v4 = vpop.f32.mrb[57].mxu1  ;;  %v7380_v62 = vadd.f32 %v7379_v24, %v7339_v58  ;;  %v7381_v57 = vpop.f32.mrb[58].mxu0  ;;  %7436 = sbr.rel (%p8623_p3) target bundleno = 1304 (0x518), region = 48 }
 0x506   : > { %v7422_v5 = vpop.f32.mrb[58].mxu1  ;;  %v7419_v18 = vadd.f32 %v7418_v46, %v7378_v0  ;;  %v7382_v48 = vpop.f32.mrb[59].mxu0 }
 0x507   : > { %v7423_v51 = vpop.f32.mrb[59].mxu1  ;;  %v7421_v10 = vadd.f32 %v7420_v4, %v7380_v62 }
 0x508   : > { %v7427_v9 = vadd.f32 %v7419_v18, %v11616_v8  ;;  %v7453_v8 = vsub.s32 (!%p8623_p3), 2, %v7444_v12 }
 0x509   : > { %v7428_v14 = vadd.f32 %v7421_v10, %v11619_v44  ;;  %v7438_v44 = vld [vmem:[%s10624_s8 + $0x8] sm:$0xff] (!%p8623_p3) }
 0x50a   : > { %7431 = vst [vmem:[%s10624_s8 + $0x10] sm:$0xff] %v7427_v9  ;;  %v7454_v50 = vrot.slane (!%p8623_p3), %v7441_v54, %v7453_v8  ;;  %v7464_v7 = vadd.f32 (!%p8623_p3), %v7450_v23, %v7438_v44 }
 0x50b   : > { %7432 = vst [vmem:[%s10624_s8 + $0x18] sm:$0xff] %v7428_v14 }
 0x50c   : > { %v7468_v41 = vmax.f32 %v7464_v7, 0.0 }
 0x50e   : > { %7472 = vst [vmem:[%s10624_s8 + $0x8] sm:$0xff] %v7468_v41 }
 0x511   : > { %v7439_v2 = vld [vmem:[%s10624_s8 + $0x10] sm:$0xff] }
 0x512   : > { %v7440_v63 = vld [vmem:[%s10624_s8 + $0x18] sm:$0xff]  ;;  %v7465_v20 = vadd.f32 %v7454_v50, %v7439_v2 }
 0x513   : > { %v7466_v21 = vadd.f32 %v7458_v6, %v7440_v63 }
 0x514   : > { %v7469_v43 = vmax.f32 %v7465_v20, 0.0 }
 0x515   : > { %v7470_v61 = vmax.f32 %v7466_v21, 0.0 }
 0x516   : > { %7473 = vst [vmem:[%s10624_s8 + $0x10] sm:$0xff] %v7469_v43 }
 0x517   : > { %7474 = vst [vmem:[%s10624_s8 + $0x18] sm:$0xff] %v7470_v61 }
 0x518 PF: > { %s19_s22 = sadd.s32 1, %s10358_s22   ;;  %s11960_s29 = sld [smem:[#allocation8_spill]] }
 0x519   : > { %p16_p11 = scmp.ge.s32.totalorder %s19_s22, 12   ;;  %s11961_s12 = smov %s10322_s13 }
 0x51a   : > { %s11962_s13 = smov %s10326_s14  ;;  %s11963_s14 = smov %s10554_s10 }
 0x51b   : > { %s11964_s15 = smov %s10334_s16  ;;  %s11965_s16 = smov %s10338_s17 }
 0x51c   : > { %s11966_s17 = smov %s10559_s28  ;;  %s11967_s18 = smov %s10350_s20 }
 0x51d   : > { %s11968_s19 = smov %s10354_s21  ;;  %s11969_s20 = smov %s11972_s23 }
 0x51e   : > { %s11970_s21 = smov %s11960_s29  ;;  %18 = sbr.rel (!%p16_p11) target bundleno = 11 (0xb), region = 96 }
 0x525   :  { %7505 = vsyncpa [#allocation3], 1 }
 0x526   :  { %7507 = vsyncpa [#allocation3 + $0x1], 1 }
 0x527   :  { %7508 = vsyncpa [#allocation5], 1 }
 0x528   :  { %7510 = vsyncpa [#allocation5 + $0x1], 1 }

</bundles_post_ra>
